<compile_context>
chip_gen: v7x
topology: tpu7x:2x2x1
jax: 0.10.0
libtpu: 0.0.40
codegen_flags: <defaults>
</compile_context>

<pallas_src>
import functools

import jax
import jax.numpy as jnp
from jax.experimental import pallas as pl
from jax.experimental.pallas import tpu as pltpu


# ---------------------------------------------------------------------------
# Helpers: padding, tile selection, VMEM budget
# ---------------------------------------------------------------------------
def _round_up(v, m):
    return ((v + m - 1) // m) * m


def _pad2d(a, rows, cols):
    return jnp.pad(a, ((0, rows - a.shape[0]), (0, cols - a.shape[1])))


def _vmem_limit_bytes():
    cap = 64 * 1024 * 1024  # conservative fallback (v7x physical VMEM)
    try:
        cap = int(pltpu.get_tpu_info().vmem_capacity_bytes)
    except Exception:
        pass
    # keep headroom for compiler-internal scratch; cap well below physical
    return min((cap * 3) // 4, 100 * 1024 * 1024)


_VMEM_LIMIT = _vmem_limit_bytes()          # 48 MiB on v7x, ~96 MiB on v5e/v6e
_BLOCK_BUDGET = int(_VMEM_LIMIT * 0.85)    # what tile sizing is allowed to use


def _pick_row_tile(n):
    """Row tile: 512 for large graphs; whole (128-padded) graph when small."""
    if n <= 512:
        return max(_round_up(n, 128), 128)
    return 512


def _largest_fitting_tile(total, fits):
    """Largest 128-multiple divisor of `total` accepted by `fits`."""
    tk = total
    while tk >= 128:
        if total % tk == 0 and tk % 128 == 0 and fits(tk):
            return tk
        tk -= 128
    return 128


# ---------------------------------------------------------------------------
# Kernel 1: feature projection  XW = x @ W  (bf16 operands, f32 MXU acc)
# ---------------------------------------------------------------------------
def _xw_kernel(x_ref, w_ref, o_ref):
    o_ref[...] = jnp.dot(
        x_ref[...], w_ref[...], preferred_element_type=jnp.float32
    ).astype(o_ref.dtype)


def _xw_ktiled_kernel(x_ref, w_ref, o_ref, acc_ref):
    k = pl.program_id(1)

    @pl.when(k == 0)
    def _():
        acc_ref[...] = jnp.zeros_like(acc_ref)

    acc_ref[...] += jnp.dot(
        x_ref[...], w_ref[...], preferred_element_type=jnp.float32
    )

    @pl.when(k == pl.num_programs(1) - 1)
    def _():
        o_ref[...] = acc_ref[...].astype(o_ref.dtype)


def _project_features(h_bf, w_bf, tm):
    """h_bf: bf16 [n_pad, f_in_pad], w_bf: bf16 [f_in_pad, f_out_pad] -> bf16 XW."""
    n_pad, f_in = h_bf.shape
    f_out = w_bf.shape[1]

    def full_fits():
        x_b = tm * f_in * 2 * 2          # double-buffered bf16 x tile
        w_b = f_in * f_out * 2 * 2       # resident bf16 W (count 2 bufs, safe)
        o_b = tm * f_out * 2 * 2
        return x_b + w_b + o_b <= _BLOCK_BUDGET

    if full_fits():
        return pl.pallas_call(
            _xw_kernel,
            out_shape=jax.ShapeDtypeStruct((n_pad, f_out), jnp.bfloat16),
            grid=(n_pad // tm,),
            in_specs=[
                pl.BlockSpec((tm, f_in), lambda i: (i, 0)),
                pl.BlockSpec((f_in, f_out), lambda i: (0, 0)),   # W resident
            ],
            out_specs=pl.BlockSpec((tm, f_out), lambda i: (i, 0)),
            compiler_params=pltpu.CompilerParams(
                dimension_semantics=("parallel",),
                vmem_limit_bytes=_VMEM_LIMIT,
            ),
        )(h_bf, w_bf)

    # Wide-feature fallback: tile the f_in contraction with an f32 accumulator.
    def kt_fits(tk):
        x_b = tm * tk * 2 * 2
        w_b = tk * f_out * 2 * 2
        o_b = tm * f_out * 2 * 2
        acc_b = tm * f_out * 4
        return x_b + w_b + o_b + acc_b <= _BLOCK_BUDGET

    tk = _largest_fitting_tile(f_in, kt_fits)
    return pl.pallas_call(
        _xw_ktiled_kernel,
        out_shape=jax.ShapeDtypeStruct((n_pad, f_out), jnp.bfloat16),
        grid=(n_pad // tm, f_in // tk),
        in_specs=[
            pl.BlockSpec((tm, tk), lambda i, k: (i, k)),
            pl.BlockSpec((tk, f_out), lambda i, k: (k, 0)),
        ],
        out_specs=pl.BlockSpec((tm, f_out), lambda i, k: (i, 0)),
        scratch_shapes=[pltpu.VMEM((tm, f_out), jnp.float32)],
        compiler_params=pltpu.CompilerParams(
            dimension_semantics=("parallel", "arbitrary"),
            vmem_limit_bytes=_VMEM_LIMIT,
        ),
    )(h_bf, w_bf)


# ---------------------------------------------------------------------------
# Kernel 2: aggregation  out = adj @ XW + b  (+ optional ReLU)
# ---------------------------------------------------------------------------
def _agg_fullk_kernel(adj_ref, xw_ref, b_ref, o_ref, *, apply_relu):
    # Full-K row slab: no reduction axis, no accumulator, single MXU pass.
    out = jnp.dot(adj_ref[...], xw_ref[...], preferred_element_type=jnp.float32)
    out = out + b_ref[...]
    if apply_relu:
        out = jnp.maximum(out, 0.0)
    o_ref[...] = out.astype(o_ref.dtype)


def _agg_ktiled_kernel(adj_ref, xw_ref, b_ref, o_ref, acc_ref, *, apply_relu):
    k = pl.program_id(1)

    @pl.when(k == 0)
    def _():
        acc_ref[...] = jnp.zeros_like(acc_ref)

    acc_ref[...] += jnp.dot(
        adj_ref[...], xw_ref[...], preferred_element_type=jnp.float32
    )

    @pl.when(k == pl.num_programs(1) - 1)
    def _():
        out = acc_ref[...] + b_ref[...]
        if apply_relu:
            out = jnp.maximum(out, 0.0)
        o_ref[...] = out.astype(o_ref.dtype)


def _aggregate(adj_bf, xw_bf, b_row, *, apply_relu, out_dtype, tm,
               force_ktiled=False):
    n_pad = adj_bf.shape[0]
    f_out = xw_bf.shape[1]
    out_bytes = jnp.dtype(out_dtype).itemsize

    def fullk_fits():
        adj_b = tm * n_pad * 2 * 2       # double-buffered bf16 adj row slab
        xw_b = n_pad * f_out * 2 * 2     # resident bf16 XW (constant index_map)
        o_b = tm * f_out * out_bytes * 2
        return adj_b + xw_b + o_b <= _BLOCK_BUDGET

    if (not force_ktiled) and fullk_fits():
        kernel = functools.partial(_agg_fullk_kernel, apply_relu=apply_relu)
        return pl.pallas_call(
            kernel,
            out_shape=jax.ShapeDtypeStruct((n_pad, f_out), out_dtype),
            grid=(n_pad // tm,),
            in_specs=[
                pl.BlockSpec((tm, n_pad), lambda i: (i, 0)),      # adj row slab
                pl.BlockSpec((n_pad, f_out), lambda i: (0, 0)),   # XW, DMA'd once
                pl.BlockSpec((1, f_out), lambda i: (0, 0)),       # bias row
            ],
            out_specs=pl.BlockSpec((tm, f_out), lambda i: (i, 0)),
            compiler_params=pltpu.CompilerParams(
                dimension_semantics=("parallel",),
                vmem_limit_bytes=_VMEM_LIMIT,
            ),
        )(adj_bf, xw_bf, b_row)

    # Fallback for graphs too large for a full-K slab: (row, k) grid with the
    # biggest contraction tile that fits VMEM and an f32 accumulator.
    def kt_fits(tk):
        adj_b = tm * tk * 2 * 2
        xw_b = tk * f_out * 2 * 2
        o_b = tm * f_out * out_bytes * 2
        acc_b = tm * f_out * 4
        return adj_b + xw_b + o_b + acc_b <= _BLOCK_BUDGET

    tk = _largest_fitting_tile(n_pad, kt_fits)
    if force_ktiled:
        tk = min(tk, tm)   # test hook: guarantee a real k reduction
    kernel = functools.partial(_agg_ktiled_kernel, apply_relu=apply_relu)
    return pl.pallas_call(
        kernel,
        out_shape=jax.ShapeDtypeStruct((n_pad, f_out), out_dtype),
        grid=(n_pad // tm, n_pad // tk),
        in_specs=[
            pl.BlockSpec((tm, tk), lambda i, k: (i, k)),
            pl.BlockSpec((tk, f_out), lambda i, k: (k, 0)),
            pl.BlockSpec((1, f_out), lambda i, k: (0, 0)),
        ],
        out_specs=pl.BlockSpec((tm, f_out), lambda i, k: (i, 0)),
        scratch_shapes=[pltpu.VMEM((tm, f_out), jnp.float32)],
        compiler_params=pltpu.CompilerParams(
            dimension_semantics=("parallel", "arbitrary"),
            vmem_limit_bytes=_VMEM_LIMIT,
        ),
    )(adj_bf, xw_bf, b_row)


# ---------------------------------------------------------------------------
# GCNDeep forward
# ---------------------------------------------------------------------------
def init_gcn_params(key, nfeat, nhid, nout, nlayers):
    """Deterministic parameter init matching GCNDeep layer shapes."""
    dims = [nfeat] + [nhid] * (nlayers - 1) + [nout]
    params = []
    for i in range(nlayers):
        f_in, f_out = dims[i], dims[i + 1]
        key, kw, kb = jax.random.split(key, 3)
        stdv = 1.0 / jnp.sqrt(f_out)
        w = jax.random.uniform(kw, (f_in, f_out), jnp.float32, -stdv, stdv)
        b = jax.random.uniform(kb, (f_out,), jnp.float32, -stdv, stdv)
        params.append((w, b))
    return params


def gcn_deep_forward(x, adj, params, force_ktiled=False):
    """GCNDeep.forward (inference): ReLU after all layers except the last."""
    n = x.shape[0]
    nout = params[-1][0].shape[1]

    tm = _pick_row_tile(n)
    n_pad = _round_up(n, tm)            # pad N to a multiple of the row tile

    # Pad + cast once; adj is reused by every layer, activations stay bf16.
    adj_bf = _pad2d(adj, n_pad, n_pad).astype(jnp.bfloat16)
    h = _pad2d(x, n_pad, _round_up(x.shape[1], 128)).astype(jnp.bfloat16)

    n_layers = len(params)
    for idx, (w, b) in enumerate(params):
        f_in, f_out = w.shape
        f_in_pad = _round_up(f_in, 128)
        f_out_pad = _round_up(f_out, 128)
        w_bf = _pad2d(w, f_in_pad, f_out_pad).astype(jnp.bfloat16)
        b_row = jnp.pad(b, (0, f_out_pad - f_out)).reshape(1, f_out_pad)
        b_row = b_row.astype(jnp.float32)

        last = idx == n_layers - 1
        xw = _project_features(h, w_bf, tm)            # bf16 [n_pad, f_out_pad]
        h = _aggregate(adj_bf, xw, b_row,
                       apply_relu=not last,
                       out_dtype=jnp.float32 if last else jnp.bfloat16,
                       tm=tm, force_ktiled=force_ktiled)

    return h[:n, :nout]


def gcn_deep_reference(x, adj, params):
    """Pure-JAX reference with the same bf16-operand / f32-accumulate flow."""
    adj_bf = adj.astype(jnp.bfloat16)
    h = x.astype(jnp.bfloat16)
    n_layers = len(params)
    out = None
    for idx, (w, b) in enumerate(params):
        xw = jnp.dot(h, w.astype(jnp.bfloat16),
                     preferred_element_type=jnp.float32).astype(jnp.bfloat16)
        out = jnp.dot(adj_bf, xw, preferred_element_type=jnp.float32) + b
        if idx < n_layers - 1:
            out = jnp.maximum(out, 0.0)
            h = out.astype(jnp.bfloat16)
    return out


if __name__ == "__main__":
    key = jax.random.PRNGKey(0)

    # Small synthetic problem consistent with GCNDeep(nfeat, nhid, nout, dropout,
    # nlayers).  n_nodes=900 pads to 1024 with a 512 row tile -> 2 row tiles,
    # so the parallel row axis and the full-K slab path are both exercised;
    # the forced run below exercises the k-tiled fallback (k reduction > 1).
    n_nodes, nfeat, nhid, nout, nlayers = 900, 96, 64, 16, 4

    key, kx, ka, kp = jax.random.split(key, 4)
    x = jax.random.normal(kx, (n_nodes, nfeat), jnp.float32)

    # Symmetric adjacency with self loops, row-normalized.
    a_raw = (jax.random.uniform(ka, (n_nodes, n_nodes)) < 0.02).astype(jnp.float32)
    a_sym = jnp.maximum(a_raw, a_raw.T) + jnp.eye(n_nodes, dtype=jnp.float32)
    deg = jnp.sum(a_sym, axis=1, keepdims=True)
    adj = a_sym / deg

    params = init_gcn_params(kp, nfeat, nhid, nout, nlayers)

    fwd = jax.jit(gcn_deep_forward)
    fwd_ktiled = jax.jit(functools.partial(gcn_deep_forward, force_ktiled=True))

    out = jax.block_until_ready(fwd(x, adj, params))
    out_kt = jax.block_until_ready(fwd_ktiled(x, adj, params))

    ref = gcn_deep_reference(x, adj, params)
    assert out.shape == (n_nodes, nout)
    assert jnp.allclose(out, ref, atol=2e-2, rtol=2e-2), float(
        jnp.max(jnp.abs(out - ref)))
    assert jnp.allclose(out_kt, ref, atol=2e-2, rtol=2e-2), float(
        jnp.max(jnp.abs(out_kt - ref)))

    print("KERNEL_OK")
</pallas_src>

<mosaic_0001>
module attributes {stable_mosaic.version = 11 : i64} {
  func.func @_xw_kernel(%arg0: i32, %arg1: memref<512x128xbf16, #tpu.memory_space<vmem>>, %arg2: memref<128x128xbf16, #tpu.memory_space<vmem>>, %arg3: memref<512x128xbf16, #tpu.memory_space<vmem>>) attributes {dimension_semantics = [#tpu.dimension_semantics<parallel>], iteration_bounds = array<i64: 2>, scalar_prefetch = 0 : i64, scratch_operands = 0 : i64, tpu.core_type = #tpu.core_type<tc>, window_params = [{transform_indices = @transform_0, window_bounds = array<i64: 512, 128>}, {pipeline_mode = #tpu.pipeline_mode<synchronous>, transform_indices = @transform_1, window_bounds = array<i64: 128, 128>}, {transform_indices = @transform_2, window_bounds = array<i64: 512, 128>}]} {
    %c0 = arith.constant 0 : index
    %c0_0 = arith.constant 0 : index
    %0 = vector.load %arg1[%c0, %c0_0] : memref<512x128xbf16, #tpu.memory_space<vmem>>, vector<512x128xbf16>
    %c0_1 = arith.constant 0 : index
    %c0_2 = arith.constant 0 : index
    %1 = vector.load %arg2[%c0_1, %c0_2] : memref<128x128xbf16, #tpu.memory_space<vmem>>, vector<128x128xbf16>
    %cst = arith.constant dense<0.000000e+00> : vector<512x128xf32>
    %2 = tpu.matmul %0, %1, %cst {dimension_numbers = #tpu.dot_dimension_numbers<[1], [0], [0], [1], [0, 0, 1, 1], [], []>} : vector<512x128xbf16>, vector<128x128xbf16>, vector<512x128xf32> -> vector<512x128xf32>
    %3 = arith.truncf %2 : vector<512x128xf32> to vector<512x128xbf16>
    %c0_3 = arith.constant 0 : index
    %c0_4 = arith.constant 0 : index
    %4 = vector.load %arg3[%c0_3, %c0_4] : memref<512x128xbf16, #tpu.memory_space<vmem>>, vector<512x128xbf16>
    tpu.vector_store %arg3[%c0_3, %c0_4], %3 {strides = array<i32>} : memref<512x128xbf16, #tpu.memory_space<vmem>>, vector<512x128xbf16>,
    return
  }
  func.func @transform_0(%arg0: i32) -> (i32, i32) {
    %c0_i32 = arith.constant 0 : i32
    %c0_i32_0 = arith.constant 0 : i32
    return %arg0, %c0_i32 : i32, i32
  }
  func.func @transform_1(%arg0: i32) -> (i32, i32) {
    %c0_i32 = arith.constant 0 : i32
    %c0_i32_0 = arith.constant 0 : i32
    %c0_i32_1 = arith.constant 0 : i32
    return %c0_i32, %c0_i32_0 : i32, i32
  }
  func.func @transform_2(%arg0: i32) -> (i32, i32) {
    %c0_i32 = arith.constant 0 : i32
    %c0_i32_0 = arith.constant 0 : i32
    return %arg0, %c0_i32 : i32, i32
  }
}

module attributes {stable_mosaic.version = 11 : i64} {
  func.func @_agg_fullk_kernel(%arg0: i32, %arg1: memref<512x1024xbf16, #tpu.memory_space<vmem>>, %arg2: memref<1024x128xbf16, #tpu.memory_space<vmem>>, %arg3: memref<1x128xf32, #tpu.memory_space<vmem>>, %arg4: memref<512x128xbf16, #tpu.memory_space<vmem>>) attributes {dimension_semantics = [#tpu.dimension_semantics<parallel>], iteration_bounds = array<i64: 2>, scalar_prefetch = 0 : i64, scratch_operands = 0 : i64, tpu.core_type = #tpu.core_type<tc>, window_params = [{transform_indices = @transform_0, window_bounds = array<i64: 512, 1024>}, {pipeline_mode = #tpu.pipeline_mode<synchronous>, transform_indices = @transform_1, window_bounds = array<i64: 1024, 128>}, {pipeline_mode = #tpu.pipeline_mode<synchronous>, transform_indices = @transform_2, window_bounds = array<i64: 1, 128>}, {transform_indices = @transform_3, window_bounds = array<i64: 512, 128>}]} {
    %c0 = arith.constant 0 : index
    %c0_0 = arith.constant 0 : index
    %0 = vector.load %arg1[%c0, %c0_0] : memref<512x1024xbf16, #tpu.memory_space<vmem>>, vector<512x1024xbf16>
    %c0_1 = arith.constant 0 : index
    %c0_2 = arith.constant 0 : index
    %1 = vector.load %arg2[%c0_1, %c0_2] : memref<1024x128xbf16, #tpu.memory_space<vmem>>, vector<1024x128xbf16>
    %cst = arith.constant dense<0.000000e+00> : vector<512x128xf32>
    %2 = tpu.matmul %0, %1, %cst {dimension_numbers = #tpu.dot_dimension_numbers<[1], [0], [0], [1], [0, 0, 1, 1], [], []>} : vector<512x1024xbf16>, vector<1024x128xbf16>, vector<512x128xf32> -> vector<512x128xf32>
    %c0_3 = arith.constant 0 : index
    %c0_4 = arith.constant 0 : index
    %3 = vector.load %arg3[%c0_3, %c0_4] : memref<1x128xf32, #tpu.memory_space<vmem>>, vector<1x128xf32>
    %4 = vector.broadcast %3 : vector<1x128xf32> to vector<512x128xf32>
    %5 = arith.addf %2, %4 : vector<512x128xf32>
    %cst_5 = arith.constant 0.000000e+00 : f32
    %6 = vector.broadcast %cst_5 : f32 to vector<512x128xf32>
    %7 = arith.maximumf %5, %6 : vector<512x128xf32>
    %8 = arith.truncf %7 : vector<512x128xf32> to vector<512x128xbf16>
    %c0_6 = arith.constant 0 : index
    %c0_7 = arith.constant 0 : index
    %9 = vector.load %arg4[%c0_6, %c0_7] : memref<512x128xbf16, #tpu.memory_space<vmem>>, vector<512x128xbf16>
    tpu.vector_store %arg4[%c0_6, %c0_7], %8 {strides = array<i32>} : memref<512x128xbf16, #tpu.memory_space<vmem>>, vector<512x128xbf16>,
    return
  }
  func.func @transform_0(%arg0: i32) -> (i32, i32) {
    %c0_i32 = arith.constant 0 : i32
    %c0_i32_0 = arith.constant 0 : i32
    return %arg0, %c0_i32 : i32, i32
  }
  func.func @transform_1(%arg0: i32) -> (i32, i32) {
    %c0_i32 = arith.constant 0 : i32
    %c0_i32_0 = arith.constant 0 : i32
    %c0_i32_1 = arith.constant 0 : i32
    return %c0_i32, %c0_i32_0 : i32, i32
  }
  func.func @transform_2(%arg0: i32) -> (i32, i32) {
    %c0_i32 = arith.constant 0 : i32
    %c0_i32_0 = arith.constant 0 : i32
    %c0_i32_1 = arith.constant 0 : i32
    return %c0_i32, %c0_i32_0 : i32, i32
  }
  func.func @transform_3(%arg0: i32) -> (i32, i32) {
    %c0_i32 = arith.constant 0 : i32
    %c0_i32_0 = arith.constant 0 : i32
    return %arg0, %c0_i32 : i32, i32
  }
}

module attributes {stable_mosaic.version = 11 : i64} {
  func.func @_agg_fullk_kernel(%arg0: i32, %arg1: memref<512x1024xbf16, #tpu.memory_space<vmem>>, %arg2: memref<1024x128xbf16, #tpu.memory_space<vmem>>, %arg3: memref<1x128xf32, #tpu.memory_space<vmem>>, %arg4: memref<512x128xf32, #tpu.memory_space<vmem>>) attributes {dimension_semantics = [#tpu.dimension_semantics<parallel>], iteration_bounds = array<i64: 2>, scalar_prefetch = 0 : i64, scratch_operands = 0 : i64, tpu.core_type = #tpu.core_type<tc>, window_params = [{transform_indices = @transform_0, window_bounds = array<i64: 512, 1024>}, {pipeline_mode = #tpu.pipeline_mode<synchronous>, transform_indices = @transform_1, window_bounds = array<i64: 1024, 128>}, {pipeline_mode = #tpu.pipeline_mode<synchronous>, transform_indices = @transform_2, window_bounds = array<i64: 1, 128>}, {transform_indices = @transform_3, window_bounds = array<i64: 512, 128>}]} {
    %c0 = arith.constant 0 : index
    %c0_0 = arith.constant 0 : index
    %0 = vector.load %arg1[%c0, %c0_0] : memref<512x1024xbf16, #tpu.memory_space<vmem>>, vector<512x1024xbf16>
    %c0_1 = arith.constant 0 : index
    %c0_2 = arith.constant 0 : index
    %1 = vector.load %arg2[%c0_1, %c0_2] : memref<1024x128xbf16, #tpu.memory_space<vmem>>, vector<1024x128xbf16>
    %cst = arith.constant dense<0.000000e+00> : vector<512x128xf32>
    %2 = tpu.matmul %0, %1, %cst {dimension_numbers = #tpu.dot_dimension_numbers<[1], [0], [0], [1], [0, 0, 1, 1], [], []>} : vector<512x1024xbf16>, vector<1024x128xbf16>, vector<512x128xf32> -> vector<512x128xf32>
    %c0_3 = arith.constant 0 : index
    %c0_4 = arith.constant 0 : index
    %3 = vector.load %arg3[%c0_3, %c0_4] : memref<1x128xf32, #tpu.memory_space<vmem>>, vector<1x128xf32>
    %4 = vector.broadcast %3 : vector<1x128xf32> to vector<512x128xf32>
    %5 = arith.addf %2, %4 : vector<512x128xf32>
    %c0_5 = arith.constant 0 : index
    %c0_6 = arith.constant 0 : index
    %6 = vector.load %arg4[%c0_5, %c0_6] : memref<512x128xf32, #tpu.memory_space<vmem>>, vector<512x128xf32>
    tpu.vector_store %arg4[%c0_5, %c0_6], %5 {strides = array<i32>} : memref<512x128xf32, #tpu.memory_space<vmem>>, vector<512x128xf32>,
    return
  }
  func.func @transform_0(%arg0: i32) -> (i32, i32) {
    %c0_i32 = arith.constant 0 : i32
    %c0_i32_0 = arith.constant 0 : i32
    return %arg0, %c0_i32 : i32, i32
  }
  func.func @transform_1(%arg0: i32) -> (i32, i32) {
    %c0_i32 = arith.constant 0 : i32
    %c0_i32_0 = arith.constant 0 : i32
    %c0_i32_1 = arith.constant 0 : i32
    return %c0_i32, %c0_i32_0 : i32, i32
  }
  func.func @transform_2(%arg0: i32) -> (i32, i32) {
    %c0_i32 = arith.constant 0 : i32
    %c0_i32_0 = arith.constant 0 : i32
    %c0_i32_1 = arith.constant 0 : i32
    return %c0_i32, %c0_i32_0 : i32, i32
  }
  func.func @transform_3(%arg0: i32) -> (i32, i32) {
    %c0_i32 = arith.constant 0 : i32
    %c0_i32_0 = arith.constant 0 : i32
    return %arg0, %c0_i32 : i32, i32
  }
}

</mosaic_0001>

<bundles_post_ra>
// kernel: gcn_deep_forward.8
= control target key start
LH: loop header
LB: loop body
LE: loop exit
PB: predicated region body
PF: predicated region fallthrough
CT: control target
= control target key end

     0   :  { %s1710_s9 = smov 0   ;;  %s1826_s0 = inlined_call_operand.vmem [shape: bf16[1024,128], index: 0, kind: input, shape index: {}]   ;;  %s1827_s1 = inlined_call_operand.vmem [shape: bf16[128,128], index: 1, kind: input, shape index: {}]   ;;  %s1828_s2 = inlined_call_operand.vmem [shape: bf16[1024,128], index: 2, kind: output, shape index: {}]  }
   0x1 LB: > { %s1133_s10 = sadd.s32 4294967295, %s1693_s9   ;;  %p1137_p0 = scmp.ge.s32.totalorder %s1693_s9, 1  ;;  %s1693_s9 = sphi %s1710_s9, %s12_s9  }
   0x2   : > { %p113_p1 = scmp.lt.s32.totalorder %s1693_s9, 3 }
   0x4   : > { %p114_p2 = pnand %p1137_p0, %p113_p1 }
   0x5   : > { %v1647_v0 = vld [vmem:[%s1827_s1] sm:$0xff] (!%p114_p2)   ;;  %s1138_s13 = sshll.u32 (!%p114_p2), %s1133_s10, 6  ;;  %v1648_v1 = vld [vmem:[%s1827_s1 + $0x8] sm:$0xff] (!%p114_p2)   ;;  %v1649_v2 = vld [vmem:[%s1827_s1 + $0x10] sm:$0xff] (!%p114_p2)  }
   0x6   : > { %117 = sbr.rel (%p114_p2) target bundleno = 312 (0x138), region = 28  ;;  %p136_p3 = scmp.lt.s32.totalorder (!%p114_p2), %s1138_s13, 127  ;;  %1543 = vmatprep.subr.bf16.mxu0 (!%p114_p2), %v1647_v0  ;;  %1623 = vmatprep.subr.bf16.mxu1 (!%p114_p2), %v1647_v0  ;;  %v1650_v3 = vld [vmem:[%s1827_s1 + $0x18] sm:$0xff] (!%p114_p2)   ;;  %v1651_v6 = vld [vmem:[%s1827_s1 + $0x20] sm:$0xff] (!%p114_p2)   ;;  %v1652_v7 = vld [vmem:[%s1827_s1 + $0x28] sm:$0xff] (!%p114_p2)  }
   0x7   : > { %1544 = vmatpush3.bf16.msra.mxu0 (!%p114_p2), %v1647_v0  ;;  %1631 = vmatpush3.bf16.msra.mxu1 (!%p114_p2), %v1647_v0  ;;  %v1653_v8 = vld [vmem:[%s1827_s1 + $0x30] sm:$0xff] (!%p114_p2)   ;;  %v1654_v9 = vld [vmem:[%s1827_s1 + $0x38] sm:$0xff] (!%p114_p2)  }
   0x8   : > { %1545 = vmatprep.subr.bf16.mxu0 (!%p114_p2), %v1648_v1  ;;  %1624 = vmatprep.subr.bf16.mxu1 (!%p114_p2), %v1648_v1 }
   0xb   : > { %1546 = vmatpush3.bf16.msra.mxu0 (!%p114_p2), %v1648_v1  ;;  %1632 = vmatpush3.bf16.msra.mxu1 (!%p114_p2), %v1648_v1 }
   0xc   : > { %1547 = vmatprep.subr.bf16.mxu0 (!%p114_p2), %v1649_v2  ;;  %1625 = vmatprep.subr.bf16.mxu1 (!%p114_p2), %v1649_v2 }
   0xd   : > { %s1830_s13 = smov (!%p136_p3, %s1138_s13), 127 }
   0xe   : > { %s1139_s18 = sshll.u32 %s1830_s13, 2 }
   0xf   : > { %s1735_s21 = scalar_lea.vmem %s1826_s0, %s1139_s18  ;;  %1548 = vmatpush3.bf16.msra.mxu0 %v1649_v2  ;;  %1633 = vmatpush3.bf16.msra.mxu1 %v1649_v2  ;;  %s1789_s6 = scalar_lea.vmem %s1828_s2, %s1139_s18 }
  0x10   : > { %v1655_v4 = vld [vmem:[%s1735_s21] sm:$0xff]   ;;  %1549 = vmatprep.subr.bf16.mxu0 %v1650_v3  ;;  %1626 = vmatprep.subr.bf16.mxu1 %v1650_v3  ;;  %v1657_v10 = vld [vmem:[%s1735_s21 + $0x8] sm:$0xff]   ;;  %v1659_v12 = vld [vmem:[%s1735_s21 + $0x10] sm:$0xff]  }
  0x11   : > { %v1656_v5 = vld [vmem:[%s1735_s21 + $0x80] sm:$0xff]   ;;  %1559 = vmatprep.mubr.bf16.mxu0 %v1655_v4  ;;  %v1658_v11 = vld [vmem:[%s1735_s21 + $0x88] sm:$0xff]   ;;  %v1660_v13 = vld [vmem:[%s1735_s21 + $0x90] sm:$0xff]  }
  0x12   : > { %1591 = vmatprep.mubr.bf16.mxu1 %v1656_v5  ;;  %v1661_v14 = vld [vmem:[%s1735_s21 + $0x18] sm:$0xff]   ;;  %v1663_v16 = vld [vmem:[%s1735_s21 + $0x20] sm:$0xff]   ;;  %v1665_v18 = vld [vmem:[%s1735_s21 + $0x28] sm:$0xff]  }
  0x13   : > { %1550 = vmatpush3.bf16.msra.mxu0 %v1650_v3  ;;  %1634 = vmatpush3.bf16.msra.mxu1 %v1650_v3  ;;  %v1662_v15 = vld [vmem:[%s1735_s21 + $0x98] sm:$0xff]   ;;  %v1664_v17 = vld [vmem:[%s1735_s21 + $0xa0] sm:$0xff]   ;;  %v1666_v19 = vld [vmem:[%s1735_s21 + $0xa8] sm:$0xff]  }
  0x14   : > { %1551 = vmatprep.subr.bf16.mxu0 %v1651_v6  ;;  %1627 = vmatprep.subr.bf16.mxu1 %v1651_v6  ;;  %v1667_v20 = vld [vmem:[%s1735_s21 + $0x30] sm:$0xff]   ;;  %v1669_v22 = vld [vmem:[%s1735_s21 + $0x38] sm:$0xff]   ;;  %v1671_v24 = vld [vmem:[%s1735_s21 + $0x40] sm:$0xff]  }
  0x15   : > { %v1668_v21 = vld [vmem:[%s1735_s21 + $0xb0] sm:$0xff]   ;;  %v1670_v23 = vld [vmem:[%s1735_s21 + $0xb8] sm:$0xff]   ;;  %v1672_v25 = vld [vmem:[%s1735_s21 + $0xc0] sm:$0xff]  }
  0x16   : > { %v1673_v26 = vld [vmem:[%s1735_s21 + $0x48] sm:$0xff]   ;;  %v1675_v28 = vld [vmem:[%s1735_s21 + $0x50] sm:$0xff]   ;;  %v1677_v30 = vld [vmem:[%s1735_s21 + $0x58] sm:$0xff]  }
  0x17   : > { %1552 = vmatpush3.bf16.msra.mxu0 %v1651_v6  ;;  %1635 = vmatpush3.bf16.msra.mxu1 %v1651_v6  ;;  %v1674_v27 = vld [vmem:[%s1735_s21 + $0xc8] sm:$0xff]   ;;  %v1676_v29 = vld [vmem:[%s1735_s21 + $0xd0] sm:$0xff]   ;;  %v1678_v31 = vld [vmem:[%s1735_s21 + $0xd8] sm:$0xff]  }
  0x18   : > { %1553 = vmatprep.subr.bf16.mxu0 %v1652_v7  ;;  %1628 = vmatprep.subr.bf16.mxu1 %v1652_v7  ;;  %v1679_v32 = vld [vmem:[%s1735_s21 + $0x60] sm:$0xff]   ;;  %v1681_v34 = vld [vmem:[%s1735_s21 + $0x68] sm:$0xff]   ;;  %v1683_v36 = vld [vmem:[%s1735_s21 + $0x70] sm:$0xff]  }
  0x19   : > { %v1680_v33 = vld [vmem:[%s1735_s21 + $0xe0] sm:$0xff]   ;;  %v1682_v35 = vld [vmem:[%s1735_s21 + $0xe8] sm:$0xff]   ;;  %v1684_v37 = vld [vmem:[%s1735_s21 + $0xf0] sm:$0xff]  }
  0x1a   : > { %v1685_v38 = vld [vmem:[%s1735_s21 + $0x78] sm:$0xff]  }
  0x1b   : > { %1554 = vmatpush3.bf16.msra.mxu0 %v1652_v7  ;;  %1636 = vmatpush3.bf16.msra.mxu1 %v1652_v7  ;;  %v1686_v39 = vld [vmem:[%s1735_s21 + $0xf8] sm:$0xff]  }
  0x1c   : > { %1555 = vmatprep.subr.bf16.mxu0 %v1653_v8  ;;  %1629 = vmatprep.subr.bf16.mxu1 %v1653_v8 }
  0x1f   : > { %1556 = vmatpush3.bf16.msra.mxu0 %v1653_v8  ;;  %1637 = vmatpush3.bf16.msra.mxu1 %v1653_v8 }
  0x20   : > { %1557 = vmatprep.subr.bf16.mxu0 %v1654_v9  ;;  %1630 = vmatprep.subr.bf16.mxu1 %v1654_v9 }
  0x23   : > { %1558 = vmatpush3.bf16.msra.mxu0 %v1654_v9  ;;  %1638 = vmatpush3.bf16.msra.mxu1 %v1654_v9 }
  0x26   : > { %1560 = vmatmul.mubr.bf16.vlgmr.msra.gmra.mrb[0].mxu0 %v1657_v10  ;;  %1592 = vmatmul.mubr.bf16.vlgmr.msra.gmra.mrb[0].mxu1 %v1658_v11 }
  0x27   : > { %1563 = vmatprep.mubr.bf16.mxu0 %v1659_v12  ;;  %1595 = vmatprep.mubr.bf16.mxu1 %v1660_v13 }
  0x2e   : > { %1564 = vmatmul.mubr.bf16.gmra.mrb[4].mxu0 %v1661_v14  ;;  %1596 = vmatmul.mubr.bf16.gmra.mrb[4].mxu1 %v1662_v15 }
  0x2f   : > { %1567 = vmatprep.mubr.bf16.mxu0 %v1663_v16  ;;  %1599 = vmatprep.mubr.bf16.mxu1 %v1664_v17 }
  0x36   : > { %1568 = vmatmul.mubr.bf16.gmra.mrb[8].mxu0 %v1665_v18  ;;  %1600 = vmatmul.mubr.bf16.gmra.mrb[8].mxu1 %v1666_v19 }
  0x37   : > { %1571 = vmatprep.mubr.bf16.mxu0 %v1667_v20  ;;  %1603 = vmatprep.mubr.bf16.mxu1 %v1668_v21 }
  0x3e   : > { %1572 = vmatmul.mubr.bf16.gmra.mrb[12].mxu0 %v1669_v22  ;;  %1604 = vmatmul.mubr.bf16.gmra.mrb[12].mxu1 %v1670_v23 }
  0x3f   : > { %1575 = vmatprep.mubr.bf16.mxu0 %v1671_v24  ;;  %1607 = vmatprep.mubr.bf16.mxu1 %v1672_v25 }
  0x46   : > { %1576 = vmatmul.mubr.bf16.gmra.mrb[16].mxu0 %v1673_v26  ;;  %1608 = vmatmul.mubr.bf16.gmra.mrb[16].mxu1 %v1674_v27 }
  0x47   : > { %1579 = vmatprep.mubr.bf16.mxu0 %v1675_v28  ;;  %1611 = vmatprep.mubr.bf16.mxu1 %v1676_v29 }
  0x4e   : > { %1580 = vmatmul.mubr.bf16.gmra.mrb[20].mxu0 %v1677_v30  ;;  %1612 = vmatmul.mubr.bf16.gmra.mrb[20].mxu1 %v1678_v31 }
  0x4f   : > { %1583 = vmatprep.mubr.bf16.mxu0 %v1679_v32  ;;  %1615 = vmatprep.mubr.bf16.mxu1 %v1680_v33 }
  0x56   : > { %1584 = vmatmul.mubr.bf16.gmra.mrb[24].mxu0 %v1681_v34  ;;  %1616 = vmatmul.mubr.bf16.gmra.mrb[24].mxu1 %v1682_v35 }
  0x57   : > { %1587 = vmatprep.mubr.bf16.mxu0 %v1683_v36  ;;  %1619 = vmatprep.mubr.bf16.mxu1 %v1684_v37 }
  0x5e   : > { %1588 = vmatmul.mubr.bf16.gmra.mrb[28].mxu0 %v1685_v38  ;;  %1620 = vmatmul.mubr.bf16.gmra.mrb[28].mxu1 %v1686_v39 }
  0xf9   : > { %v1561_v40 = vpop.f32.mrb[0].mxu0  ;;  %v1593_v41 = vpop.f32.mrb[0].mxu1 }
  0xfa   : > { %v502_v42 = vpop.f32.mrb[1].mxu0  ;;  %v630_v43 = vpop.f32.mrb[1].mxu1 }
  0xfb   : > { %v1562_v44 = vpop.f32.mrb[2].mxu0  ;;  %v1594_v45 = vpop.f32.mrb[2].mxu1 }
  0xfc   : > { %v1320_v46 = vpack.c.bf16 %v1562_v44, %v1561_v40  ;;  %v1400_v47 = vpack.c.bf16 %v1594_v45, %v1593_v41  ;;  %v505_v48 = vpop.f32.mrb[3].mxu0  ;;  %v633_v49 = vpop.f32.mrb[3].mxu1 }
  0xfd   : > { %v1315_v50 = vpack.c.bf16 %v505_v48, %v502_v42  ;;  %v1395_v51 = vpack.c.bf16 %v633_v49, %v630_v43 }
  0xfe   : > { %1472 = vst [vmem:[%s1789_s6 + $0x8] sm:$0xff] %v1320_v46   ;;  %1488 = vst [vmem:[%s1789_s6 + $0x88] sm:$0xff] %v1400_v47  }
  0xff   : > { %1316 = vst [vmem:[%s1789_s6] sm:$0xff] %v1315_v50   ;;  %1487 = vst [vmem:[%s1789_s6 + $0x80] sm:$0xff] %v1395_v51  }
 0x101   : > { %v1565_v52 = vpop.f32.mrb[4].mxu0  ;;  %v1597_v53 = vpop.f32.mrb[4].mxu1 }
 0x102   : > { %v518_v54 = vpop.f32.mrb[5].mxu0  ;;  %v646_v55 = vpop.f32.mrb[5].mxu1 }
 0x103   : > { %v1566_v56 = vpop.f32.mrb[6].mxu0  ;;  %v1598_v57 = vpop.f32.mrb[6].mxu1 }
 0x104   : > { %v1330_v58 = vpack.c.bf16 %v1566_v56, %v1565_v52  ;;  %v1410_v59 = vpack.c.bf16 %v1598_v57, %v1597_v53  ;;  %v521_v60 = vpop.f32.mrb[7].mxu0  ;;  %v649_v61 = vpop.f32.mrb[7].mxu1 }
 0x105   : > { %v1325_v62 = vpack.c.bf16 %v521_v60, %v518_v54  ;;  %v1405_v63 = vpack.c.bf16 %v649_v61, %v646_v55 }
 0x106   : > { %1474 = vst [vmem:[%s1789_s6 + $0x18] sm:$0xff] %v1330_v58   ;;  %1490 = vst [vmem:[%s1789_s6 + $0x98] sm:$0xff] %v1410_v59  }
 0x107   : > { %1473 = vst [vmem:[%s1789_s6 + $0x10] sm:$0xff] %v1325_v62   ;;  %1489 = vst [vmem:[%s1789_s6 + $0x90] sm:$0xff] %v1405_v63  }
 0x109   : > { %v1569_v0 = vpop.f32.mrb[8].mxu0  ;;  %v1601_v1 = vpop.f32.mrb[8].mxu1 }
 0x10a   : > { %v534_v2 = vpop.f32.mrb[9].mxu0  ;;  %v662_v3 = vpop.f32.mrb[9].mxu1 }
 0x10b   : > { %v1570_v4 = vpop.f32.mrb[10].mxu0  ;;  %v1602_v5 = vpop.f32.mrb[10].mxu1 }
 0x10c   : > { %v1340_v6 = vpack.c.bf16 %v1570_v4, %v1569_v0  ;;  %v1420_v7 = vpack.c.bf16 %v1602_v5, %v1601_v1  ;;  %v537_v8 = vpop.f32.mrb[11].mxu0  ;;  %v665_v9 = vpop.f32.mrb[11].mxu1 }
 0x10d   : > { %v1335_v10 = vpack.c.bf16 %v537_v8, %v534_v2  ;;  %v1415_v11 = vpack.c.bf16 %v665_v9, %v662_v3 }
 0x10e   : > { %1476 = vst [vmem:[%s1789_s6 + $0x28] sm:$0xff] %v1340_v6   ;;  %1492 = vst [vmem:[%s1789_s6 + $0xa8] sm:$0xff] %v1420_v7  }
 0x10f   : > { %1475 = vst [vmem:[%s1789_s6 + $0x20] sm:$0xff] %v1335_v10   ;;  %1491 = vst [vmem:[%s1789_s6 + $0xa0] sm:$0xff] %v1415_v11  }
 0x111   : > { %v1573_v12 = vpop.f32.mrb[12].mxu0  ;;  %v1605_v13 = vpop.f32.mrb[12].mxu1 }
 0x112   : > { %v550_v14 = vpop.f32.mrb[13].mxu0  ;;  %v678_v15 = vpop.f32.mrb[13].mxu1 }
 0x113   : > { %v1574_v16 = vpop.f32.mrb[14].mxu0  ;;  %v1606_v17 = vpop.f32.mrb[14].mxu1 }
 0x114   : > { %v1350_v18 = vpack.c.bf16 %v1574_v16, %v1573_v12  ;;  %v1430_v19 = vpack.c.bf16 %v1606_v17, %v1605_v13  ;;  %v553_v20 = vpop.f32.mrb[15].mxu0  ;;  %v681_v21 = vpop.f32.mrb[15].mxu1 }
 0x115   : > { %v1345_v22 = vpack.c.bf16 %v553_v20, %v550_v14  ;;  %v1425_v23 = vpack.c.bf16 %v681_v21, %v678_v15 }
 0x116   : > { %1478 = vst [vmem:[%s1789_s6 + $0x38] sm:$0xff] %v1350_v18   ;;  %1494 = vst [vmem:[%s1789_s6 + $0xb8] sm:$0xff] %v1430_v19  }
 0x117   : > { %1477 = vst [vmem:[%s1789_s6 + $0x30] sm:$0xff] %v1345_v22   ;;  %1493 = vst [vmem:[%s1789_s6 + $0xb0] sm:$0xff] %v1425_v23  }
 0x119   : > { %v1577_v24 = vpop.f32.mrb[16].mxu0  ;;  %v1609_v25 = vpop.f32.mrb[16].mxu1 }
 0x11a   : > { %v566_v26 = vpop.f32.mrb[17].mxu0  ;;  %v694_v27 = vpop.f32.mrb[17].mxu1 }
 0x11b   : > { %v1578_v28 = vpop.f32.mrb[18].mxu0  ;;  %v1610_v29 = vpop.f32.mrb[18].mxu1 }
 0x11c   : > { %v1360_v30 = vpack.c.bf16 %v1578_v28, %v1577_v24  ;;  %v1440_v31 = vpack.c.bf16 %v1610_v29, %v1609_v25  ;;  %v569_v32 = vpop.f32.mrb[19].mxu0  ;;  %v697_v33 = vpop.f32.mrb[19].mxu1 }
 0x11d   : > { %v1355_v34 = vpack.c.bf16 %v569_v32, %v566_v26  ;;  %v1435_v35 = vpack.c.bf16 %v697_v33, %v694_v27 }
 0x11e   : > { %1480 = vst [vmem:[%s1789_s6 + $0x48] sm:$0xff] %v1360_v30   ;;  %1496 = vst [vmem:[%s1789_s6 + $0xc8] sm:$0xff] %v1440_v31  }
 0x11f   : > { %1479 = vst [vmem:[%s1789_s6 + $0x40] sm:$0xff] %v1355_v34   ;;  %1495 = vst [vmem:[%s1789_s6 + $0xc0] sm:$0xff] %v1435_v35  }
 0x121   : > { %v1581_v36 = vpop.f32.mrb[20].mxu0  ;;  %v1613_v37 = vpop.f32.mrb[20].mxu1 }
 0x122   : > { %v582_v38 = vpop.f32.mrb[21].mxu0  ;;  %v710_v39 = vpop.f32.mrb[21].mxu1 }
 0x123   : > { %v1582_v40 = vpop.f32.mrb[22].mxu0  ;;  %v1614_v41 = vpop.f32.mrb[22].mxu1 }
 0x124   : > { %v1370_v42 = vpack.c.bf16 %v1582_v40, %v1581_v36  ;;  %v1450_v43 = vpack.c.bf16 %v1614_v41, %v1613_v37  ;;  %v585_v44 = vpop.f32.mrb[23].mxu0  ;;  %v713_v45 = vpop.f32.mrb[23].mxu1 }
 0x125   : > { %v1365_v46 = vpack.c.bf16 %v585_v44, %v582_v38  ;;  %v1445_v47 = vpack.c.bf16 %v713_v45, %v710_v39 }
 0x126   : > { %1482 = vst [vmem:[%s1789_s6 + $0x58] sm:$0xff] %v1370_v42   ;;  %1498 = vst [vmem:[%s1789_s6 + $0xd8] sm:$0xff] %v1450_v43  }
 0x127   : > { %1481 = vst [vmem:[%s1789_s6 + $0x50] sm:$0xff] %v1365_v46   ;;  %1497 = vst [vmem:[%s1789_s6 + $0xd0] sm:$0xff] %v1445_v47  }
 0x129   : > { %v1585_v48 = vpop.f32.mrb[24].mxu0  ;;  %v1617_v49 = vpop.f32.mrb[24].mxu1 }
 0x12a   : > { %v598_v50 = vpop.f32.mrb[25].mxu0  ;;  %v726_v51 = vpop.f32.mrb[25].mxu1 }
 0x12b   : > { %v1586_v52 = vpop.f32.mrb[26].mxu0  ;;  %v1618_v53 = vpop.f32.mrb[26].mxu1 }
 0x12c   : > { %v1380_v54 = vpack.c.bf16 %v1586_v52, %v1585_v48  ;;  %v1460_v55 = vpack.c.bf16 %v1618_v53, %v1617_v49  ;;  %v601_v56 = vpop.f32.mrb[27].mxu0  ;;  %v729_v57 = vpop.f32.mrb[27].mxu1 }
 0x12d   : > { %v1375_v58 = vpack.c.bf16 %v601_v56, %v598_v50  ;;  %v1455_v59 = vpack.c.bf16 %v729_v57, %v726_v51 }
 0x12e   : > { %1484 = vst [vmem:[%s1789_s6 + $0x68] sm:$0xff] %v1380_v54   ;;  %1500 = vst [vmem:[%s1789_s6 + $0xe8] sm:$0xff] %v1460_v55  }
 0x12f   : > { %1483 = vst [vmem:[%s1789_s6 + $0x60] sm:$0xff] %v1375_v58   ;;  %1499 = vst [vmem:[%s1789_s6 + $0xe0] sm:$0xff] %v1455_v59  }
 0x131   : > { %v1589_v60 = vpop.f32.mrb[28].mxu0  ;;  %v1621_v61 = vpop.f32.mrb[28].mxu1 }
 0x132   : > { %v614_v62 = vpop.f32.mrb[29].mxu0  ;;  %v742_v63 = vpop.f32.mrb[29].mxu1 }
 0x133   : > { %v1590_v0 = vpop.f32.mrb[30].mxu0  ;;  %v1622_v1 = vpop.f32.mrb[30].mxu1 }
 0x134   : > { %v1390_v2 = vpack.c.bf16 %v1590_v0, %v1589_v60  ;;  %v1470_v3 = vpack.c.bf16 %v1622_v1, %v1621_v61  ;;  %v617_v4 = vpop.f32.mrb[31].mxu0  ;;  %v745_v5 = vpop.f32.mrb[31].mxu1 }
 0x135   : > { %v1385_v6 = vpack.c.bf16 %v617_v4, %v614_v62  ;;  %v1465_v7 = vpack.c.bf16 %v745_v5, %v742_v63 }
 0x136   : > { %1486 = vst [vmem:[%s1789_s6 + $0x78] sm:$0xff] %v1390_v2   ;;  %1502 = vst [vmem:[%s1789_s6 + $0xf8] sm:$0xff] %v1470_v3  }
 0x137   : > { %1485 = vst [vmem:[%s1789_s6 + $0x70] sm:$0xff] %v1385_v6   ;;  %1501 = vst [vmem:[%s1789_s6 + $0xf0] sm:$0xff] %v1465_v7  }
 0x138 PF: > { %s12_s9 = sadd.s32 1, %s1693_s9  }
 0x139   : > { %p9_p4 = scmp.ge.s32.totalorder %s12_s9, 4  }
 0x13b   :  { %11 = sbr.rel (!%p9_p4) target bundleno = 1 (0x1), region = 58 }

// kernel: gcn_deep_forward.9
= control target key start
LH: loop header
LB: loop body
LE: loop exit
PB: predicated region body
PF: predicated region fallthrough
CT: control target
= control target key end

     0   :  { %s4969_s12 = smov 0   ;;  %s5621_s0 = inlined_call_operand.vmem [shape: bf16[1024,1024], index: 0, kind: input, shape index: {}]   ;;  %s5622_s1 = inlined_call_operand.vmem [shape: bf16[1024,128], index: 1, kind: input, shape index: {}]   ;;  %s5623_s2 = inlined_call_operand.vmem [shape: f32[1,128], index: 2, kind: input, shape index: {}]   ;;  %s5624_s3 = inlined_call_operand.vmem [shape: bf16[1024,128], index: 3, kind: output, shape index: {}]  }
   0x1 LB: > { %s3829_s13 = sadd.s32 4294967295, %s4946_s12   ;;  %p3833_p0 = scmp.ge.s32.totalorder %s4946_s12, 1  ;;  %s4946_s12 = sphi %s4969_s12, %s13_s12  }
   0x2   : > { %p139_p1 = scmp.lt.s32.totalorder %s4946_s12, 3 }
   0x4   : > { %p140_p2 = pnand %p3833_p0, %p139_p1 }
   0x5   : > { %v4875_v0 = vld [vmem:[%s5622_s1] sm:$0xff] (!%p140_p2)   ;;  %v4948_v1 = vmov (!%p140_p2), 0   ;;  %v4877_v3 = vld [vmem:[%s5622_s1 + $0x8] sm:$0xff] (!%p140_p2)   ;;  %v4879_v5 = vld [vmem:[%s5622_s1 + $0x10] sm:$0xff] (!%p140_p2)   ;;  %s3834_s7 = sshll.u32 (!%p140_p2), %s3829_s13, 6 }
   0x6   : > { %143 = sbr.rel (%p140_p2) target bundleno = 797 (0x31d), region = 32  ;;  %2233 = vmatprep.subr.bf16.mxu1 (!%p140_p2), %v4948_v1  ;;  %2811 = vmatprep.subr.bf16.mxu0 (!%p140_p2), %v4948_v1  ;;  %v4876_v2 = vld [vmem:[%s5622_s1 + $0x100] sm:$0xff] (!%p140_p2)   ;;  %v4878_v4 = vld [vmem:[%s5622_s1 + $0x108] sm:$0xff] (!%p140_p2)   ;;  %v4880_v6 = vld [vmem:[%s5622_s1 + $0x110] sm:$0xff] (!%p140_p2)   ;;  %p165_p3 = scmp.lt.s32.totalorder (!%p140_p2), %s3834_s7, 127 }
   0x7   : > { %2234 = vmatpush1.bf16.msra.mxu1 (!%p140_p2), %v4875_v0  ;;  %2812 = vmatpush1.bf16.msra.mxu0 (!%p140_p2), %v4876_v2  ;;  %v4881_v7 = vld [vmem:[%s5622_s1 + $0x18] sm:$0xff] (!%p140_p2)   ;;  %v4883_v9 = vld [vmem:[%s5622_s1 + $0x20] sm:$0xff] (!%p140_p2)   ;;  %v4885_v11 = vld [vmem:[%s5622_s1 + $0x28] sm:$0xff] (!%p140_p2)  }
   0x8   : > { %2235 = vmatprep.subr.bf16.mxu1 (!%p140_p2), %v4948_v1  ;;  %2813 = vmatprep.subr.bf16.mxu0 (!%p140_p2), %v4948_v1  ;;  %v4882_v8 = vld [vmem:[%s5622_s1 + $0x118] sm:$0xff] (!%p140_p2)   ;;  %v4884_v10 = vld [vmem:[%s5622_s1 + $0x120] sm:$0xff] (!%p140_p2)   ;;  %v4886_v12 = vld [vmem:[%s5622_s1 + $0x128] sm:$0xff] (!%p140_p2)  }
   0x9   : > { %v4887_v13 = vld [vmem:[%s5622_s1 + $0x30] sm:$0xff] (!%p140_p2)   ;;  %v4889_v15 = vld [vmem:[%s5622_s1 + $0x38] sm:$0xff] (!%p140_p2)   ;;  %v4891_v17 = vld [vmem:[%s5622_s1 + $0x40] sm:$0xff] (!%p140_p2)  }
   0xa   : > { %v4888_v14 = vld [vmem:[%s5622_s1 + $0x130] sm:$0xff] (!%p140_p2)   ;;  %v4890_v16 = vld [vmem:[%s5622_s1 + $0x138] sm:$0xff] (!%p140_p2)   ;;  %v4892_v18 = vld [vmem:[%s5622_s1 + $0x140] sm:$0xff] (!%p140_p2)  }
   0xb   : > { %2236 = vmatpush1.bf16.msra.mxu1 (!%p140_p2), %v4877_v3  ;;  %2814 = vmatpush1.bf16.msra.mxu0 (!%p140_p2), %v4878_v4  ;;  %v4893_v24 = vld [vmem:[%s5622_s1 + $0x48] sm:$0xff] (!%p140_p2)   ;;  %v4895_v27 = vld [vmem:[%s5622_s1 + $0x50] sm:$0xff] (!%p140_p2)   ;;  %v4897_v29 = vld [vmem:[%s5622_s1 + $0x58] sm:$0xff] (!%p140_p2)  }
   0xc   : > { %2237 = vmatprep.subr.bf16.mxu1 (!%p140_p2), %v4948_v1  ;;  %2815 = vmatprep.subr.bf16.mxu0 (!%p140_p2), %v4948_v1  ;;  %v4894_v26 = vld [vmem:[%s5622_s1 + $0x148] sm:$0xff] (!%p140_p2)   ;;  %v4896_v28 = vld [vmem:[%s5622_s1 + $0x150] sm:$0xff] (!%p140_p2)   ;;  %v4898_v30 = vld [vmem:[%s5622_s1 + $0x158] sm:$0xff] (!%p140_p2)  }
   0xd   : > { %s5626_s7 = smov (!%p165_p3, %s3834_s7), 127  ;;  %v4899_v31 = vld [vmem:[%s5622_s1 + $0x60] sm:$0xff]   ;;  %v4901_v33 = vld [vmem:[%s5622_s1 + $0x68] sm:$0xff]   ;;  %v4903_v35 = vld [vmem:[%s5622_s1 + $0x70] sm:$0xff]  }
   0xe   : > { %s4226_s19 = sshll.u32 %s5626_s7, 5  ;;  %v4900_v32 = vld [vmem:[%s5622_s1 + $0x160] sm:$0xff]   ;;  %v4902_v34 = vld [vmem:[%s5622_s1 + $0x168] sm:$0xff]   ;;  %v4904_v36 = vld [vmem:[%s5622_s1 + $0x170] sm:$0xff]   ;;  %s3838_s27 = sshll.u32 %s5626_s7, 2 }
   0xf   : > { %2238 = vmatpush1.bf16.msra.mxu1 %v4879_v5  ;;  %2816 = vmatpush1.bf16.msra.mxu0 %v4880_v6  ;;  %s5049_s24 = scalar_lea.vmem %s5621_s0, %s4226_s19  ;;  %v4905_v37 = vld [vmem:[%s5622_s1 + $0x78] sm:$0xff]   ;;  %v4907_v45 = vld [vmem:[%s5622_s1 + $0x80] sm:$0xff]   ;;  %v4909_v51 = vld [vmem:[%s5622_s1 + $0x88] sm:$0xff]   ;;  %s5516_s30 = scalar_lea.vmem %s5624_s3, %s3838_s27 }
  0x10   : > { %2239 = vmatprep.subr.bf16.mxu1 %v4948_v1  ;;  %2817 = vmatprep.subr.bf16.mxu0 %v4948_v1  ;;  %v5060_v19 = vld [vmem:[%s5049_s24] sm:$0xff]  ;;  %v5066_v21 = vld [vmem:[%s5049_s24 + $0x10] sm:$0xff]  ;;  %v4906_v38 = vld [vmem:[%s5622_s1 + $0x178] sm:$0xff]  }
  0x11   : > { %v5063_v20 = vld [vmem:[%s5049_s24 + $0x20] sm:$0xff]  ;;  %v5071_v23 = vld [vmem:[%s5049_s24 + $0x30] sm:$0xff]  ;;  %v4910_v52 = vld [vmem:[%s5622_s1 + $0x188] sm:$0xff]  }
  0x12   : > { %v3841_v22 = vcombine.high %v5060_v19, %v5063_v20  ;;  %v3845_v25 = vcombine.high %v5066_v21, %v5071_v23  ;;  %v186_v39 = vld [vmem:[%s5049_s24 + $0x40] sm:$0xff]  ;;  %v188_v41 = vld [vmem:[%s5049_s24 + $0x50] sm:$0xff]  ;;  %v3840_v42 = vcombine.low %v5060_v19, %v5063_v20  ;;  %v3844_v44 = vcombine.low %v5066_v21, %v5071_v23  ;;  %v4913_v2 = vld [vmem:[%s5622_s1 + $0x98] sm:$0xff]  }
  0x13   : > { %2240 = vmatpush1.bf16.msra.mxu1 %v4881_v7  ;;  %2818 = vmatpush1.bf16.msra.mxu0 %v4882_v8  ;;  %v190_v40 = vld [vmem:[%s5049_s24 + $0x60] sm:$0xff]  ;;  %v192_v43 = vld [vmem:[%s5049_s24 + $0x70] sm:$0xff]  ;;  %v4914_v3 = vld [vmem:[%s5622_s1 + $0x198] sm:$0xff]  }
  0x14   : > { %2241 = vmatprep.subr.bf16.mxu1 %v4948_v1  ;;  %2819 = vmatprep.subr.bf16.mxu0 %v4948_v1  ;;  %v4908_v46 = vld [vmem:[%s5622_s1 + $0x180] sm:$0xff]   ;;  %v3849_v47 = vcombine.high %v186_v39, %v190_v40  ;;  %v3853_v48 = vcombine.high %v188_v41, %v192_v43  ;;  %v196_v53 = vld [vmem:[%s5049_s24 + $0x90] sm:$0xff]  ;;  %v3848_v55 = vcombine.low %v186_v39, %v190_v40  ;;  %v4926_v39 = vld [vmem:[%s5622_s1 + $0x1c8] sm:$0xff]  }
  0x15   : > { %2265 = vmatprep.mubr.bf16.mxu1 %v3841_v22  ;;  %2843 = vmatprep.mubr.bf16.mxu0 %v3845_v25  ;;  %v194_v49 = vld [vmem:[%s5049_s24 + $0x80] sm:$0xff]  ;;  %v200_v54 = vld [vmem:[%s5049_s24 + $0xb0] sm:$0xff]  ;;  %v3852_v56 = vcombine.low %v188_v41, %v192_v43 }
  0x16   : > { %v198_v50 = vld [vmem:[%s5049_s24 + $0xa0] sm:$0xff]  ;;  %v3861_v58 = vcombine.high %v196_v53, %v200_v54  ;;  %v4911_v59 = vld [vmem:[%s5622_s1 + $0x90] sm:$0xff]   ;;  %v3860_v6 = vcombine.low %v196_v53, %v200_v54  ;;  %v4929_v54 = vld [vmem:[%s5622_s1 + $0xd8] sm:$0xff]  }
  0x17   : > { %2242 = vmatpush1.bf16.msra.mxu1 %v4883_v9  ;;  %2820 = vmatpush1.bf16.msra.mxu0 %v4884_v10  ;;  %v3857_v57 = vcombine.high %v194_v49, %v198_v50  ;;  %v4912_v60 = vld [vmem:[%s5622_s1 + $0x190] sm:$0xff]   ;;  %v202_v61 = vld [vmem:[%s5049_s24 + $0xc0] sm:$0xff]  ;;  %v3856_v4 = vcombine.low %v194_v49, %v198_v50 }
  0x18   : > { %2243 = vmatprep.subr.bf16.mxu1 %v4948_v1  ;;  %2821 = vmatprep.subr.bf16.mxu0 %v4948_v1  ;;  %v206_v62 = vld [vmem:[%s5049_s24 + $0xe0] sm:$0xff]  ;;  %v204_v63 = vld [vmem:[%s5049_s24 + $0xd0] sm:$0xff] }
  0x19   : > { %v208_v0 = vld [vmem:[%s5049_s24 + $0xf0] sm:$0xff]  ;;  %v4915_v5 = vld [vmem:[%s5622_s1 + $0xa0] sm:$0xff]   ;;  %v3865_v7 = vcombine.high %v202_v61, %v206_v62 }
  0x1a   : > { %v4916_v8 = vld [vmem:[%s5622_s1 + $0x1a0] sm:$0xff]   ;;  %v3869_v9 = vcombine.high %v204_v63, %v208_v0  ;;  %v4919_v20 = vld [vmem:[%s5622_s1 + $0xb0] sm:$0xff]  }
  0x1b   : > { %2244 = vmatpush1.bf16.msra.mxu1 %v4885_v11  ;;  %2822 = vmatpush1.bf16.msra.mxu0 %v4886_v12  ;;  %v210_v10 = vld [vmem:[%s5049_s24 + $0x100] sm:$0xff]  ;;  %v212_v12 = vld [vmem:[%s5049_s24 + $0x110] sm:$0xff] }
  0x1c   : > { %2245 = vmatprep.subr.bf16.mxu1 %v4948_v1  ;;  %2823 = vmatprep.subr.bf16.mxu0 %v4948_v1  ;;  %v214_v11 = vld [vmem:[%s5049_s24 + $0x120] sm:$0xff]  ;;  %v4920_v21 = vld [vmem:[%s5622_s1 + $0x1b0] sm:$0xff]  }
  0x1d   : > { %v218_v22 = vld [vmem:[%s5049_s24 + $0x140] sm:$0xff]  ;;  %v220_v25 = vld [vmem:[%s5049_s24 + $0x150] sm:$0xff] }
  0x1e   : > { %v222_v23 = vld [vmem:[%s5049_s24 + $0x160] sm:$0xff]  ;;  %v240_v49 = vld [vmem:[%s5049_s24 + $0x1f0] sm:$0xff] }
  0x1f   : > { %2246 = vmatpush1.bf16.msra.mxu1 %v4887_v13  ;;  %2824 = vmatpush1.bf16.msra.mxu0 %v4888_v14  ;;  %v216_v13 = vld [vmem:[%s5049_s24 + $0x130] sm:$0xff]  ;;  %v4917_v14 = vld [vmem:[%s5622_s1 + $0xa8] sm:$0xff]   ;;  %v3880_v40 = vcombine.low %v218_v22, %v222_v23 }
  0x20   : > { %2247 = vmatprep.subr.bf16.mxu1 %v4948_v1  ;;  %2825 = vmatprep.subr.bf16.mxu0 %v4948_v1  ;;  %v3877_v19 = vcombine.high %v212_v12, %v216_v13 }
  0x23   : > { %2248 = vmatpush1.bf16.msra.mxu1 %v4889_v15  ;;  %2826 = vmatpush1.bf16.msra.mxu0 %v4890_v16  ;;  %v4918_v15 = vld [vmem:[%s5622_s1 + $0x1a8] sm:$0xff]   ;;  %v3864_v16 = vcombine.low %v202_v61, %v206_v62 }
  0x24   : > { %2249 = vmatprep.subr.bf16.mxu1 %v4948_v1  ;;  %2827 = vmatprep.subr.bf16.mxu0 %v4948_v1 }
  0x27   : > { %2250 = vmatpush1.bf16.msra.mxu1 %v4891_v17  ;;  %2828 = vmatpush1.bf16.msra.mxu0 %v4892_v18  ;;  %v3868_v17 = vcombine.low %v204_v63, %v208_v0  ;;  %v3873_v18 = vcombine.high %v210_v10, %v214_v11  ;;  %v250_v0 = vld [vmem:[%s5049_s24 + $0x240] sm:$0xff] }
  0x28   : > { %2251 = vmatprep.subr.bf16.mxu1 %v4948_v1  ;;  %2829 = vmatprep.subr.bf16.mxu0 %v4948_v1 }
  0x2b   : > { %2252 = vmatpush1.bf16.msra.mxu1 %v4893_v24  ;;  %2830 = vmatpush1.bf16.msra.mxu0 %v4894_v26  ;;  %v4921_v24 = vld [vmem:[%s5622_s1 + $0xb8] sm:$0xff]   ;;  %v224_v26 = vld [vmem:[%s5049_s24 + $0x170] sm:$0xff] }
  0x2c   : > { %2253 = vmatprep.subr.bf16.mxu1 %v4948_v1  ;;  %2831 = vmatprep.subr.bf16.mxu0 %v4948_v1  ;;  %v3884_v41 = vcombine.low %v220_v25, %v224_v26 }
  0x2f   : > { %2254 = vmatpush1.bf16.msra.mxu1 %v4895_v27  ;;  %2832 = vmatpush1.bf16.msra.mxu0 %v4896_v28  ;;  %v4922_v27 = vld [vmem:[%s5622_s1 + $0x1b8] sm:$0xff]   ;;  %v3872_v28 = vcombine.low %v210_v10, %v214_v11  ;;  %v4932_v10 = vld [vmem:[%s5622_s1 + $0x1e0] sm:$0xff]  }
  0x30   : > { %2255 = vmatprep.subr.bf16.mxu1 %v4948_v1  ;;  %2833 = vmatprep.subr.bf16.mxu0 %v4948_v1  ;;  %v258_v11 = vld [vmem:[%s5049_s24 + $0x280] sm:$0xff] }
  0x33   : > { %2256 = vmatpush1.bf16.msra.mxu1 %v4897_v29  ;;  %2834 = vmatpush1.bf16.msra.mxu0 %v4898_v30  ;;  %v3876_v29 = vcombine.low %v212_v12, %v216_v13  ;;  %v3881_v30 = vcombine.high %v218_v22, %v222_v23  ;;  %v262_v12 = vld [vmem:[%s5049_s24 + $0x2a0] sm:$0xff]  ;;  %v260_v13 = vld [vmem:[%s5049_s24 + $0x290] sm:$0xff] }
  0x34   : > { %2257 = vmatprep.subr.bf16.mxu1 %v4948_v1  ;;  %2835 = vmatprep.subr.bf16.mxu0 %v4948_v1  ;;  %v272_v22 = vld [vmem:[%s5049_s24 + $0x2f0] sm:$0xff]  ;;  %v3920_v23 = vcombine.low %v258_v11, %v262_v12 }
  0x37   : > { %2258 = vmatpush1.bf16.msra.mxu1 %v4899_v31  ;;  %2836 = vmatpush1.bf16.msra.mxu0 %v4900_v32  ;;  %v3885_v31 = vcombine.high %v220_v25, %v224_v26  ;;  %v4923_v32 = vld [vmem:[%s5622_s1 + $0xc0] sm:$0xff]  }
  0x38   : > { %2259 = vmatprep.subr.bf16.mxu1 %v4948_v1  ;;  %2837 = vmatprep.subr.bf16.mxu0 %v4948_v1 }
  0x3b   : > { %2260 = vmatpush1.bf16.msra.mxu1 %v4901_v33  ;;  %2838 = vmatpush1.bf16.msra.mxu0 %v4902_v34  ;;  %v4924_v33 = vld [vmem:[%s5622_s1 + $0x1c0] sm:$0xff]  }
  0x3c   : > { %2261 = vmatprep.subr.bf16.mxu1 %v4948_v1  ;;  %2839 = vmatprep.subr.bf16.mxu0 %v4948_v1  ;;  %v226_v34 = vld [vmem:[%s5049_s24 + $0x180] sm:$0xff] }
  0x3f   : > { %2262 = vmatpush1.bf16.msra.mxu1 %v4903_v35  ;;  %2840 = vmatpush1.bf16.msra.mxu0 %v4904_v36  ;;  %v230_v35 = vld [vmem:[%s5049_s24 + $0x1a0] sm:$0xff]  ;;  %v4925_v36 = vld [vmem:[%s5622_s1 + $0xc8] sm:$0xff]  }
  0x40   : > { %2263 = vmatprep.subr.bf16.mxu1 %v4948_v1  ;;  %2841 = vmatprep.subr.bf16.mxu0 %v4948_v1  ;;  %v3888_v50 = vcombine.low %v226_v34, %v230_v35 }
  0x43   : > { %2264 = vmatpush1.bf16.msra.mxu1 %v4905_v37  ;;  %2842 = vmatpush1.bf16.msra.mxu0 %v4906_v38  ;;  %v228_v37 = vld [vmem:[%s5049_s24 + $0x190] sm:$0xff] }
  0x44   : > { %2522 = vmatprep.subr.bf16.mxu1 %v4948_v1  ;;  %3100 = vmatprep.subr.bf16.mxu0 %v4948_v1  ;;  %v232_v38 = vld [vmem:[%s5049_s24 + $0x1b0] sm:$0xff] }
  0x45   : > { %v3893_v43 = vcombine.high %v228_v37, %v232_v38 }
  0x46   : > { %2266 = vmatmul.mubr.bf16.vlgmr.msra.gmra.mrb[0].mxu1 %v3840_v42  ;;  %2844 = vmatmul.mubr.bf16.vlgmr.msra.gmra.mrb[0].mxu0 %v3844_v44  ;;  %v3889_v42 = vcombine.high %v226_v34, %v230_v35  ;;  %v4927_v44 = vld [vmem:[%s5622_s1 + $0xd0] sm:$0xff]  }
  0x47   : > { %2523 = vmatpush1.bf16.msra.mxu1 %v4907_v45  ;;  %3101 = vmatpush1.bf16.msra.mxu0 %v4908_v46  ;;  %v4928_v45 = vld [vmem:[%s5622_s1 + $0x1d0] sm:$0xff]   ;;  %v234_v46 = vld [vmem:[%s5049_s24 + $0x1c0] sm:$0xff] }
  0x48   : > { %2273 = vmatprep.mubr.bf16.mxu1 %v3849_v47  ;;  %2851 = vmatprep.mubr.bf16.mxu0 %v3853_v48  ;;  %v238_v47 = vld [vmem:[%s5049_s24 + $0x1e0] sm:$0xff]  ;;  %v236_v48 = vld [vmem:[%s5049_s24 + $0x1d0] sm:$0xff] }
  0x49   : > { %2524 = vmatprep.subr.bf16.mxu1 %v4948_v1  ;;  %3102 = vmatprep.subr.bf16.mxu0 %v4948_v1  ;;  %v3901_v53 = vcombine.high %v236_v48, %v240_v49  ;;  %v3900_v61 = vcombine.low %v236_v48, %v240_v49  ;;  %v294_v48 = vld [vmem:[%s5049_s24 + $0x3a0] sm:$0xff]  ;;  %v292_v49 = vld [vmem:[%s5049_s24 + $0x390] sm:$0xff] }
  0x4b   : > { %2525 = vmatpush1.bf16.msra.mxu1 %v4909_v51  ;;  %3103 = vmatpush1.bf16.msra.mxu0 %v4910_v52  ;;  %v3892_v51 = vcombine.low %v228_v37, %v232_v38  ;;  %v3897_v52 = vcombine.high %v234_v46, %v238_v47  ;;  %v282_v37 = vld [vmem:[%s5049_s24 + $0x340] sm:$0xff] }
  0x4c   : > { %2526 = vmatprep.subr.bf16.mxu1 %v4948_v1  ;;  %3104 = vmatprep.subr.bf16.mxu0 %v4948_v1  ;;  %v286_v38 = vld [vmem:[%s5049_s24 + $0x360] sm:$0xff] }
  0x4e   : > { %2274 = vmatmul.mubr.bf16.gmra.mrb[4].mxu1 %v3848_v55  ;;  %2852 = vmatmul.mubr.bf16.gmra.mrb[4].mxu0 %v3852_v56  ;;  %v4930_v55 = vld [vmem:[%s5622_s1 + $0x1d8] sm:$0xff]   ;;  %v242_v56 = vld [vmem:[%s5049_s24 + $0x200] sm:$0xff] }
  0x4f   : > { %2281 = vmatprep.mubr.bf16.mxu1 %v3857_v57  ;;  %2859 = vmatprep.mubr.bf16.mxu0 %v3861_v58  ;;  %v246_v57 = vld [vmem:[%s5049_s24 + $0x220] sm:$0xff]  ;;  %v244_v58 = vld [vmem:[%s5049_s24 + $0x210] sm:$0xff] }
  0x50   : > { %2527 = vmatpush1.bf16.msra.mxu1 %v4911_v59  ;;  %3105 = vmatpush1.bf16.msra.mxu0 %v4912_v60  ;;  %v248_v59 = vld [vmem:[%s5049_s24 + $0x230] sm:$0xff]  ;;  %v3896_v60 = vcombine.low %v234_v46, %v238_v47  ;;  %v3905_v62 = vcombine.high %v242_v56, %v246_v57  ;;  %v290_v47 = vld [vmem:[%s5049_s24 + $0x380] sm:$0xff] }
  0x51   : > { %2528 = vmatprep.subr.bf16.mxu1 %v4948_v1  ;;  %3106 = vmatprep.subr.bf16.mxu0 %v4948_v1  ;;  %v3909_v63 = vcombine.high %v244_v58, %v248_v59  ;;  %v4936_v46 = vld [vmem:[%s5622_s1 + $0x1f0] sm:$0xff]  }
  0x54   : > { %2529 = vmatpush1.bf16.msra.mxu1 %v4913_v2  ;;  %3107 = vmatpush1.bf16.msra.mxu0 %v4914_v3  ;;  %v254_v2 = vld [vmem:[%s5049_s24 + $0x260] sm:$0xff]  ;;  %v252_v3 = vld [vmem:[%s5049_s24 + $0x250] sm:$0xff] }
  0x55   : > { %2530 = vmatprep.subr.bf16.mxu1 %v4948_v1  ;;  %3108 = vmatprep.subr.bf16.mxu0 %v4948_v1 }
  0x56   : > { %2282 = vmatmul.mubr.bf16.gmra.mrb[8].mxu1 %v3856_v4  ;;  %2860 = vmatmul.mubr.bf16.gmra.mrb[8].mxu0 %v3860_v6  ;;  %v256_v4 = vld [vmem:[%s5049_s24 + $0x270] sm:$0xff]  ;;  %v3908_v6 = vcombine.low %v244_v58, %v248_v59  ;;  %v3952_v59 = vcombine.low %v290_v47, %v294_v48 }
  0x57   : > { %2289 = vmatprep.mubr.bf16.mxu1 %v3865_v7  ;;  %2867 = vmatprep.mubr.bf16.mxu0 %v3869_v9  ;;  %v3913_v7 = vcombine.high %v250_v0, %v254_v2  ;;  %v4931_v9 = vld [vmem:[%s5622_s1 + $0xe0] sm:$0xff]   ;;  %v304_v58 = vld [vmem:[%s5049_s24 + $0x3f0] sm:$0xff] }
  0x58   : > { %2531 = vmatpush1.bf16.msra.mxu1 %v4915_v5  ;;  %3109 = vmatpush1.bf16.msra.mxu0 %v4916_v8  ;;  %v3904_v5 = vcombine.low %v242_v56, %v246_v57  ;;  %v3917_v8 = vcombine.high %v252_v3, %v256_v4  ;;  %v302_v56 = vld [vmem:[%s5049_s24 + $0x3e0] sm:$0xff]  ;;  %v300_v57 = vld [vmem:[%s5049_s24 + $0x3d0] sm:$0xff] }
  0x59   : > { %2532 = vmatprep.subr.bf16.mxu1 %v4948_v1  ;;  %3110 = vmatprep.subr.bf16.mxu0 %v4948_v1 }
  0x5c   : > { %2533 = vmatpush1.bf16.msra.mxu1 %v4917_v14  ;;  %3111 = vmatpush1.bf16.msra.mxu0 %v4918_v15  ;;  %v264_v14 = vld [vmem:[%s5049_s24 + $0x2b0] sm:$0xff]  ;;  %v3912_v15 = vcombine.low %v250_v0, %v254_v2  ;;  %v306_v0 = vld [vmem:[%s5049_s24 + $0x400] sm:$0xff] }
  0x5d   : > { %2534 = vmatprep.subr.bf16.mxu1 %v4948_v1  ;;  %3112 = vmatprep.subr.bf16.mxu0 %v4948_v1  ;;  %v310_v2 = vld [vmem:[%s5049_s24 + $0x420] sm:$0xff] }
  0x5e   : > { %2290 = vmatmul.mubr.bf16.gmra.mrb[12].mxu1 %v3864_v16  ;;  %2868 = vmatmul.mubr.bf16.gmra.mrb[12].mxu0 %v3868_v17  ;;  %v3916_v16 = vcombine.low %v252_v3, %v256_v4  ;;  %v3921_v17 = vcombine.high %v258_v11, %v262_v12  ;;  %v308_v3 = vld [vmem:[%s5049_s24 + $0x410] sm:$0xff] }
  0x5f   : > { %2297 = vmatprep.mubr.bf16.mxu1 %v3873_v18  ;;  %2875 = vmatprep.mubr.bf16.mxu0 %v3877_v19  ;;  %v3925_v18 = vcombine.high %v260_v13, %v264_v14  ;;  %v266_v19 = vld [vmem:[%s5049_s24 + $0x2c0] sm:$0xff]  ;;  %v312_v4 = vld [vmem:[%s5049_s24 + $0x430] sm:$0xff] }
  0x60   : > { %2535 = vmatpush1.bf16.msra.mxu1 %v4919_v20  ;;  %3113 = vmatpush1.bf16.msra.mxu0 %v4920_v21  ;;  %v270_v20 = vld [vmem:[%s5049_s24 + $0x2e0] sm:$0xff]  ;;  %v268_v21 = vld [vmem:[%s5049_s24 + $0x2d0] sm:$0xff] }
  0x61   : > { %2536 = vmatprep.subr.bf16.mxu1 %v4948_v1  ;;  %3114 = vmatprep.subr.bf16.mxu0 %v4948_v1  ;;  %v3929_v25 = vcombine.high %v266_v19, %v270_v20  ;;  %v3933_v26 = vcombine.high %v268_v21, %v272_v22  ;;  %v3932_v34 = vcombine.low %v268_v21, %v272_v22  ;;  %v316_v11 = vld [vmem:[%s5049_s24 + $0x450] sm:$0xff] }
  0x62   : > { %v320_v12 = vld [vmem:[%s5049_s24 + $0x470] sm:$0xff] }
  0x63   : > { %v3980_v22 = vcombine.low %v316_v11, %v320_v12 }
  0x64   : > { %2537 = vmatpush1.bf16.msra.mxu1 %v4921_v24  ;;  %3115 = vmatpush1.bf16.msra.mxu0 %v4922_v27  ;;  %v3924_v24 = vcombine.low %v260_v13, %v264_v14  ;;  %v4933_v27 = vld [vmem:[%s5622_s1 + $0xe8] sm:$0xff]   ;;  %v3968_v13 = vcombine.low %v306_v0, %v310_v2  ;;  %v3972_v14 = vcombine.low %v308_v3, %v312_v4 }
  0x65   : > { %2538 = vmatprep.subr.bf16.mxu1 %v4948_v1  ;;  %3116 = vmatprep.subr.bf16.mxu0 %v4948_v1 }
  0x66   : > { %2298 = vmatmul.mubr.bf16.gmra.mrb[16].mxu1 %v3872_v28  ;;  %2876 = vmatmul.mubr.bf16.gmra.mrb[16].mxu0 %v3876_v29  ;;  %v4934_v28 = vld [vmem:[%s5622_s1 + $0x1e8] sm:$0xff]   ;;  %v274_v29 = vld [vmem:[%s5049_s24 + $0x300] sm:$0xff] }
  0x67   : > { %2305 = vmatprep.mubr.bf16.mxu1 %v3881_v30  ;;  %2883 = vmatprep.mubr.bf16.mxu0 %v3885_v31  ;;  %v278_v30 = vld [vmem:[%s5049_s24 + $0x320] sm:$0xff]  ;;  %v276_v31 = vld [vmem:[%s5049_s24 + $0x310] sm:$0xff] }
  0x68   : > { %2539 = vmatpush1.bf16.msra.mxu1 %v4923_v32  ;;  %3117 = vmatpush1.bf16.msra.mxu0 %v4924_v33  ;;  %v280_v32 = vld [vmem:[%s5049_s24 + $0x330] sm:$0xff]  ;;  %v3928_v33 = vcombine.low %v266_v19, %v270_v20  ;;  %v3937_v35 = vcombine.high %v274_v29, %v278_v30 }
  0x69   : > { %2540 = vmatprep.subr.bf16.mxu1 %v4948_v1  ;;  %3118 = vmatprep.subr.bf16.mxu0 %v4948_v1  ;;  %v324_v19 = vld [vmem:[%s5049_s24 + $0x490] sm:$0xff] }
  0x6a   : > { %v328_v20 = vld [vmem:[%s5049_s24 + $0x4b0] sm:$0xff] }
  0x6c   : > { %2541 = vmatpush1.bf16.msra.mxu1 %v4925_v36  ;;  %3119 = vmatpush1.bf16.msra.mxu0 %v4926_v39  ;;  %v3941_v36 = vcombine.high %v276_v31, %v280_v32  ;;  %v284_v39 = vld [vmem:[%s5049_s24 + $0x350] sm:$0xff] }
  0x6d   : > { %2542 = vmatprep.subr.bf16.mxu1 %v4948_v1  ;;  %3120 = vmatprep.subr.bf16.mxu0 %v4948_v1 }
  0x6e   : > { %2306 = vmatmul.mubr.bf16.gmra.mrb[20].mxu1 %v3880_v40  ;;  %2884 = vmatmul.mubr.bf16.gmra.mrb[20].mxu0 %v3884_v41  ;;  %v288_v40 = vld [vmem:[%s5049_s24 + $0x370] sm:$0xff]  ;;  %v3936_v41 = vcombine.low %v274_v29, %v278_v30  ;;  %v3988_v30 = vcombine.low %v324_v19, %v328_v20 }
  0x6f   : > { %2313 = vmatprep.mubr.bf16.mxu1 %v3889_v42  ;;  %2891 = vmatprep.mubr.bf16.mxu0 %v3893_v43  ;;  %v3940_v42 = vcombine.low %v276_v31, %v280_v32  ;;  %v3945_v43 = vcombine.high %v282_v37, %v286_v38 }
  0x70   : > { %2543 = vmatpush1.bf16.msra.mxu1 %v4927_v44  ;;  %3121 = vmatpush1.bf16.msra.mxu0 %v4928_v45  ;;  %v3949_v44 = vcombine.high %v284_v39, %v288_v40  ;;  %v4935_v45 = vld [vmem:[%s5622_s1 + $0xf0] sm:$0xff]  }
  0x71   : > { %2544 = vmatprep.subr.bf16.mxu1 %v4948_v1  ;;  %3122 = vmatprep.subr.bf16.mxu0 %v4948_v1 }
  0x74   : > { %2545 = vmatpush1.bf16.msra.mxu1 %v4929_v54  ;;  %3123 = vmatpush1.bf16.msra.mxu0 %v4930_v55  ;;  %v298_v55 = vld [vmem:[%s5049_s24 + $0x3c0] sm:$0xff] }
  0x75   : > { %2546 = vmatprep.subr.bf16.mxu1 %v4948_v1  ;;  %3124 = vmatprep.subr.bf16.mxu0 %v4948_v1 }
  0x76   : > { %2314 = vmatmul.mubr.bf16.gmra.mrb[24].mxu1 %v3888_v50  ;;  %2892 = vmatmul.mubr.bf16.gmra.mrb[24].mxu0 %v3892_v51  ;;  %v296_v50 = vld [vmem:[%s5049_s24 + $0x3b0] sm:$0xff]  ;;  %v3944_v51 = vcombine.low %v282_v37, %v286_v38 }
  0x77   : > { %2321 = vmatprep.mubr.bf16.mxu1 %v3897_v52  ;;  %2899 = vmatprep.mubr.bf16.mxu0 %v3901_v53  ;;  %v3948_v52 = vcombine.low %v284_v39, %v288_v40  ;;  %v3953_v53 = vcombine.high %v290_v47, %v294_v48  ;;  %v3957_v54 = vcombine.high %v292_v49, %v296_v50 }
  0x78   : > { %2547 = vmatpush1.bf16.msra.mxu1 %v4931_v9  ;;  %3125 = vmatpush1.bf16.msra.mxu0 %v4932_v10  ;;  %v314_v9 = vld [vmem:[%s5049_s24 + $0x440] sm:$0xff] }
  0x79   : > { %2548 = vmatprep.subr.bf16.mxu1 %v4948_v1  ;;  %3126 = vmatprep.subr.bf16.mxu0 %v4948_v1  ;;  %v318_v10 = vld [vmem:[%s5049_s24 + $0x460] sm:$0xff] }
  0x7a   : > { %v3976_v21 = vcombine.low %v314_v9, %v318_v10 }
  0x7c   : > { %2549 = vmatpush1.bf16.msra.mxu1 %v4933_v27  ;;  %3127 = vmatpush1.bf16.msra.mxu0 %v4934_v28  ;;  %v332_v27 = vld [vmem:[%s5049_s24 + $0x4d0] sm:$0xff] }
  0x7d   : > { %2550 = vmatprep.subr.bf16.mxu1 %v4948_v1  ;;  %3128 = vmatprep.subr.bf16.mxu0 %v4948_v1  ;;  %v336_v28 = vld [vmem:[%s5049_s24 + $0x4f0] sm:$0xff] }
  0x7e   : > { %2322 = vmatmul.mubr.bf16.gmra.mrb[28].mxu1 %v3896_v60  ;;  %2900 = vmatmul.mubr.bf16.gmra.mrb[28].mxu0 %v3900_v61  ;;  %v3956_v60 = vcombine.low %v292_v49, %v296_v50  ;;  %v3961_v61 = vcombine.high %v298_v55, %v302_v56  ;;  %v3997_v32 = vcombine.high %v332_v27, %v336_v28  ;;  %v354_v49 = vld [vmem:[%s5049_s24 + $0x580] sm:$0xff] }
  0x7f   : > { %2329 = vmatprep.mubr.bf16.mxu1 %v3905_v62  ;;  %2907 = vmatprep.mubr.bf16.mxu0 %v3909_v63  ;;  %v3965_v62 = vcombine.high %v300_v57, %v304_v58  ;;  %v4938_v63 = vld [vmem:[%s5622_s1 + $0x1f8] sm:$0xff]   ;;  %v3996_v38 = vcombine.low %v332_v27, %v336_v28  ;;  %v358_v50 = vld [vmem:[%s5049_s24 + $0x5a0] sm:$0xff]  ;;  %v396_v27 = vld [vmem:[%s5049_s24 + $0x6d0] sm:$0xff] }
  0x80   : > { %2551 = vmatpush1.bf16.msra.mxu1 %v4935_v45  ;;  %3129 = vmatpush1.bf16.msra.mxu0 %v4936_v46  ;;  %v400_v28 = vld [vmem:[%s5049_s24 + $0x6f0] sm:$0xff] }
  0x81   : > { %2552 = vmatprep.subr.bf16.mxu1 %v4948_v1  ;;  %3130 = vmatprep.subr.bf16.mxu0 %v4948_v1  ;;  %v4937_v1 = vld [vmem:[%s5622_s1 + $0xf8] sm:$0xff]  }
  0x84   : > { %2553 = vmatpush1.bf16.msra.mxu1 %v4937_v1  ;;  %3131 = vmatpush1.bf16.msra.mxu0 %v4938_v63 }
  0x86   : > { %2330 = vmatmul.mubr.bf16.gmra.mrb[32].mxu1 %v3904_v5  ;;  %2908 = vmatmul.mubr.bf16.gmra.mrb[32].mxu0 %v3908_v6  ;;  %v3960_v5 = vcombine.low %v298_v55, %v302_v56  ;;  %v3964_v6 = vcombine.low %v300_v57, %v304_v58  ;;  %v4017_v55 = vcombine.high %v354_v49, %v358_v50  ;;  %v362_v57 = vld [vmem:[%s5049_s24 + $0x5c0] sm:$0xff] }
  0x87   : > { %2337 = vmatprep.mubr.bf16.mxu1 %v3913_v7  ;;  %2915 = vmatprep.mubr.bf16.mxu0 %v3917_v8  ;;  %v3969_v7 = vcombine.high %v306_v0, %v310_v2  ;;  %v3973_v8 = vcombine.high %v308_v3, %v312_v4  ;;  %v366_v58 = vld [vmem:[%s5049_s24 + $0x5e0] sm:$0xff]  ;;  %v372_v3 = vld [vmem:[%s5049_s24 + $0x610] sm:$0xff] }
  0x88   : > { %v4025_v1 = vcombine.high %v362_v57, %v366_v58  ;;  %v370_v0 = vld [vmem:[%s5049_s24 + $0x600] sm:$0xff]  ;;  %v376_v4 = vld [vmem:[%s5049_s24 + $0x630] sm:$0xff] }
  0x89   : > { %v374_v2 = vld [vmem:[%s5049_s24 + $0x620] sm:$0xff] }
  0x8e   : > { %2338 = vmatmul.mubr.bf16.gmra.mrb[36].mxu1 %v3912_v15  ;;  %2916 = vmatmul.mubr.bf16.gmra.mrb[36].mxu0 %v3916_v16  ;;  %v3977_v15 = vcombine.high %v314_v9, %v318_v10  ;;  %v3981_v16 = vcombine.high %v316_v11, %v320_v12  ;;  %v378_v9 = vld [vmem:[%s5049_s24 + $0x640] sm:$0xff]  ;;  %v380_v11 = vld [vmem:[%s5049_s24 + $0x650] sm:$0xff] }
  0x8f   : > { %2345 = vmatprep.mubr.bf16.mxu1 %v3921_v17  ;;  %2923 = vmatprep.mubr.bf16.mxu0 %v3925_v18  ;;  %v322_v17 = vld [vmem:[%s5049_s24 + $0x480] sm:$0xff]  ;;  %v384_v12 = vld [vmem:[%s5049_s24 + $0x670] sm:$0xff] }
  0x90   : > { %v326_v18 = vld [vmem:[%s5049_s24 + $0x4a0] sm:$0xff] }
  0x91   : > { %v3984_v29 = vcombine.low %v322_v17, %v326_v18  ;;  %v382_v10 = vld [vmem:[%s5049_s24 + $0x660] sm:$0xff] }
  0x96   : > { %2346 = vmatmul.mubr.bf16.gmra.mrb[40].mxu1 %v3920_v23  ;;  %2924 = vmatmul.mubr.bf16.gmra.mrb[40].mxu0 %v3924_v24  ;;  %v3985_v23 = vcombine.high %v322_v17, %v326_v18  ;;  %v3989_v24 = vcombine.high %v324_v19, %v328_v20  ;;  %v386_v17 = vld [vmem:[%s5049_s24 + $0x680] sm:$0xff]  ;;  %v388_v19 = vld [vmem:[%s5049_s24 + $0x690] sm:$0xff] }
  0x97   : > { %2353 = vmatprep.mubr.bf16.mxu1 %v3929_v25  ;;  %2931 = vmatprep.mubr.bf16.mxu0 %v3933_v26  ;;  %v330_v25 = vld [vmem:[%s5049_s24 + $0x4c0] sm:$0xff]  ;;  %v392_v20 = vld [vmem:[%s5049_s24 + $0x6b0] sm:$0xff] }
  0x98   : > { %v334_v26 = vld [vmem:[%s5049_s24 + $0x4e0] sm:$0xff] }
  0x99   : > { %v3993_v31 = vcombine.high %v330_v25, %v334_v26  ;;  %v3992_v37 = vcombine.low %v330_v25, %v334_v26  ;;  %v390_v18 = vld [vmem:[%s5049_s24 + $0x6a0] sm:$0xff] }
  0x9a   : > { %v394_v25 = vld [vmem:[%s5049_s24 + $0x6c0] sm:$0xff] }
  0x9b   : > { %v398_v26 = vld [vmem:[%s5049_s24 + $0x6e0] sm:$0xff] }
  0x9e   : > { %2354 = vmatmul.mubr.bf16.gmra.mrb[44].mxu1 %v3928_v33  ;;  %2932 = vmatmul.mubr.bf16.gmra.mrb[44].mxu0 %v3932_v34  ;;  %v338_v33 = vld [vmem:[%s5049_s24 + $0x500] sm:$0xff] }
  0x9f   : > { %2361 = vmatprep.mubr.bf16.mxu1 %v3937_v35  ;;  %2939 = vmatprep.mubr.bf16.mxu0 %v3941_v36  ;;  %v342_v34 = vld [vmem:[%s5049_s24 + $0x520] sm:$0xff]  ;;  %v340_v35 = vld [vmem:[%s5049_s24 + $0x510] sm:$0xff] }
  0xa0   : > { %v344_v36 = vld [vmem:[%s5049_s24 + $0x530] sm:$0xff]  ;;  %v4001_v39 = vcombine.high %v338_v33, %v342_v34  ;;  %v4000_v45 = vcombine.low %v338_v33, %v342_v34  ;;  %v402_v33 = vld [vmem:[%s5049_s24 + $0x700] sm:$0xff] }
  0xa1   : > { %v4005_v40 = vcombine.high %v340_v35, %v344_v36  ;;  %v4004_v46 = vcombine.low %v340_v35, %v344_v36  ;;  %v406_v34 = vld [vmem:[%s5049_s24 + $0x720] sm:$0xff]  ;;  %v404_v35 = vld [vmem:[%s5049_s24 + $0x710] sm:$0xff] }
  0xa2   : > { %v408_v36 = vld [vmem:[%s5049_s24 + $0x730] sm:$0xff] }
  0xa6   : > { %2362 = vmatmul.mubr.bf16.gmra.mrb[48].mxu1 %v3936_v41  ;;  %2940 = vmatmul.mubr.bf16.gmra.mrb[48].mxu0 %v3940_v42  ;;  %v346_v41 = vld [vmem:[%s5049_s24 + $0x540] sm:$0xff] }
  0xa7   : > { %2369 = vmatprep.mubr.bf16.mxu1 %v3945_v43  ;;  %2947 = vmatprep.mubr.bf16.mxu0 %v3949_v44  ;;  %v350_v42 = vld [vmem:[%s5049_s24 + $0x560] sm:$0xff]  ;;  %v348_v43 = vld [vmem:[%s5049_s24 + $0x550] sm:$0xff] }
  0xa8   : > { %v352_v44 = vld [vmem:[%s5049_s24 + $0x570] sm:$0xff]  ;;  %v4009_v47 = vcombine.high %v346_v41, %v350_v42 }
  0xa9   : > { %v4013_v48 = vcombine.high %v348_v43, %v352_v44 }
  0xae   : > { %2370 = vmatmul.mubr.bf16.gmra.mrb[52].mxu1 %v3944_v51  ;;  %2948 = vmatmul.mubr.bf16.gmra.mrb[52].mxu0 %v3948_v52  ;;  %v356_v51 = vld [vmem:[%s5049_s24 + $0x590] sm:$0xff] }
  0xaf   : > { %2377 = vmatprep.mubr.bf16.mxu1 %v3953_v53  ;;  %2955 = vmatprep.mubr.bf16.mxu0 %v3957_v54  ;;  %v360_v52 = vld [vmem:[%s5049_s24 + $0x5b0] sm:$0xff]  ;;  %v4008_v53 = vcombine.low %v346_v41, %v350_v42  ;;  %v4012_v54 = vcombine.low %v348_v43, %v352_v44  ;;  %v410_v41 = vld [vmem:[%s5049_s24 + $0x740] sm:$0xff] }
  0xb0   : > { %v4021_v56 = vcombine.high %v356_v51, %v360_v52  ;;  %v414_v42 = vld [vmem:[%s5049_s24 + $0x760] sm:$0xff]  ;;  %v412_v43 = vld [vmem:[%s5049_s24 + $0x750] sm:$0xff] }
  0xb1   : > { %v416_v44 = vld [vmem:[%s5049_s24 + $0x770] sm:$0xff] }
  0xb6   : > { %2378 = vmatmul.mubr.bf16.gmra.mrb[56].mxu1 %v3952_v59  ;;  %2956 = vmatmul.mubr.bf16.gmra.mrb[56].mxu0 %v3956_v60  ;;  %v364_v59 = vld [vmem:[%s5049_s24 + $0x5d0] sm:$0xff] }
  0xb7   : > { %2385 = vmatprep.mubr.bf16.mxu1 %v3961_v61  ;;  %2963 = vmatprep.mubr.bf16.mxu0 %v3965_v62  ;;  %v368_v60 = vld [vmem:[%s5049_s24 + $0x5f0] sm:$0xff]  ;;  %v4016_v61 = vcombine.low %v354_v49, %v358_v50  ;;  %v4020_v62 = vcombine.low %v356_v51, %v360_v52  ;;  %v418_v49 = vld [vmem:[%s5049_s24 + $0x780] sm:$0xff] }
  0xb8   : > { %v4029_v63 = vcombine.high %v364_v59, %v368_v60  ;;  %v422_v50 = vld [vmem:[%s5049_s24 + $0x7a0] sm:$0xff]  ;;  %v420_v51 = vld [vmem:[%s5049_s24 + $0x790] sm:$0xff] }
  0xb9   : > { %v424_v52 = vld [vmem:[%s5049_s24 + $0x7b0] sm:$0xff] }
  0xbe   : > { %2386 = vmatmul.mubr.bf16.gmra.mrb[60].mxu1 %v3960_v5  ;;  %2964 = vmatmul.mubr.bf16.gmra.mrb[60].mxu0 %v3964_v6  ;;  %v4024_v5 = vcombine.low %v362_v57, %v366_v58  ;;  %v4028_v6 = vcombine.low %v364_v59, %v368_v60  ;;  %v426_v57 = vld [vmem:[%s5049_s24 + $0x7c0] sm:$0xff]  ;;  %v428_v59 = vld [vmem:[%s5049_s24 + $0x7d0] sm:$0xff] }
  0xbf   : > { %2393 = vmatprep.mubr.bf16.mxu1 %v3969_v7  ;;  %2971 = vmatprep.mubr.bf16.mxu0 %v3973_v8  ;;  %v4033_v7 = vcombine.high %v370_v0, %v374_v2  ;;  %v4037_v8 = vcombine.high %v372_v3, %v376_v4  ;;  %v430_v58 = vld [vmem:[%s5049_s24 + $0x7e0] sm:$0xff]  ;;  %v432_v60 = vld [vmem:[%s5049_s24 + $0x7f0] sm:$0xff] }
  0xc6   : > { %2394 = vmatmul.mubr.bf16.gmra.mrb[64].mxu1 %v3968_v13  ;;  %2972 = vmatmul.mubr.bf16.gmra.mrb[64].mxu0 %v3972_v14  ;;  %v4032_v13 = vcombine.low %v370_v0, %v374_v2  ;;  %v4036_v14 = vcombine.low %v372_v3, %v376_v4  ;;  %v179_v0 = vld [vmem:[%s5049_s24 + $0x8] sm:$0xff]  ;;  %v181_v3 = vld [vmem:[%s5049_s24 + $0x18] sm:$0xff] }
  0xc7   : > { %2401 = vmatprep.mubr.bf16.mxu1 %v3977_v15  ;;  %2979 = vmatprep.mubr.bf16.mxu0 %v3981_v16  ;;  %v4041_v15 = vcombine.high %v378_v9, %v382_v10  ;;  %v4045_v16 = vcombine.high %v380_v11, %v384_v12  ;;  %v183_v2 = vld [vmem:[%s5049_s24 + $0x28] sm:$0xff]  ;;  %v185_v4 = vld [vmem:[%s5049_s24 + $0x38] sm:$0xff] }
  0xce   : > { %2402 = vmatmul.mubr.bf16.gmra.mrb[68].mxu1 %v3976_v21  ;;  %2980 = vmatmul.mubr.bf16.gmra.mrb[68].mxu0 %v3980_v22  ;;  %v4040_v21 = vcombine.low %v378_v9, %v382_v10  ;;  %v4044_v22 = vcombine.low %v380_v11, %v384_v12  ;;  %v187_v9 = vld [vmem:[%s5049_s24 + $0x48] sm:$0xff]  ;;  %v189_v11 = vld [vmem:[%s5049_s24 + $0x58] sm:$0xff] }
  0xcf   : > { %2409 = vmatprep.mubr.bf16.mxu1 %v3985_v23  ;;  %2987 = vmatprep.mubr.bf16.mxu0 %v3989_v24  ;;  %v4049_v23 = vcombine.high %v386_v17, %v390_v18  ;;  %v4053_v24 = vcombine.high %v388_v19, %v392_v20  ;;  %v191_v10 = vld [vmem:[%s5049_s24 + $0x68] sm:$0xff]  ;;  %v193_v12 = vld [vmem:[%s5049_s24 + $0x78] sm:$0xff] }
  0xd6   : > { %2410 = vmatmul.mubr.bf16.gmra.mrb[72].mxu1 %v3984_v29  ;;  %2988 = vmatmul.mubr.bf16.gmra.mrb[72].mxu0 %v3988_v30  ;;  %v4048_v29 = vcombine.low %v386_v17, %v390_v18  ;;  %v4052_v30 = vcombine.low %v388_v19, %v392_v20  ;;  %v195_v17 = vld [vmem:[%s5049_s24 + $0x88] sm:$0xff]  ;;  %v197_v19 = vld [vmem:[%s5049_s24 + $0x98] sm:$0xff] }
  0xd7   : > { %2417 = vmatprep.mubr.bf16.mxu1 %v3993_v31  ;;  %2995 = vmatprep.mubr.bf16.mxu0 %v3997_v32  ;;  %v4057_v31 = vcombine.high %v394_v25, %v398_v26  ;;  %v4061_v32 = vcombine.high %v396_v27, %v400_v28  ;;  %v199_v18 = vld [vmem:[%s5049_s24 + $0xa8] sm:$0xff]  ;;  %v201_v20 = vld [vmem:[%s5049_s24 + $0xb8] sm:$0xff] }
  0xde   : > { %2418 = vmatmul.mubr.bf16.gmra.mrb[76].mxu1 %v3992_v37  ;;  %2996 = vmatmul.mubr.bf16.gmra.mrb[76].mxu0 %v3996_v38  ;;  %v4056_v37 = vcombine.low %v394_v25, %v398_v26  ;;  %v4060_v38 = vcombine.low %v396_v27, %v400_v28  ;;  %v203_v25 = vld [vmem:[%s5049_s24 + $0xc8] sm:$0xff]  ;;  %v205_v27 = vld [vmem:[%s5049_s24 + $0xd8] sm:$0xff] }
  0xdf   : > { %2425 = vmatprep.mubr.bf16.mxu1 %v4001_v39  ;;  %3003 = vmatprep.mubr.bf16.mxu0 %v4005_v40  ;;  %v4065_v39 = vcombine.high %v402_v33, %v406_v34  ;;  %v4069_v40 = vcombine.high %v404_v35, %v408_v36  ;;  %v207_v26 = vld [vmem:[%s5049_s24 + $0xe8] sm:$0xff]  ;;  %v209_v28 = vld [vmem:[%s5049_s24 + $0xf8] sm:$0xff] }
  0xe6   : > { %2426 = vmatmul.mubr.bf16.gmra.mrb[80].mxu1 %v4000_v45  ;;  %3004 = vmatmul.mubr.bf16.gmra.mrb[80].mxu0 %v4004_v46  ;;  %v4064_v45 = vcombine.low %v402_v33, %v406_v34  ;;  %v4068_v46 = vcombine.low %v404_v35, %v408_v36  ;;  %v211_v33 = vld [vmem:[%s5049_s24 + $0x108] sm:$0xff]  ;;  %v213_v35 = vld [vmem:[%s5049_s24 + $0x118] sm:$0xff] }
  0xe7   : > { %2433 = vmatprep.mubr.bf16.mxu1 %v4009_v47  ;;  %3011 = vmatprep.mubr.bf16.mxu0 %v4013_v48  ;;  %v4073_v47 = vcombine.high %v410_v41, %v414_v42  ;;  %v4077_v48 = vcombine.high %v412_v43, %v416_v44  ;;  %v215_v34 = vld [vmem:[%s5049_s24 + $0x128] sm:$0xff]  ;;  %v217_v36 = vld [vmem:[%s5049_s24 + $0x138] sm:$0xff] }
  0xee   : > { %2434 = vmatmul.mubr.bf16.gmra.mrb[84].mxu1 %v4008_v53  ;;  %3012 = vmatmul.mubr.bf16.gmra.mrb[84].mxu0 %v4012_v54  ;;  %v4072_v53 = vcombine.low %v410_v41, %v414_v42  ;;  %v4076_v54 = vcombine.low %v412_v43, %v416_v44  ;;  %v219_v41 = vld [vmem:[%s5049_s24 + $0x148] sm:$0xff]  ;;  %v221_v43 = vld [vmem:[%s5049_s24 + $0x158] sm:$0xff] }
  0xef   : > { %2441 = vmatprep.mubr.bf16.mxu1 %v4017_v55  ;;  %3019 = vmatprep.mubr.bf16.mxu0 %v4021_v56  ;;  %v4081_v55 = vcombine.high %v418_v49, %v422_v50  ;;  %v4085_v56 = vcombine.high %v420_v51, %v424_v52  ;;  %v223_v42 = vld [vmem:[%s5049_s24 + $0x168] sm:$0xff]  ;;  %v225_v44 = vld [vmem:[%s5049_s24 + $0x178] sm:$0xff] }
  0xf6   : > { %2442 = vmatmul.mubr.bf16.gmra.mrb[88].mxu1 %v4016_v61  ;;  %3020 = vmatmul.mubr.bf16.gmra.mrb[88].mxu0 %v4020_v62  ;;  %v4080_v61 = vcombine.low %v418_v49, %v422_v50  ;;  %v4084_v62 = vcombine.low %v420_v51, %v424_v52  ;;  %v227_v49 = vld [vmem:[%s5049_s24 + $0x188] sm:$0xff]  ;;  %v229_v51 = vld [vmem:[%s5049_s24 + $0x198] sm:$0xff] }
  0xf7   : > { %2449 = vmatprep.mubr.bf16.mxu1 %v4025_v1  ;;  %3027 = vmatprep.mubr.bf16.mxu0 %v4029_v63  ;;  %v4089_v1 = vcombine.high %v426_v57, %v430_v58  ;;  %v4093_v63 = vcombine.high %v428_v59, %v432_v60  ;;  %v231_v50 = vld [vmem:[%s5049_s24 + $0x1a8] sm:$0xff]  ;;  %v233_v52 = vld [vmem:[%s5049_s24 + $0x1b8] sm:$0xff] }
  0xfe   : > { %2450 = vmatmul.mubr.bf16.gmra.mrb[92].mxu1 %v4024_v5  ;;  %3028 = vmatmul.mubr.bf16.gmra.mrb[92].mxu0 %v4028_v6  ;;  %v4088_v5 = vcombine.low %v426_v57, %v430_v58  ;;  %v4092_v6 = vcombine.low %v428_v59, %v432_v60  ;;  %v235_v57 = vld [vmem:[%s5049_s24 + $0x1c8] sm:$0xff]  ;;  %v237_v59 = vld [vmem:[%s5049_s24 + $0x1d8] sm:$0xff] }
  0xff   : > { %2457 = vmatprep.mubr.bf16.mxu1 %v4033_v7  ;;  %3035 = vmatprep.mubr.bf16.mxu0 %v4037_v8  ;;  %v3843_v7 = vcombine.high %v179_v0, %v183_v2  ;;  %v3847_v8 = vcombine.high %v181_v3, %v185_v4  ;;  %v239_v58 = vld [vmem:[%s5049_s24 + $0x1e8] sm:$0xff]  ;;  %v241_v60 = vld [vmem:[%s5049_s24 + $0x1f8] sm:$0xff] }
 0x106   : > { %2458 = vmatmul.mubr.bf16.gmra.mrb[96].mxu1 %v4032_v13  ;;  %3036 = vmatmul.mubr.bf16.gmra.mrb[96].mxu0 %v4036_v14  ;;  %v3842_v13 = vcombine.low %v179_v0, %v183_v2  ;;  %v3846_v14 = vcombine.low %v181_v3, %v185_v4  ;;  %v243_v0 = vld [vmem:[%s5049_s24 + $0x208] sm:$0xff]  ;;  %v245_v3 = vld [vmem:[%s5049_s24 + $0x218] sm:$0xff] }
 0x107   : > { %2465 = vmatprep.mubr.bf16.mxu1 %v4041_v15  ;;  %3043 = vmatprep.mubr.bf16.mxu0 %v4045_v16  ;;  %v3851_v15 = vcombine.high %v187_v9, %v191_v10  ;;  %v3855_v16 = vcombine.high %v189_v11, %v193_v12  ;;  %v247_v2 = vld [vmem:[%s5049_s24 + $0x228] sm:$0xff]  ;;  %v249_v4 = vld [vmem:[%s5049_s24 + $0x238] sm:$0xff] }
 0x10e   : > { %2466 = vmatmul.mubr.bf16.gmra.mrb[100].mxu1 %v4040_v21  ;;  %3044 = vmatmul.mubr.bf16.gmra.mrb[100].mxu0 %v4044_v22  ;;  %v3850_v21 = vcombine.low %v187_v9, %v191_v10  ;;  %v3854_v22 = vcombine.low %v189_v11, %v193_v12  ;;  %v251_v9 = vld [vmem:[%s5049_s24 + $0x248] sm:$0xff]  ;;  %v253_v11 = vld [vmem:[%s5049_s24 + $0x258] sm:$0xff] }
 0x10f   : > { %2473 = vmatprep.mubr.bf16.mxu1 %v4049_v23  ;;  %3051 = vmatprep.mubr.bf16.mxu0 %v4053_v24  ;;  %v3859_v23 = vcombine.high %v195_v17, %v199_v18  ;;  %v3863_v24 = vcombine.high %v197_v19, %v201_v20  ;;  %v255_v10 = vld [vmem:[%s5049_s24 + $0x268] sm:$0xff]  ;;  %v257_v12 = vld [vmem:[%s5049_s24 + $0x278] sm:$0xff] }
 0x116   : > { %2474 = vmatmul.mubr.bf16.gmra.mrb[104].mxu1 %v4048_v29  ;;  %3052 = vmatmul.mubr.bf16.gmra.mrb[104].mxu0 %v4052_v30  ;;  %v3858_v29 = vcombine.low %v195_v17, %v199_v18  ;;  %v3862_v30 = vcombine.low %v197_v19, %v201_v20  ;;  %v259_v17 = vld [vmem:[%s5049_s24 + $0x288] sm:$0xff]  ;;  %v261_v19 = vld [vmem:[%s5049_s24 + $0x298] sm:$0xff] }
 0x117   : > { %2481 = vmatprep.mubr.bf16.mxu1 %v4057_v31  ;;  %3059 = vmatprep.mubr.bf16.mxu0 %v4061_v32  ;;  %v3867_v31 = vcombine.high %v203_v25, %v207_v26  ;;  %v3871_v32 = vcombine.high %v205_v27, %v209_v28  ;;  %v263_v18 = vld [vmem:[%s5049_s24 + $0x2a8] sm:$0xff]  ;;  %v265_v20 = vld [vmem:[%s5049_s24 + $0x2b8] sm:$0xff] }
 0x11e   : > { %2482 = vmatmul.mubr.bf16.gmra.mrb[108].mxu1 %v4056_v37  ;;  %3060 = vmatmul.mubr.bf16.gmra.mrb[108].mxu0 %v4060_v38  ;;  %v3866_v37 = vcombine.low %v203_v25, %v207_v26  ;;  %v3870_v38 = vcombine.low %v205_v27, %v209_v28  ;;  %v267_v25 = vld [vmem:[%s5049_s24 + $0x2c8] sm:$0xff]  ;;  %v269_v27 = vld [vmem:[%s5049_s24 + $0x2d8] sm:$0xff] }
 0x11f   : > { %2489 = vmatprep.mubr.bf16.mxu1 %v4065_v39  ;;  %3067 = vmatprep.mubr.bf16.mxu0 %v4069_v40  ;;  %v3875_v39 = vcombine.high %v211_v33, %v215_v34  ;;  %v3879_v40 = vcombine.high %v213_v35, %v217_v36  ;;  %v271_v26 = vld [vmem:[%s5049_s24 + $0x2e8] sm:$0xff]  ;;  %v273_v28 = vld [vmem:[%s5049_s24 + $0x2f8] sm:$0xff] }
 0x126   : > { %2490 = vmatmul.mubr.bf16.gmra.mrb[112].mxu1 %v4064_v45  ;;  %3068 = vmatmul.mubr.bf16.gmra.mrb[112].mxu0 %v4068_v46  ;;  %v3874_v45 = vcombine.low %v211_v33, %v215_v34  ;;  %v3878_v46 = vcombine.low %v213_v35, %v217_v36  ;;  %v275_v33 = vld [vmem:[%s5049_s24 + $0x308] sm:$0xff]  ;;  %v277_v35 = vld [vmem:[%s5049_s24 + $0x318] sm:$0xff] }
 0x127   : > { %2497 = vmatprep.mubr.bf16.mxu1 %v4073_v47  ;;  %3075 = vmatprep.mubr.bf16.mxu0 %v4077_v48  ;;  %v3883_v47 = vcombine.high %v219_v41, %v223_v42  ;;  %v3887_v48 = vcombine.high %v221_v43, %v225_v44  ;;  %v279_v34 = vld [vmem:[%s5049_s24 + $0x328] sm:$0xff]  ;;  %v281_v36 = vld [vmem:[%s5049_s24 + $0x338] sm:$0xff] }
 0x12e   : > { %2498 = vmatmul.mubr.bf16.gmra.mrb[116].mxu1 %v4072_v53  ;;  %3076 = vmatmul.mubr.bf16.gmra.mrb[116].mxu0 %v4076_v54  ;;  %v3882_v53 = vcombine.low %v219_v41, %v223_v42  ;;  %v3886_v54 = vcombine.low %v221_v43, %v225_v44  ;;  %v283_v41 = vld [vmem:[%s5049_s24 + $0x348] sm:$0xff]  ;;  %v285_v43 = vld [vmem:[%s5049_s24 + $0x358] sm:$0xff] }
 0x12f   : > { %2505 = vmatprep.mubr.bf16.mxu1 %v4081_v55  ;;  %3083 = vmatprep.mubr.bf16.mxu0 %v4085_v56  ;;  %v3891_v55 = vcombine.high %v227_v49, %v231_v50  ;;  %v3895_v56 = vcombine.high %v229_v51, %v233_v52  ;;  %v287_v42 = vld [vmem:[%s5049_s24 + $0x368] sm:$0xff]  ;;  %v289_v44 = vld [vmem:[%s5049_s24 + $0x378] sm:$0xff] }
 0x136   : > { %2506 = vmatmul.mubr.bf16.gmra.mrb[120].mxu1 %v4080_v61  ;;  %3084 = vmatmul.mubr.bf16.gmra.mrb[120].mxu0 %v4084_v62  ;;  %v3890_v61 = vcombine.low %v227_v49, %v231_v50  ;;  %v3894_v62 = vcombine.low %v229_v51, %v233_v52  ;;  %v291_v49 = vld [vmem:[%s5049_s24 + $0x388] sm:$0xff]  ;;  %v293_v51 = vld [vmem:[%s5049_s24 + $0x398] sm:$0xff] }
 0x137   : > { %2513 = vmatprep.mubr.bf16.mxu1 %v4089_v1  ;;  %3091 = vmatprep.mubr.bf16.mxu0 %v4093_v63  ;;  %v3899_v1 = vcombine.high %v235_v57, %v239_v58  ;;  %v3903_v63 = vcombine.high %v237_v59, %v241_v60  ;;  %v295_v50 = vld [vmem:[%s5049_s24 + $0x3a8] sm:$0xff]  ;;  %v297_v52 = vld [vmem:[%s5049_s24 + $0x3b8] sm:$0xff] }
 0x13e   : > { %2514 = vmatmul.mubr.bf16.gmra.mrb[124].mxu1 %v4088_v5  ;;  %3092 = vmatmul.mubr.bf16.gmra.mrb[124].mxu0 %v4092_v6  ;;  %v3898_v5 = vcombine.low %v235_v57, %v239_v58  ;;  %v3902_v6 = vcombine.low %v237_v59, %v241_v60  ;;  %v299_v57 = vld [vmem:[%s5049_s24 + $0x3c8] sm:$0xff]  ;;  %v301_v59 = vld [vmem:[%s5049_s24 + $0x3d8] sm:$0xff] }
 0x13f   : > { %2554 = vmatprep.mubr.bf16.mxu1 %v3843_v7  ;;  %3132 = vmatprep.mubr.bf16.mxu0 %v3847_v8  ;;  %v3907_v7 = vcombine.high %v243_v0, %v247_v2  ;;  %v3911_v8 = vcombine.high %v245_v3, %v249_v4  ;;  %v303_v58 = vld [vmem:[%s5049_s24 + $0x3e8] sm:$0xff]  ;;  %v305_v60 = vld [vmem:[%s5049_s24 + $0x3f8] sm:$0xff] }
 0x146   : > { %2555 = vmatmul.mubr.bf16.vlgmr.msra.gmra.mrb[0].mxu1 %v3842_v13  ;;  %3133 = vmatmul.mubr.bf16.vlgmr.msra.gmra.mrb[0].mxu0 %v3846_v14  ;;  %v3906_v13 = vcombine.low %v243_v0, %v247_v2  ;;  %v3910_v14 = vcombine.low %v245_v3, %v249_v4  ;;  %v307_v0 = vld [vmem:[%s5049_s24 + $0x408] sm:$0xff]  ;;  %v309_v3 = vld [vmem:[%s5049_s24 + $0x418] sm:$0xff] }
 0x147   : > { %2562 = vmatprep.mubr.bf16.mxu1 %v3851_v15  ;;  %3140 = vmatprep.mubr.bf16.mxu0 %v3855_v16  ;;  %v3915_v15 = vcombine.high %v251_v9, %v255_v10  ;;  %v3919_v16 = vcombine.high %v253_v11, %v257_v12  ;;  %v311_v2 = vld [vmem:[%s5049_s24 + $0x428] sm:$0xff]  ;;  %v313_v4 = vld [vmem:[%s5049_s24 + $0x438] sm:$0xff] }
 0x14e   : > { %2563 = vmatmul.mubr.bf16.gmra.mrb[4].mxu1 %v3850_v21  ;;  %3141 = vmatmul.mubr.bf16.gmra.mrb[4].mxu0 %v3854_v22  ;;  %v3914_v21 = vcombine.low %v251_v9, %v255_v10  ;;  %v3918_v22 = vcombine.low %v253_v11, %v257_v12  ;;  %v315_v9 = vld [vmem:[%s5049_s24 + $0x448] sm:$0xff]  ;;  %v317_v11 = vld [vmem:[%s5049_s24 + $0x458] sm:$0xff] }
 0x14f   : > { %2570 = vmatprep.mubr.bf16.mxu1 %v3859_v23  ;;  %3148 = vmatprep.mubr.bf16.mxu0 %v3863_v24  ;;  %v3923_v23 = vcombine.high %v259_v17, %v263_v18  ;;  %v3927_v24 = vcombine.high %v261_v19, %v265_v20  ;;  %v319_v10 = vld [vmem:[%s5049_s24 + $0x468] sm:$0xff]  ;;  %v321_v12 = vld [vmem:[%s5049_s24 + $0x478] sm:$0xff] }
 0x156   : > { %2571 = vmatmul.mubr.bf16.gmra.mrb[8].mxu1 %v3858_v29  ;;  %3149 = vmatmul.mubr.bf16.gmra.mrb[8].mxu0 %v3862_v30  ;;  %v3922_v29 = vcombine.low %v259_v17, %v263_v18  ;;  %v3926_v30 = vcombine.low %v261_v19, %v265_v20  ;;  %v323_v17 = vld [vmem:[%s5049_s24 + $0x488] sm:$0xff]  ;;  %v325_v19 = vld [vmem:[%s5049_s24 + $0x498] sm:$0xff] }
 0x157   : > { %2578 = vmatprep.mubr.bf16.mxu1 %v3867_v31  ;;  %3156 = vmatprep.mubr.bf16.mxu0 %v3871_v32  ;;  %v3931_v31 = vcombine.high %v267_v25, %v271_v26  ;;  %v3935_v32 = vcombine.high %v269_v27, %v273_v28  ;;  %v327_v18 = vld [vmem:[%s5049_s24 + $0x4a8] sm:$0xff]  ;;  %v329_v20 = vld [vmem:[%s5049_s24 + $0x4b8] sm:$0xff] }
 0x15e   : > { %2579 = vmatmul.mubr.bf16.gmra.mrb[12].mxu1 %v3866_v37  ;;  %3157 = vmatmul.mubr.bf16.gmra.mrb[12].mxu0 %v3870_v38  ;;  %v3930_v37 = vcombine.low %v267_v25, %v271_v26  ;;  %v3934_v38 = vcombine.low %v269_v27, %v273_v28  ;;  %v331_v25 = vld [vmem:[%s5049_s24 + $0x4c8] sm:$0xff]  ;;  %v333_v27 = vld [vmem:[%s5049_s24 + $0x4d8] sm:$0xff] }
 0x15f   : > { %2586 = vmatprep.mubr.bf16.mxu1 %v3875_v39  ;;  %3164 = vmatprep.mubr.bf16.mxu0 %v3879_v40  ;;  %v3939_v39 = vcombine.high %v275_v33, %v279_v34  ;;  %v3943_v40 = vcombine.high %v277_v35, %v281_v36  ;;  %v335_v26 = vld [vmem:[%s5049_s24 + $0x4e8] sm:$0xff]  ;;  %v337_v28 = vld [vmem:[%s5049_s24 + $0x4f8] sm:$0xff] }
 0x166   : > { %2587 = vmatmul.mubr.bf16.gmra.mrb[16].mxu1 %v3874_v45  ;;  %3165 = vmatmul.mubr.bf16.gmra.mrb[16].mxu0 %v3878_v46  ;;  %v3938_v45 = vcombine.low %v275_v33, %v279_v34  ;;  %v3942_v46 = vcombine.low %v277_v35, %v281_v36  ;;  %v339_v33 = vld [vmem:[%s5049_s24 + $0x508] sm:$0xff]  ;;  %v341_v35 = vld [vmem:[%s5049_s24 + $0x518] sm:$0xff] }
 0x167   : > { %2594 = vmatprep.mubr.bf16.mxu1 %v3883_v47  ;;  %3172 = vmatprep.mubr.bf16.mxu0 %v3887_v48  ;;  %v3947_v47 = vcombine.high %v283_v41, %v287_v42  ;;  %v3951_v48 = vcombine.high %v285_v43, %v289_v44  ;;  %v343_v34 = vld [vmem:[%s5049_s24 + $0x528] sm:$0xff]  ;;  %v345_v36 = vld [vmem:[%s5049_s24 + $0x538] sm:$0xff] }
 0x16e   : > { %2595 = vmatmul.mubr.bf16.gmra.mrb[20].mxu1 %v3882_v53  ;;  %3173 = vmatmul.mubr.bf16.gmra.mrb[20].mxu0 %v3886_v54  ;;  %v3946_v53 = vcombine.low %v283_v41, %v287_v42  ;;  %v3950_v54 = vcombine.low %v285_v43, %v289_v44  ;;  %v347_v41 = vld [vmem:[%s5049_s24 + $0x548] sm:$0xff]  ;;  %v349_v43 = vld [vmem:[%s5049_s24 + $0x558] sm:$0xff] }
 0x16f   : > { %2602 = vmatprep.mubr.bf16.mxu1 %v3891_v55  ;;  %3180 = vmatprep.mubr.bf16.mxu0 %v3895_v56  ;;  %v3955_v55 = vcombine.high %v291_v49, %v295_v50  ;;  %v3959_v56 = vcombine.high %v293_v51, %v297_v52  ;;  %v351_v42 = vld [vmem:[%s5049_s24 + $0x568] sm:$0xff]  ;;  %v353_v44 = vld [vmem:[%s5049_s24 + $0x578] sm:$0xff] }
 0x176   : > { %2603 = vmatmul.mubr.bf16.gmra.mrb[24].mxu1 %v3890_v61  ;;  %3181 = vmatmul.mubr.bf16.gmra.mrb[24].mxu0 %v3894_v62  ;;  %v3954_v61 = vcombine.low %v291_v49, %v295_v50  ;;  %v3958_v62 = vcombine.low %v293_v51, %v297_v52  ;;  %v355_v49 = vld [vmem:[%s5049_s24 + $0x588] sm:$0xff]  ;;  %v357_v51 = vld [vmem:[%s5049_s24 + $0x598] sm:$0xff] }
 0x177   : > { %2610 = vmatprep.mubr.bf16.mxu1 %v3899_v1  ;;  %3188 = vmatprep.mubr.bf16.mxu0 %v3903_v63  ;;  %v3963_v1 = vcombine.high %v299_v57, %v303_v58  ;;  %v3967_v63 = vcombine.high %v301_v59, %v305_v60  ;;  %v359_v50 = vld [vmem:[%s5049_s24 + $0x5a8] sm:$0xff]  ;;  %v361_v52 = vld [vmem:[%s5049_s24 + $0x5b8] sm:$0xff] }
 0x17e   : > { %2611 = vmatmul.mubr.bf16.gmra.mrb[28].mxu1 %v3898_v5  ;;  %3189 = vmatmul.mubr.bf16.gmra.mrb[28].mxu0 %v3902_v6  ;;  %v3962_v5 = vcombine.low %v299_v57, %v303_v58  ;;  %v3966_v6 = vcombine.low %v301_v59, %v305_v60  ;;  %v363_v57 = vld [vmem:[%s5049_s24 + $0x5c8] sm:$0xff]  ;;  %v365_v59 = vld [vmem:[%s5049_s24 + $0x5d8] sm:$0xff] }
 0x17f   : > { %2618 = vmatprep.mubr.bf16.mxu1 %v3907_v7  ;;  %3196 = vmatprep.mubr.bf16.mxu0 %v3911_v8  ;;  %v3971_v7 = vcombine.high %v307_v0, %v311_v2  ;;  %v3975_v8 = vcombine.high %v309_v3, %v313_v4  ;;  %v367_v58 = vld [vmem:[%s5049_s24 + $0x5e8] sm:$0xff]  ;;  %v369_v60 = vld [vmem:[%s5049_s24 + $0x5f8] sm:$0xff] }
 0x186   : > { %2619 = vmatmul.mubr.bf16.gmra.mrb[32].mxu1 %v3906_v13  ;;  %3197 = vmatmul.mubr.bf16.gmra.mrb[32].mxu0 %v3910_v14  ;;  %v3970_v13 = vcombine.low %v307_v0, %v311_v2  ;;  %v3974_v14 = vcombine.low %v309_v3, %v313_v4  ;;  %v371_v0 = vld [vmem:[%s5049_s24 + $0x608] sm:$0xff]  ;;  %v373_v3 = vld [vmem:[%s5049_s24 + $0x618] sm:$0xff] }
 0x187   : > { %2626 = vmatprep.mubr.bf16.mxu1 %v3915_v15  ;;  %3204 = vmatprep.mubr.bf16.mxu0 %v3919_v16  ;;  %v3979_v15 = vcombine.high %v315_v9, %v319_v10  ;;  %v3983_v16 = vcombine.high %v317_v11, %v321_v12  ;;  %v375_v2 = vld [vmem:[%s5049_s24 + $0x628] sm:$0xff]  ;;  %v377_v4 = vld [vmem:[%s5049_s24 + $0x638] sm:$0xff] }
 0x18e   : > { %2627 = vmatmul.mubr.bf16.gmra.mrb[36].mxu1 %v3914_v21  ;;  %3205 = vmatmul.mubr.bf16.gmra.mrb[36].mxu0 %v3918_v22  ;;  %v3978_v21 = vcombine.low %v315_v9, %v319_v10  ;;  %v3982_v22 = vcombine.low %v317_v11, %v321_v12  ;;  %v379_v9 = vld [vmem:[%s5049_s24 + $0x648] sm:$0xff]  ;;  %v381_v11 = vld [vmem:[%s5049_s24 + $0x658] sm:$0xff] }
 0x18f   : > { %2634 = vmatprep.mubr.bf16.mxu1 %v3923_v23  ;;  %3212 = vmatprep.mubr.bf16.mxu0 %v3927_v24  ;;  %v3987_v23 = vcombine.high %v323_v17, %v327_v18  ;;  %v3991_v24 = vcombine.high %v325_v19, %v329_v20  ;;  %v383_v10 = vld [vmem:[%s5049_s24 + $0x668] sm:$0xff]  ;;  %v385_v12 = vld [vmem:[%s5049_s24 + $0x678] sm:$0xff] }
 0x196   : > { %2635 = vmatmul.mubr.bf16.gmra.mrb[40].mxu1 %v3922_v29  ;;  %3213 = vmatmul.mubr.bf16.gmra.mrb[40].mxu0 %v3926_v30  ;;  %v3986_v29 = vcombine.low %v323_v17, %v327_v18  ;;  %v3990_v30 = vcombine.low %v325_v19, %v329_v20  ;;  %v387_v17 = vld [vmem:[%s5049_s24 + $0x688] sm:$0xff]  ;;  %v389_v19 = vld [vmem:[%s5049_s24 + $0x698] sm:$0xff] }
 0x197   : > { %2642 = vmatprep.mubr.bf16.mxu1 %v3931_v31  ;;  %3220 = vmatprep.mubr.bf16.mxu0 %v3935_v32  ;;  %v3995_v31 = vcombine.high %v331_v25, %v335_v26  ;;  %v3999_v32 = vcombine.high %v333_v27, %v337_v28  ;;  %v391_v18 = vld [vmem:[%s5049_s24 + $0x6a8] sm:$0xff]  ;;  %v393_v20 = vld [vmem:[%s5049_s24 + $0x6b8] sm:$0xff] }
 0x19e   : > { %2643 = vmatmul.mubr.bf16.gmra.mrb[44].mxu1 %v3930_v37  ;;  %3221 = vmatmul.mubr.bf16.gmra.mrb[44].mxu0 %v3934_v38  ;;  %v3994_v37 = vcombine.low %v331_v25, %v335_v26  ;;  %v3998_v38 = vcombine.low %v333_v27, %v337_v28  ;;  %v395_v25 = vld [vmem:[%s5049_s24 + $0x6c8] sm:$0xff]  ;;  %v397_v27 = vld [vmem:[%s5049_s24 + $0x6d8] sm:$0xff] }
 0x19f   : > { %2650 = vmatprep.mubr.bf16.mxu1 %v3939_v39  ;;  %3228 = vmatprep.mubr.bf16.mxu0 %v3943_v40  ;;  %v4003_v39 = vcombine.high %v339_v33, %v343_v34  ;;  %v4007_v40 = vcombine.high %v341_v35, %v345_v36  ;;  %v399_v26 = vld [vmem:[%s5049_s24 + $0x6e8] sm:$0xff]  ;;  %v401_v28 = vld [vmem:[%s5049_s24 + $0x6f8] sm:$0xff] }
 0x1a6   : > { %2651 = vmatmul.mubr.bf16.gmra.mrb[48].mxu1 %v3938_v45  ;;  %3229 = vmatmul.mubr.bf16.gmra.mrb[48].mxu0 %v3942_v46  ;;  %v4002_v45 = vcombine.low %v339_v33, %v343_v34  ;;  %v4006_v46 = vcombine.low %v341_v35, %v345_v36  ;;  %v5502_v33 = vld [vmem:[%s5623_s2] ss:$0 sm:$0xff]  ;;  %v403_v34 = vld [vmem:[%s5049_s24 + $0x708] sm:$0xff] }
 0x1a7   : > { %2658 = vmatprep.mubr.bf16.mxu1 %v3947_v47  ;;  %3236 = vmatprep.mubr.bf16.mxu0 %v3951_v48  ;;  %v4011_v47 = vcombine.high %v347_v41, %v351_v42  ;;  %v4015_v48 = vcombine.high %v349_v43, %v353_v44  ;;  %v407_v35 = vld [vmem:[%s5049_s24 + $0x728] sm:$0xff] }
 0x1ae   : > { %2659 = vmatmul.mubr.bf16.gmra.mrb[52].mxu1 %v3946_v53  ;;  %3237 = vmatmul.mubr.bf16.gmra.mrb[52].mxu0 %v3950_v54  ;;  %v4010_v53 = vcombine.low %v347_v41, %v351_v42  ;;  %v4014_v54 = vcombine.low %v349_v43, %v353_v44  ;;  %v4058_v42 = vcombine.low %v395_v25, %v399_v26 }
 0x1af   : > { %2666 = vmatprep.mubr.bf16.mxu1 %v3955_v55  ;;  %3244 = vmatprep.mubr.bf16.mxu0 %v3959_v56  ;;  %v4019_v55 = vcombine.high %v355_v49, %v359_v50  ;;  %v4023_v56 = vcombine.high %v357_v51, %v361_v52 }
 0x1b6   : > { %2667 = vmatmul.mubr.bf16.gmra.mrb[56].mxu1 %v3954_v61  ;;  %3245 = vmatmul.mubr.bf16.gmra.mrb[56].mxu0 %v3958_v62  ;;  %v4018_v61 = vcombine.low %v355_v49, %v359_v50  ;;  %v4022_v62 = vcombine.low %v357_v51, %v361_v52 }
 0x1b7   : > { %2674 = vmatprep.mubr.bf16.mxu1 %v3963_v1  ;;  %3252 = vmatprep.mubr.bf16.mxu0 %v3967_v63  ;;  %v4027_v1 = vcombine.high %v363_v57, %v367_v58  ;;  %v4031_v63 = vcombine.high %v365_v59, %v369_v60 }
 0x1be   : > { %2675 = vmatmul.mubr.bf16.gmra.mrb[60].mxu1 %v3962_v5  ;;  %3253 = vmatmul.mubr.bf16.gmra.mrb[60].mxu0 %v3966_v6  ;;  %v4026_v5 = vcombine.low %v363_v57, %v367_v58  ;;  %v4030_v6 = vcombine.low %v365_v59, %v369_v60  ;;  %v415_v57 = vld [vmem:[%s5049_s24 + $0x768] sm:$0xff]  ;;  %v413_v59 = vld [vmem:[%s5049_s24 + $0x758] sm:$0xff] }
 0x1bf   : > { %2682 = vmatprep.mubr.bf16.mxu1 %v3971_v7  ;;  %3260 = vmatprep.mubr.bf16.mxu0 %v3975_v8  ;;  %v4035_v7 = vcombine.high %v371_v0, %v375_v2  ;;  %v4039_v8 = vcombine.high %v373_v3, %v377_v4  ;;  %v417_v60 = vld [vmem:[%s5049_s24 + $0x778] sm:$0xff] }
 0x1c6   : > { %2683 = vmatmul.mubr.bf16.gmra.mrb[64].mxu1 %v3970_v13  ;;  %3261 = vmatmul.mubr.bf16.gmra.mrb[64].mxu0 %v3974_v14  ;;  %v4034_v13 = vcombine.low %v371_v0, %v375_v2  ;;  %v4038_v14 = vcombine.low %v373_v3, %v377_v4  ;;  %v4066_v0 = vcombine.low %v403_v34, %v407_v35 }
 0x1c7   : > { %2690 = vmatprep.mubr.bf16.mxu1 %v3979_v15  ;;  %3268 = vmatprep.mubr.bf16.mxu0 %v3983_v16  ;;  %v4043_v15 = vcombine.high %v379_v9, %v383_v10  ;;  %v4047_v16 = vcombine.high %v381_v11, %v385_v12 }
 0x1ce   : > { %2691 = vmatmul.mubr.bf16.gmra.mrb[68].mxu1 %v3978_v21  ;;  %3269 = vmatmul.mubr.bf16.gmra.mrb[68].mxu0 %v3982_v22  ;;  %v4042_v21 = vcombine.low %v379_v9, %v383_v10  ;;  %v4046_v22 = vcombine.low %v381_v11, %v385_v12  ;;  %v4079_v10 = vcombine.high %v413_v59, %v417_v60 }
 0x1cf   : > { %2698 = vmatprep.mubr.bf16.mxu1 %v3987_v23  ;;  %3276 = vmatprep.mubr.bf16.mxu0 %v3991_v24  ;;  %v4051_v23 = vcombine.high %v387_v17, %v391_v18  ;;  %v4055_v24 = vcombine.high %v389_v19, %v393_v20 }
 0x1d6   : > { %2699 = vmatmul.mubr.bf16.gmra.mrb[72].mxu1 %v3986_v29  ;;  %3277 = vmatmul.mubr.bf16.gmra.mrb[72].mxu0 %v3990_v30  ;;  %v4050_v29 = vcombine.low %v387_v17, %v391_v18  ;;  %v4054_v30 = vcombine.low %v389_v19, %v393_v20  ;;  %v421_v18 = vld [vmem:[%s5049_s24 + $0x798] sm:$0xff] }
 0x1d7   : > { %2706 = vmatprep.mubr.bf16.mxu1 %v3995_v31  ;;  %3284 = vmatprep.mubr.bf16.mxu0 %v3999_v32  ;;  %v4059_v31 = vcombine.high %v395_v25, %v399_v26  ;;  %v4063_v32 = vcombine.high %v397_v27, %v401_v28  ;;  %v425_v19 = vld [vmem:[%s5049_s24 + $0x7b8] sm:$0xff] }
 0x1de   : > { %2707 = vmatmul.mubr.bf16.gmra.mrb[76].mxu1 %v3994_v37  ;;  %3285 = vmatmul.mubr.bf16.gmra.mrb[76].mxu0 %v3998_v38  ;;  %v405_v37 = vld [vmem:[%s5049_s24 + $0x718] sm:$0xff] }
 0x1df   : > { %2714 = vmatprep.mubr.bf16.mxu1 %v4003_v39  ;;  %3292 = vmatprep.mubr.bf16.mxu0 %v4007_v40  ;;  %v409_v38 = vld [vmem:[%s5049_s24 + $0x738] sm:$0xff] }
 0x1e0   : > { %v4071_v51 = vcombine.high %v405_v37, %v409_v38  ;;  %v4070_v4 = vcombine.low %v405_v37, %v409_v38 }
 0x1e6   : > { %2715 = vmatmul.mubr.bf16.gmra.mrb[80].mxu1 %v4002_v45  ;;  %3293 = vmatmul.mubr.bf16.gmra.mrb[80].mxu0 %v4006_v46  ;;  %v4062_v45 = vcombine.low %v397_v27, %v401_v28  ;;  %v4067_v46 = vcombine.high %v403_v34, %v407_v35  ;;  %v4078_v27 = vcombine.low %v413_v59, %v417_v60 }
 0x1e7   : > { %2722 = vmatprep.mubr.bf16.mxu1 %v4011_v47  ;;  %3300 = vmatprep.mubr.bf16.mxu0 %v4015_v48  ;;  %v4087_v34 = vcombine.high %v421_v18, %v425_v19 }
 0x1ee   : > { %2723 = vmatmul.mubr.bf16.gmra.mrb[84].mxu1 %v4010_v53  ;;  %3301 = vmatmul.mubr.bf16.gmra.mrb[84].mxu0 %v4014_v54 }
 0x1ef   : > { %2730 = vmatprep.mubr.bf16.mxu1 %v4019_v55  ;;  %3308 = vmatprep.mubr.bf16.mxu0 %v4023_v56  ;;  %v411_v56 = vld [vmem:[%s5049_s24 + $0x748] sm:$0xff] }
 0x1f6   : > { %2731 = vmatmul.mubr.bf16.gmra.mrb[88].mxu1 %v4018_v61  ;;  %3309 = vmatmul.mubr.bf16.gmra.mrb[88].mxu0 %v4022_v62 }
 0x1f7   : > { %2738 = vmatprep.mubr.bf16.mxu1 %v4027_v1  ;;  %3316 = vmatprep.mubr.bf16.mxu0 %v4031_v63 }
 0x1fe   : > { %2739 = vmatmul.mubr.bf16.gmra.mrb[92].mxu1 %v4026_v5  ;;  %3317 = vmatmul.mubr.bf16.gmra.mrb[92].mxu0 %v4030_v6  ;;  %v4075_v5 = vcombine.high %v411_v56, %v415_v57 }
 0x1ff   : > { %2746 = vmatprep.mubr.bf16.mxu1 %v4035_v7  ;;  %3324 = vmatprep.mubr.bf16.mxu0 %v4039_v8 }
 0x206   : > { %2747 = vmatmul.mubr.bf16.gmra.mrb[96].mxu1 %v4034_v13  ;;  %3325 = vmatmul.mubr.bf16.gmra.mrb[96].mxu0 %v4038_v14 }
 0x207   : > { %2754 = vmatprep.mubr.bf16.mxu1 %v4043_v15  ;;  %3332 = vmatprep.mubr.bf16.mxu0 %v4047_v16  ;;  %v419_v15 = vld [vmem:[%s5049_s24 + $0x788] sm:$0xff] }
 0x208   : > { %v423_v16 = vld [vmem:[%s5049_s24 + $0x7a8] sm:$0xff] }
 0x209   : > { %v4083_v28 = vcombine.high %v419_v15, %v423_v16 }
 0x20e   : > { %2755 = vmatmul.mubr.bf16.gmra.mrb[100].mxu1 %v4042_v21  ;;  %3333 = vmatmul.mubr.bf16.gmra.mrb[100].mxu0 %v4046_v22 }
 0x20f   : > { %2762 = vmatprep.mubr.bf16.mxu1 %v4051_v23  ;;  %3340 = vmatprep.mubr.bf16.mxu0 %v4055_v24  ;;  %v4074_v24 = vcombine.low %v411_v56, %v415_v57 }
 0x216   : > { %2763 = vmatmul.mubr.bf16.gmra.mrb[104].mxu1 %v4050_v29  ;;  %3341 = vmatmul.mubr.bf16.gmra.mrb[104].mxu0 %v4054_v30 }
 0x217   : > { %2770 = vmatprep.mubr.bf16.mxu1 %v4059_v31  ;;  %3348 = vmatprep.mubr.bf16.mxu0 %v4063_v32 }
 0x219   : > { %v2556_v36 = vpop.f32.mrb[0].mxu1  ;;  %v3134_v40 = vpop.f32.mrb[0].mxu0 }
 0x21a   : > { %v4482_v39 = vadd.f32 %v5502_v33, %v2556_v36  ;;  %v2558_v41 = vpop.f32.mrb[1].mxu1  ;;  %v3136_v43 = vpop.f32.mrb[1].mxu0 }
 0x21b   : > { %v2559_v44 = vpop.f32.mrb[2].mxu1  ;;  %v3137_v49 = vpop.f32.mrb[2].mxu0  ;;  %v433_v43 = vld [vmem:[%s5049_s24 + $0x7f8] sm:$0xff] }
 0x21c   : > { %v4483_v47 = vadd.f32 %v4482_v39, %v3134_v40  ;;  %v4484_v48 = vadd.f32 %v5502_v33, %v2559_v44  ;;  %v2561_v50 = vpop.f32.mrb[3].mxu1  ;;  %v3139_v52 = vpop.f32.mrb[3].mxu0  ;;  %v427_v39 = vld [vmem:[%s5049_s24 + $0x7c8] sm:$0xff] }
 0x21d   : > { %v431_v40 = vld [vmem:[%s5049_s24 + $0x7e8] sm:$0xff] }
 0x21e   : > { %v4485_v53 = vadd.f32 %v4484_v48, %v3137_v49  ;;  %2771 = vmatmul.mubr.bf16.gmra.mrb[108].mxu1 %v4058_v42  ;;  %3349 = vmatmul.mubr.bf16.gmra.mrb[108].mxu0 %v4062_v45  ;;  %v3389_v54 = vmax.f32 %v4483_v47, 0.0  ;;  %v429_v42 = vld [vmem:[%s5049_s24 + $0x7d8] sm:$0xff]  ;;  %v4082_v48 = vcombine.low %v419_v15, %v423_v16  ;;  %v4091_v52 = vcombine.high %v427_v39, %v431_v40 }
 0x21f   : > { %2778 = vmatprep.mubr.bf16.mxu1 %v4067_v46  ;;  %3356 = vmatprep.mubr.bf16.mxu0 %v4071_v51  ;;  %v4086_v51 = vcombine.low %v421_v18, %v425_v19  ;;  %v4095_v57 = vcombine.high %v429_v42, %v433_v43 }
 0x220   : > { %v3390_v55 = vmax.f32 %v4485_v53, 0.0 }
 0x221   : > { %v2564_v58 = vpop.f32.mrb[4].mxu1  ;;  %v3142_v1 = vpop.f32.mrb[4].mxu0 }
 0x222   : > { %v4294_v61 = vpack.c.bf16 %v3390_v55, %v3389_v54  ;;  %v4486_v62 = vadd.f32 %v5502_v33, %v2564_v58  ;;  %v2566_v63 = vpop.f32.mrb[5].mxu1  ;;  %v3144_v2 = vpop.f32.mrb[5].mxu0 }
 0x223   : > { %v2567_v3 = vpop.f32.mrb[6].mxu1  ;;  %v3145_v8 = vpop.f32.mrb[6].mxu0 }
 0x224   : > { %4295 = vst [vmem:[%s5516_s30] sm:$0xff] %v4294_v61   ;;  %v4487_v6 = vadd.f32 %v4486_v62, %v3142_v1  ;;  %v4488_v7 = vadd.f32 %v5502_v33, %v2567_v3  ;;  %v2569_v9 = vpop.f32.mrb[7].mxu1  ;;  %v3147_v11 = vpop.f32.mrb[7].mxu0  ;;  %v4090_v3 = vcombine.low %v427_v39, %v431_v40 }
 0x226   : > { %v4489_v12 = vadd.f32 %v4488_v7, %v3145_v8  ;;  %2779 = vmatmul.mubr.bf16.gmra.mrb[112].mxu1 %v4066_v0  ;;  %3357 = vmatmul.mubr.bf16.gmra.mrb[112].mxu0 %v4070_v4  ;;  %v3391_v13 = vmax.f32 %v4487_v6, 0.0  ;;  %v4094_v6 = vcombine.low %v429_v42, %v433_v43 }
 0x227   : > { %2786 = vmatprep.mubr.bf16.mxu1 %v4075_v5  ;;  %3364 = vmatprep.mubr.bf16.mxu0 %v4079_v10 }
 0x228   : > { %v3392_v14 = vmax.f32 %v4489_v12, 0.0 }
 0x229   : > { %v2572_v17 = vpop.f32.mrb[8].mxu1  ;;  %v3150_v22 = vpop.f32.mrb[8].mxu0 }
 0x22a   : > { %v4299_v20 = vpack.c.bf16 %v3392_v14, %v3391_v13  ;;  %v4490_v21 = vadd.f32 %v5502_v33, %v2572_v17  ;;  %v2574_v23 = vpop.f32.mrb[9].mxu1  ;;  %v3152_v25 = vpop.f32.mrb[9].mxu0 }
 0x22b   : > { %v2575_v26 = vpop.f32.mrb[10].mxu1  ;;  %v3153_v31 = vpop.f32.mrb[10].mxu0 }
 0x22c   : > { %4451 = vst [vmem:[%s5516_s30 + $0x8] sm:$0xff] %v4299_v20   ;;  %v4491_v29 = vadd.f32 %v4490_v21, %v3150_v22  ;;  %v4492_v30 = vadd.f32 %v5502_v33, %v2575_v26  ;;  %v2577_v32 = vpop.f32.mrb[11].mxu1  ;;  %v3155_v35 = vpop.f32.mrb[11].mxu0 }
 0x22e   : > { %v4493_v36 = vadd.f32 %v4492_v30, %v3153_v31  ;;  %2787 = vmatmul.mubr.bf16.gmra.mrb[116].mxu1 %v4074_v24  ;;  %3365 = vmatmul.mubr.bf16.gmra.mrb[116].mxu0 %v4078_v27  ;;  %v3393_v37 = vmax.f32 %v4491_v29, 0.0 }
 0x22f   : > { %2794 = vmatprep.mubr.bf16.mxu1 %v4083_v28  ;;  %3372 = vmatprep.mubr.bf16.mxu0 %v4087_v34 }
 0x230   : > { %v3394_v38 = vmax.f32 %v4493_v36, 0.0 }
 0x231   : > { %v2580_v41 = vpop.f32.mrb[12].mxu1  ;;  %v3158_v46 = vpop.f32.mrb[12].mxu0 }
 0x232   : > { %v4304_v44 = vpack.c.bf16 %v3394_v38, %v3393_v37  ;;  %v4494_v45 = vadd.f32 %v5502_v33, %v2580_v41  ;;  %v2582_v47 = vpop.f32.mrb[13].mxu1  ;;  %v3160_v49 = vpop.f32.mrb[13].mxu0 }
 0x233   : > { %v2583_v50 = vpop.f32.mrb[14].mxu1  ;;  %v3161_v55 = vpop.f32.mrb[14].mxu0 }
 0x234   : > { %4452 = vst [vmem:[%s5516_s30 + $0x10] sm:$0xff] %v4304_v44   ;;  %v4495_v53 = vadd.f32 %v4494_v45, %v3158_v46  ;;  %v4496_v54 = vadd.f32 %v5502_v33, %v2583_v50  ;;  %v2585_v56 = vpop.f32.mrb[15].mxu1  ;;  %v3163_v58 = vpop.f32.mrb[15].mxu0 }
 0x236   : > { %v4497_v59 = vadd.f32 %v4496_v54, %v3161_v55  ;;  %2795 = vmatmul.mubr.bf16.gmra.mrb[120].mxu1 %v4082_v48  ;;  %3373 = vmatmul.mubr.bf16.gmra.mrb[120].mxu0 %v4086_v51  ;;  %v3395_v60 = vmax.f32 %v4495_v53, 0.0 }
 0x237   : > { %2802 = vmatprep.mubr.bf16.mxu1 %v4091_v52  ;;  %3380 = vmatprep.mubr.bf16.mxu0 %v4095_v57 }
 0x238   : > { %v3396_v61 = vmax.f32 %v4497_v59, 0.0 }
 0x239   : > { %v2588_v62 = vpop.f32.mrb[16].mxu1  ;;  %v3166_v0 = vpop.f32.mrb[16].mxu0 }
 0x23a   : > { %v4309_v1 = vpack.c.bf16 %v3396_v61, %v3395_v60  ;;  %v4498_v63 = vadd.f32 %v5502_v33, %v2588_v62  ;;  %v2590_v2 = vpop.f32.mrb[17].mxu1  ;;  %v3168_v4 = vpop.f32.mrb[17].mxu0 }
 0x23b   : > { %v2591_v5 = vpop.f32.mrb[18].mxu1  ;;  %v3169_v9 = vpop.f32.mrb[18].mxu0 }
 0x23c   : > { %4453 = vst [vmem:[%s5516_s30 + $0x18] sm:$0xff] %v4309_v1   ;;  %v4499_v7 = vadd.f32 %v4498_v63, %v3166_v0  ;;  %v4500_v8 = vadd.f32 %v5502_v33, %v2591_v5  ;;  %v2593_v10 = vpop.f32.mrb[19].mxu1  ;;  %v3171_v11 = vpop.f32.mrb[19].mxu0 }
 0x23e   : > { %v4501_v12 = vadd.f32 %v4500_v8, %v3169_v9  ;;  %2803 = vmatmul.mubr.bf16.gmra.mrb[124].mxu1 %v4090_v3  ;;  %3381 = vmatmul.mubr.bf16.gmra.mrb[124].mxu0 %v4094_v6  ;;  %v3397_v13 = vmax.f32 %v4499_v7, 0.0 }
 0x240   : > { %v3398_v14 = vmax.f32 %v4501_v12, 0.0 }
 0x241   : > { %v2596_v15 = vpop.f32.mrb[20].mxu1  ;;  %v3174_v18 = vpop.f32.mrb[20].mxu0 }
 0x242   : > { %v4314_v16 = vpack.c.bf16 %v3398_v14, %v3397_v13  ;;  %v4502_v17 = vadd.f32 %v5502_v33, %v2596_v15  ;;  %v2598_v19 = vpop.f32.mrb[21].mxu1  ;;  %v3176_v20 = vpop.f32.mrb[21].mxu0 }
 0x243   : > { %v2599_v21 = vpop.f32.mrb[22].mxu1  ;;  %v3177_v24 = vpop.f32.mrb[22].mxu0 }
 0x244   : > { %4454 = vst [vmem:[%s5516_s30 + $0x20] sm:$0xff] %v4314_v16   ;;  %v4503_v22 = vadd.f32 %v4502_v17, %v3174_v18  ;;  %v4504_v23 = vadd.f32 %v5502_v33, %v2599_v21  ;;  %v2601_v25 = vpop.f32.mrb[23].mxu1  ;;  %v3179_v26 = vpop.f32.mrb[23].mxu0 }
 0x246   : > { %v4505_v27 = vadd.f32 %v4504_v23, %v3177_v24  ;;  %v3399_v28 = vmax.f32 %v4503_v22, 0.0 }
 0x248   : > { %v3400_v29 = vmax.f32 %v4505_v27, 0.0 }
 0x249   : > { %v2604_v30 = vpop.f32.mrb[24].mxu1  ;;  %v3182_v34 = vpop.f32.mrb[24].mxu0 }
 0x24a   : > { %v4319_v31 = vpack.c.bf16 %v3400_v29, %v3399_v28  ;;  %v4506_v32 = vadd.f32 %v5502_v33, %v2604_v30  ;;  %v2606_v35 = vpop.f32.mrb[25].mxu1  ;;  %v3184_v36 = vpop.f32.mrb[25].mxu0 }
 0x24b   : > { %v2607_v37 = vpop.f32.mrb[26].mxu1  ;;  %v3185_v40 = vpop.f32.mrb[26].mxu0 }
 0x24c   : > { %4455 = vst [vmem:[%s5516_s30 + $0x28] sm:$0xff] %v4319_v31   ;;  %v4507_v38 = vadd.f32 %v4506_v32, %v3182_v34  ;;  %v4508_v39 = vadd.f32 %v5502_v33, %v2607_v37  ;;  %v2609_v41 = vpop.f32.mrb[27].mxu1  ;;  %v3187_v42 = vpop.f32.mrb[27].mxu0 }
 0x24e   : > { %v4509_v43 = vadd.f32 %v4508_v39, %v3185_v40  ;;  %v3401_v44 = vmax.f32 %v4507_v38, 0.0 }
 0x250   : > { %v3402_v45 = vmax.f32 %v4509_v43, 0.0 }
 0x251   : > { %v2612_v46 = vpop.f32.mrb[28].mxu1  ;;  %v3190_v49 = vpop.f32.mrb[28].mxu0 }
 0x252   : > { %v4324_v47 = vpack.c.bf16 %v3402_v45, %v3401_v44  ;;  %v4510_v48 = vadd.f32 %v5502_v33, %v2612_v46  ;;  %v2614_v50 = vpop.f32.mrb[29].mxu1  ;;  %v3192_v51 = vpop.f32.mrb[29].mxu0 }
 0x253   : > { %v2615_v52 = vpop.f32.mrb[30].mxu1  ;;  %v3193_v55 = vpop.f32.mrb[30].mxu0 }
 0x254   : > { %4456 = vst [vmem:[%s5516_s30 + $0x30] sm:$0xff] %v4324_v47   ;;  %v4511_v53 = vadd.f32 %v4510_v48, %v3190_v49  ;;  %v4512_v54 = vadd.f32 %v5502_v33, %v2615_v52  ;;  %v2617_v56 = vpop.f32.mrb[31].mxu1  ;;  %v3195_v57 = vpop.f32.mrb[31].mxu0 }
 0x256   : > { %v4513_v58 = vadd.f32 %v4512_v54, %v3193_v55  ;;  %v3403_v59 = vmax.f32 %v4511_v53, 0.0 }
 0x258   : > { %v3404_v60 = vmax.f32 %v4513_v58, 0.0 }
 0x259   : > { %v2620_v61 = vpop.f32.mrb[32].mxu1  ;;  %v3198_v63 = vpop.f32.mrb[32].mxu0 }
 0x25a   : > { %v4329_v62 = vpack.c.bf16 %v3404_v60, %v3403_v59  ;;  %v4514_v1 = vadd.f32 %v5502_v33, %v2620_v61  ;;  %v2622_v0 = vpop.f32.mrb[33].mxu1  ;;  %v3200_v2 = vpop.f32.mrb[33].mxu0 }
 0x25b   : > { %v2623_v3 = vpop.f32.mrb[34].mxu1  ;;  %v3201_v6 = vpop.f32.mrb[34].mxu0 }
 0x25c   : > { %4457 = vst [vmem:[%s5516_s30 + $0x38] sm:$0xff] %v4329_v62   ;;  %v4515_v4 = vadd.f32 %v4514_v1, %v3198_v63  ;;  %v4516_v5 = vadd.f32 %v5502_v33, %v2623_v3  ;;  %v2625_v7 = vpop.f32.mrb[35].mxu1  ;;  %v3203_v8 = vpop.f32.mrb[35].mxu0 }
 0x25e   : > { %v4517_v9 = vadd.f32 %v4516_v5, %v3201_v6  ;;  %v3405_v10 = vmax.f32 %v4515_v4, 0.0 }
 0x260   : > { %v3406_v11 = vmax.f32 %v4517_v9, 0.0 }
 0x261   : > { %v2628_v12 = vpop.f32.mrb[36].mxu1  ;;  %v3206_v15 = vpop.f32.mrb[36].mxu0 }
 0x262   : > { %v4334_v13 = vpack.c.bf16 %v3406_v11, %v3405_v10  ;;  %v4518_v14 = vadd.f32 %v5502_v33, %v2628_v12  ;;  %v2630_v16 = vpop.f32.mrb[37].mxu1  ;;  %v3208_v17 = vpop.f32.mrb[37].mxu0 }
 0x263   : > { %v2631_v18 = vpop.f32.mrb[38].mxu1  ;;  %v3209_v21 = vpop.f32.mrb[38].mxu0 }
 0x264   : > { %4458 = vst [vmem:[%s5516_s30 + $0x40] sm:$0xff] %v4334_v13   ;;  %v4519_v19 = vadd.f32 %v4518_v14, %v3206_v15  ;;  %v4520_v20 = vadd.f32 %v5502_v33, %v2631_v18  ;;  %v2633_v22 = vpop.f32.mrb[39].mxu1  ;;  %v3211_v23 = vpop.f32.mrb[39].mxu0 }
 0x266   : > { %v4521_v24 = vadd.f32 %v4520_v20, %v3209_v21  ;;  %v3407_v25 = vmax.f32 %v4519_v19, 0.0 }
 0x268   : > { %v3408_v26 = vmax.f32 %v4521_v24, 0.0 }
 0x269   : > { %v2636_v27 = vpop.f32.mrb[40].mxu1  ;;  %v3214_v30 = vpop.f32.mrb[40].mxu0 }
 0x26a   : > { %v4339_v28 = vpack.c.bf16 %v3408_v26, %v3407_v25  ;;  %v4522_v29 = vadd.f32 %v5502_v33, %v2636_v27  ;;  %v2638_v31 = vpop.f32.mrb[41].mxu1  ;;  %v3216_v32 = vpop.f32.mrb[41].mxu0 }
 0x26b   : > { %v2639_v34 = vpop.f32.mrb[42].mxu1  ;;  %v3217_v37 = vpop.f32.mrb[42].mxu0 }
 0x26c   : > { %4459 = vst [vmem:[%s5516_s30 + $0x48] sm:$0xff] %v4339_v28   ;;  %v4523_v35 = vadd.f32 %v4522_v29, %v3214_v30  ;;  %v4524_v36 = vadd.f32 %v5502_v33, %v2639_v34  ;;  %v2641_v38 = vpop.f32.mrb[43].mxu1  ;;  %v3219_v39 = vpop.f32.mrb[43].mxu0 }
 0x26e   : > { %v4525_v40 = vadd.f32 %v4524_v36, %v3217_v37  ;;  %v3409_v41 = vmax.f32 %v4523_v35, 0.0 }
 0x270   : > { %v3410_v42 = vmax.f32 %v4525_v40, 0.0 }
 0x271   : > { %v2644_v43 = vpop.f32.mrb[44].mxu1  ;;  %v3222_v46 = vpop.f32.mrb[44].mxu0 }
 0x272   : > { %v4344_v44 = vpack.c.bf16 %v3410_v42, %v3409_v41  ;;  %v4526_v45 = vadd.f32 %v5502_v33, %v2644_v43  ;;  %v2646_v47 = vpop.f32.mrb[45].mxu1  ;;  %v3224_v48 = vpop.f32.mrb[45].mxu0 }
 0x273   : > { %v2647_v49 = vpop.f32.mrb[46].mxu1  ;;  %v3225_v52 = vpop.f32.mrb[46].mxu0 }
 0x274   : > { %4460 = vst [vmem:[%s5516_s30 + $0x50] sm:$0xff] %v4344_v44   ;;  %v4527_v50 = vadd.f32 %v4526_v45, %v3222_v46  ;;  %v4528_v51 = vadd.f32 %v5502_v33, %v2647_v49  ;;  %v2649_v53 = vpop.f32.mrb[47].mxu1  ;;  %v3227_v54 = vpop.f32.mrb[47].mxu0 }
 0x276   : > { %v4529_v55 = vadd.f32 %v4528_v51, %v3225_v52  ;;  %v3411_v56 = vmax.f32 %v4527_v50, 0.0 }
 0x278   : > { %v3412_v57 = vmax.f32 %v4529_v55, 0.0 }
 0x279   : > { %v2652_v58 = vpop.f32.mrb[48].mxu1  ;;  %v3230_v61 = vpop.f32.mrb[48].mxu0 }
 0x27a   : > { %v4349_v59 = vpack.c.bf16 %v3412_v57, %v3411_v56  ;;  %v4530_v60 = vadd.f32 %v5502_v33, %v2652_v58  ;;  %v2654_v62 = vpop.f32.mrb[49].mxu1  ;;  %v3232_v1 = vpop.f32.mrb[49].mxu0 }
 0x27b   : > { %v2655_v63 = vpop.f32.mrb[50].mxu1  ;;  %v3233_v3 = vpop.f32.mrb[50].mxu0 }
 0x27c   : > { %4461 = vst [vmem:[%s5516_s30 + $0x58] sm:$0xff] %v4349_v59   ;;  %v4531_v0 = vadd.f32 %v4530_v60, %v3230_v61  ;;  %v4532_v2 = vadd.f32 %v5502_v33, %v2655_v63  ;;  %v2657_v4 = vpop.f32.mrb[51].mxu1  ;;  %v3235_v5 = vpop.f32.mrb[51].mxu0 }
 0x27e   : > { %v4533_v6 = vadd.f32 %v4532_v2, %v3233_v3  ;;  %v3413_v7 = vmax.f32 %v4531_v0, 0.0 }
 0x280   : > { %v3414_v8 = vmax.f32 %v4533_v6, 0.0 }
 0x281   : > { %v2660_v9 = vpop.f32.mrb[52].mxu1  ;;  %v3238_v12 = vpop.f32.mrb[52].mxu0 }
 0x282   : > { %v4354_v10 = vpack.c.bf16 %v3414_v8, %v3413_v7  ;;  %v4534_v11 = vadd.f32 %v5502_v33, %v2660_v9  ;;  %v2662_v13 = vpop.f32.mrb[53].mxu1  ;;  %v3240_v14 = vpop.f32.mrb[53].mxu0 }
 0x283   : > { %v2663_v15 = vpop.f32.mrb[54].mxu1  ;;  %v3241_v18 = vpop.f32.mrb[54].mxu0 }
 0x284   : > { %4462 = vst [vmem:[%s5516_s30 + $0x60] sm:$0xff] %v4354_v10   ;;  %v4535_v16 = vadd.f32 %v4534_v11, %v3238_v12  ;;  %v4536_v17 = vadd.f32 %v5502_v33, %v2663_v15  ;;  %v2665_v19 = vpop.f32.mrb[55].mxu1  ;;  %v3243_v20 = vpop.f32.mrb[55].mxu0 }
 0x286   : > { %v4537_v21 = vadd.f32 %v4536_v17, %v3241_v18  ;;  %v3415_v22 = vmax.f32 %v4535_v16, 0.0 }
 0x288   : > { %v3416_v23 = vmax.f32 %v4537_v21, 0.0 }
 0x289   : > { %v2668_v24 = vpop.f32.mrb[56].mxu1  ;;  %v3246_v27 = vpop.f32.mrb[56].mxu0 }
 0x28a   : > { %v4359_v25 = vpack.c.bf16 %v3416_v23, %v3415_v22  ;;  %v4538_v26 = vadd.f32 %v5502_v33, %v2668_v24  ;;  %v2670_v28 = vpop.f32.mrb[57].mxu1  ;;  %v3248_v29 = vpop.f32.mrb[57].mxu0 }
 0x28b   : > { %v2671_v30 = vpop.f32.mrb[58].mxu1  ;;  %v3249_v34 = vpop.f32.mrb[58].mxu0 }
 0x28c   : > { %4463 = vst [vmem:[%s5516_s30 + $0x68] sm:$0xff] %v4359_v25   ;;  %v4539_v31 = vadd.f32 %v4538_v26, %v3246_v27  ;;  %v4540_v32 = vadd.f32 %v5502_v33, %v2671_v30  ;;  %v2673_v35 = vpop.f32.mrb[59].mxu1  ;;  %v3251_v36 = vpop.f32.mrb[59].mxu0 }
 0x28e   : > { %v4541_v37 = vadd.f32 %v4540_v32, %v3249_v34  ;;  %v3417_v38 = vmax.f32 %v4539_v31, 0.0 }
 0x290   : > { %v3418_v39 = vmax.f32 %v4541_v37, 0.0 }
 0x291   : > { %v2676_v40 = vpop.f32.mrb[60].mxu1  ;;  %v3254_v43 = vpop.f32.mrb[60].mxu0 }
 0x292   : > { %v4364_v41 = vpack.c.bf16 %v3418_v39, %v3417_v38  ;;  %v4542_v42 = vadd.f32 %v5502_v33, %v2676_v40  ;;  %v2678_v44 = vpop.f32.mrb[61].mxu1  ;;  %v3256_v45 = vpop.f32.mrb[61].mxu0 }
 0x293   : > { %v2679_v46 = vpop.f32.mrb[62].mxu1  ;;  %v3257_v49 = vpop.f32.mrb[62].mxu0 }
 0x294   : > { %4464 = vst [vmem:[%s5516_s30 + $0x70] sm:$0xff] %v4364_v41   ;;  %v4543_v47 = vadd.f32 %v4542_v42, %v3254_v43  ;;  %v4544_v48 = vadd.f32 %v5502_v33, %v2679_v46  ;;  %v2681_v50 = vpop.f32.mrb[63].mxu1  ;;  %v3259_v51 = vpop.f32.mrb[63].mxu0 }
 0x296   : > { %v4545_v52 = vadd.f32 %v4544_v48, %v3257_v49  ;;  %v3419_v53 = vmax.f32 %v4543_v47, 0.0 }
 0x298   : > { %v3420_v54 = vmax.f32 %v4545_v52, 0.0 }
 0x299   : > { %v2684_v55 = vpop.f32.mrb[64].mxu1  ;;  %v3262_v58 = vpop.f32.mrb[64].mxu0 }
 0x29a   : > { %v4369_v56 = vpack.c.bf16 %v3420_v54, %v3419_v53  ;;  %v4546_v57 = vadd.f32 %v5502_v33, %v2684_v55  ;;  %v2686_v59 = vpop.f32.mrb[65].mxu1  ;;  %v3264_v60 = vpop.f32.mrb[65].mxu0 }
 0x29b   : > { %v2687_v61 = vpop.f32.mrb[66].mxu1  ;;  %v3265_v63 = vpop.f32.mrb[66].mxu0 }
 0x29c   : > { %4465 = vst [vmem:[%s5516_s30 + $0x78] sm:$0xff] %v4369_v56   ;;  %v4547_v62 = vadd.f32 %v4546_v57, %v3262_v58  ;;  %v4548_v1 = vadd.f32 %v5502_v33, %v2687_v61  ;;  %v2689_v0 = vpop.f32.mrb[67].mxu1  ;;  %v3267_v2 = vpop.f32.mrb[67].mxu0 }
 0x29e   : > { %v4549_v3 = vadd.f32 %v4548_v1, %v3265_v63  ;;  %v3421_v4 = vmax.f32 %v4547_v62, 0.0 }
 0x2a0   : > { %v3422_v5 = vmax.f32 %v4549_v3, 0.0 }
 0x2a1   : > { %v2692_v6 = vpop.f32.mrb[68].mxu1  ;;  %v3270_v9 = vpop.f32.mrb[68].mxu0 }
 0x2a2   : > { %v4374_v7 = vpack.c.bf16 %v3422_v5, %v3421_v4  ;;  %v4550_v8 = vadd.f32 %v5502_v33, %v2692_v6  ;;  %v2694_v10 = vpop.f32.mrb[69].mxu1  ;;  %v3272_v11 = vpop.f32.mrb[69].mxu0 }
 0x2a3   : > { %v2695_v12 = vpop.f32.mrb[70].mxu1  ;;  %v3273_v15 = vpop.f32.mrb[70].mxu0 }
 0x2a4   : > { %4466 = vst [vmem:[%s5516_s30 + $0x80] sm:$0xff] %v4374_v7   ;;  %v4551_v13 = vadd.f32 %v4550_v8, %v3270_v9  ;;  %v4552_v14 = vadd.f32 %v5502_v33, %v2695_v12  ;;  %v2697_v16 = vpop.f32.mrb[71].mxu1  ;;  %v3275_v17 = vpop.f32.mrb[71].mxu0 }
 0x2a6   : > { %v4553_v18 = vadd.f32 %v4552_v14, %v3273_v15  ;;  %v3423_v19 = vmax.f32 %v4551_v13, 0.0 }
 0x2a8   : > { %v3424_v20 = vmax.f32 %v4553_v18, 0.0 }
 0x2a9   : > { %v2700_v21 = vpop.f32.mrb[72].mxu1  ;;  %v3278_v24 = vpop.f32.mrb[72].mxu0 }
 0x2aa   : > { %v4379_v22 = vpack.c.bf16 %v3424_v20, %v3423_v19  ;;  %v4554_v23 = vadd.f32 %v5502_v33, %v2700_v21  ;;  %v2702_v25 = vpop.f32.mrb[73].mxu1  ;;  %v3280_v26 = vpop.f32.mrb[73].mxu0 }
 0x2ab   : > { %v2703_v27 = vpop.f32.mrb[74].mxu1  ;;  %v3281_v30 = vpop.f32.mrb[74].mxu0 }
 0x2ac   : > { %4467 = vst [vmem:[%s5516_s30 + $0x88] sm:$0xff] %v4379_v22   ;;  %v4555_v28 = vadd.f32 %v4554_v23, %v3278_v24  ;;  %v4556_v29 = vadd.f32 %v5502_v33, %v2703_v27  ;;  %v2705_v31 = vpop.f32.mrb[75].mxu1  ;;  %v3283_v32 = vpop.f32.mrb[75].mxu0 }
 0x2ae   : > { %v4557_v34 = vadd.f32 %v4556_v29, %v3281_v30  ;;  %v3425_v35 = vmax.f32 %v4555_v28, 0.0 }
 0x2b0   : > { %v3426_v36 = vmax.f32 %v4557_v34, 0.0 }
 0x2b1   : > { %v2708_v37 = vpop.f32.mrb[76].mxu1  ;;  %v3286_v40 = vpop.f32.mrb[76].mxu0 }
 0x2b2   : > { %v4384_v38 = vpack.c.bf16 %v3426_v36, %v3425_v35  ;;  %v4558_v39 = vadd.f32 %v5502_v33, %v2708_v37  ;;  %v2710_v41 = vpop.f32.mrb[77].mxu1  ;;  %v3288_v42 = vpop.f32.mrb[77].mxu0 }
 0x2b3   : > { %v2711_v43 = vpop.f32.mrb[78].mxu1  ;;  %v3289_v46 = vpop.f32.mrb[78].mxu0 }
 0x2b4   : > { %4468 = vst [vmem:[%s5516_s30 + $0x90] sm:$0xff] %v4384_v38   ;;  %v4559_v44 = vadd.f32 %v4558_v39, %v3286_v40  ;;  %v4560_v45 = vadd.f32 %v5502_v33, %v2711_v43  ;;  %v2713_v47 = vpop.f32.mrb[79].mxu1  ;;  %v3291_v48 = vpop.f32.mrb[79].mxu0 }
 0x2b6   : > { %v4561_v49 = vadd.f32 %v4560_v45, %v3289_v46  ;;  %v3427_v50 = vmax.f32 %v4559_v44, 0.0 }
 0x2b8   : > { %v3428_v51 = vmax.f32 %v4561_v49, 0.0 }
 0x2b9   : > { %v2716_v52 = vpop.f32.mrb[80].mxu1  ;;  %v3294_v55 = vpop.f32.mrb[80].mxu0 }
 0x2ba   : > { %v4389_v53 = vpack.c.bf16 %v3428_v51, %v3427_v50  ;;  %v4562_v54 = vadd.f32 %v5502_v33, %v2716_v52  ;;  %v2718_v56 = vpop.f32.mrb[81].mxu1  ;;  %v3296_v57 = vpop.f32.mrb[81].mxu0 }
 0x2bb   : > { %v2719_v58 = vpop.f32.mrb[82].mxu1  ;;  %v3297_v61 = vpop.f32.mrb[82].mxu0 }
 0x2bc   : > { %4469 = vst [vmem:[%s5516_s30 + $0x98] sm:$0xff] %v4389_v53   ;;  %v4563_v59 = vadd.f32 %v4562_v54, %v3294_v55  ;;  %v4564_v60 = vadd.f32 %v5502_v33, %v2719_v58  ;;  %v2721_v62 = vpop.f32.mrb[83].mxu1  ;;  %v3299_v1 = vpop.f32.mrb[83].mxu0 }
 0x2be   : > { %v4565_v63 = vadd.f32 %v4564_v60, %v3297_v61  ;;  %v3429_v0 = vmax.f32 %v4563_v59, 0.0 }
 0x2c0   : > { %v3430_v2 = vmax.f32 %v4565_v63, 0.0 }
 0x2c1   : > { %v2724_v3 = vpop.f32.mrb[84].mxu1  ;;  %v3302_v6 = vpop.f32.mrb[84].mxu0 }
 0x2c2   : > { %v4394_v4 = vpack.c.bf16 %v3430_v2, %v3429_v0  ;;  %v4566_v5 = vadd.f32 %v5502_v33, %v2724_v3  ;;  %v2726_v7 = vpop.f32.mrb[85].mxu1  ;;  %v3304_v8 = vpop.f32.mrb[85].mxu0 }
 0x2c3   : > { %v2727_v9 = vpop.f32.mrb[86].mxu1  ;;  %v3305_v12 = vpop.f32.mrb[86].mxu0 }
 0x2c4   : > { %4470 = vst [vmem:[%s5516_s30 + $0xa0] sm:$0xff] %v4394_v4   ;;  %v4567_v10 = vadd.f32 %v4566_v5, %v3302_v6  ;;  %v4568_v11 = vadd.f32 %v5502_v33, %v2727_v9  ;;  %v2729_v13 = vpop.f32.mrb[87].mxu1  ;;  %v3307_v14 = vpop.f32.mrb[87].mxu0 }
 0x2c6   : > { %v4569_v15 = vadd.f32 %v4568_v11, %v3305_v12  ;;  %v3431_v16 = vmax.f32 %v4567_v10, 0.0 }
 0x2c8   : > { %v3432_v17 = vmax.f32 %v4569_v15, 0.0 }
 0x2c9   : > { %v2732_v18 = vpop.f32.mrb[88].mxu1  ;;  %v3310_v21 = vpop.f32.mrb[88].mxu0 }
 0x2ca   : > { %v4399_v19 = vpack.c.bf16 %v3432_v17, %v3431_v16  ;;  %v4570_v20 = vadd.f32 %v5502_v33, %v2732_v18  ;;  %v2734_v22 = vpop.f32.mrb[89].mxu1  ;;  %v3312_v23 = vpop.f32.mrb[89].mxu0 }
 0x2cb   : > { %v2735_v24 = vpop.f32.mrb[90].mxu1  ;;  %v3313_v27 = vpop.f32.mrb[90].mxu0 }
 0x2cc   : > { %4471 = vst [vmem:[%s5516_s30 + $0xa8] sm:$0xff] %v4399_v19   ;;  %v4571_v25 = vadd.f32 %v4570_v20, %v3310_v21  ;;  %v4572_v26 = vadd.f32 %v5502_v33, %v2735_v24  ;;  %v2737_v28 = vpop.f32.mrb[91].mxu1  ;;  %v3315_v29 = vpop.f32.mrb[91].mxu0 }
 0x2ce   : > { %v4573_v30 = vadd.f32 %v4572_v26, %v3313_v27  ;;  %v3433_v31 = vmax.f32 %v4571_v25, 0.0 }
 0x2d0   : > { %v3434_v32 = vmax.f32 %v4573_v30, 0.0 }
 0x2d1   : > { %v2740_v34 = vpop.f32.mrb[92].mxu1  ;;  %v3318_v37 = vpop.f32.mrb[92].mxu0 }
 0x2d2   : > { %v4404_v35 = vpack.c.bf16 %v3434_v32, %v3433_v31  ;;  %v4574_v36 = vadd.f32 %v5502_v33, %v2740_v34  ;;  %v2742_v38 = vpop.f32.mrb[93].mxu1  ;;  %v3320_v39 = vpop.f32.mrb[93].mxu0 }
 0x2d3   : > { %v2743_v40 = vpop.f32.mrb[94].mxu1  ;;  %v3321_v43 = vpop.f32.mrb[94].mxu0 }
 0x2d4   : > { %4472 = vst [vmem:[%s5516_s30 + $0xb0] sm:$0xff] %v4404_v35   ;;  %v4575_v41 = vadd.f32 %v4574_v36, %v3318_v37  ;;  %v4576_v42 = vadd.f32 %v5502_v33, %v2743_v40  ;;  %v2745_v44 = vpop.f32.mrb[95].mxu1  ;;  %v3323_v45 = vpop.f32.mrb[95].mxu0 }
 0x2d6   : > { %v4577_v46 = vadd.f32 %v4576_v42, %v3321_v43  ;;  %v3435_v47 = vmax.f32 %v4575_v41, 0.0 }
 0x2d8   : > { %v3436_v48 = vmax.f32 %v4577_v46, 0.0 }
 0x2d9   : > { %v2748_v49 = vpop.f32.mrb[96].mxu1  ;;  %v3326_v52 = vpop.f32.mrb[96].mxu0 }
 0x2da   : > { %v4409_v50 = vpack.c.bf16 %v3436_v48, %v3435_v47  ;;  %v4578_v51 = vadd.f32 %v5502_v33, %v2748_v49  ;;  %v2750_v53 = vpop.f32.mrb[97].mxu1  ;;  %v3328_v54 = vpop.f32.mrb[97].mxu0 }
 0x2db   : > { %v2751_v55 = vpop.f32.mrb[98].mxu1  ;;  %v3329_v58 = vpop.f32.mrb[98].mxu0  ;;  %v4939_v54 = vld [vmem:[%s5623_s2] ss:$0 sm:$0xff] }
 0x2dc   : > { %4473 = vst [vmem:[%s5516_s30 + $0xb8] sm:$0xff] %v4409_v50   ;;  %v4579_v56 = vadd.f32 %v4578_v51, %v3326_v52  ;;  %v4580_v57 = vadd.f32 %v5502_v33, %v2751_v55  ;;  %v2753_v59 = vpop.f32.mrb[99].mxu1  ;;  %v3331_v60 = vpop.f32.mrb[99].mxu0 }
 0x2de   : > { %v4581_v61 = vadd.f32 %v4580_v57, %v3329_v58  ;;  %v3437_v62 = vmax.f32 %v4579_v56, 0.0 }
 0x2e0   : > { %v3438_v1 = vmax.f32 %v4581_v61, 0.0 }
 0x2e1   : > { %v2756_v63 = vpop.f32.mrb[100].mxu1  ;;  %v3334_v3 = vpop.f32.mrb[100].mxu0 }
 0x2e2   : > { %v4414_v0 = vpack.c.bf16 %v3438_v1, %v3437_v62  ;;  %v4582_v2 = vadd.f32 %v5502_v33, %v2756_v63  ;;  %v2758_v4 = vpop.f32.mrb[101].mxu1  ;;  %v3336_v5 = vpop.f32.mrb[101].mxu0 }
 0x2e3   : > { %v2759_v6 = vpop.f32.mrb[102].mxu1  ;;  %v3337_v9 = vpop.f32.mrb[102].mxu0 }
 0x2e4   : > { %4474 = vst [vmem:[%s5516_s30 + $0xc0] sm:$0xff] %v4414_v0   ;;  %v4583_v7 = vadd.f32 %v4582_v2, %v3334_v3  ;;  %v4584_v8 = vadd.f32 %v5502_v33, %v2759_v6  ;;  %v2761_v10 = vpop.f32.mrb[103].mxu1  ;;  %v3339_v11 = vpop.f32.mrb[103].mxu0 }
 0x2e6   : > { %v4585_v12 = vadd.f32 %v4584_v8, %v3337_v9  ;;  %v3439_v13 = vmax.f32 %v4583_v7, 0.0 }
 0x2e8   : > { %v3440_v14 = vmax.f32 %v4585_v12, 0.0 }
 0x2e9   : > { %v2764_v15 = vpop.f32.mrb[104].mxu1  ;;  %v3342_v18 = vpop.f32.mrb[104].mxu0 }
 0x2ea   : > { %v4419_v16 = vpack.c.bf16 %v3440_v14, %v3439_v13  ;;  %v4586_v17 = vadd.f32 %v5502_v33, %v2764_v15  ;;  %v2766_v19 = vpop.f32.mrb[105].mxu1  ;;  %v3344_v20 = vpop.f32.mrb[105].mxu0 }
 0x2eb   : > { %v2767_v21 = vpop.f32.mrb[106].mxu1  ;;  %v3345_v24 = vpop.f32.mrb[106].mxu0 }
 0x2ec   : > { %4475 = vst [vmem:[%s5516_s30 + $0xc8] sm:$0xff] %v4419_v16   ;;  %v4587_v22 = vadd.f32 %v4586_v17, %v3342_v18  ;;  %v4588_v23 = vadd.f32 %v5502_v33, %v2767_v21  ;;  %v2769_v25 = vpop.f32.mrb[107].mxu1  ;;  %v3347_v26 = vpop.f32.mrb[107].mxu0 }
 0x2ee   : > { %v4589_v27 = vadd.f32 %v4588_v23, %v3345_v24  ;;  %v3441_v28 = vmax.f32 %v4587_v22, 0.0 }
 0x2f0   : > { %v3442_v29 = vmax.f32 %v4589_v27, 0.0 }
 0x2f1   : > { %v2772_v30 = vpop.f32.mrb[108].mxu1  ;;  %v3350_v34 = vpop.f32.mrb[108].mxu0 }
 0x2f2   : > { %v4424_v31 = vpack.c.bf16 %v3442_v29, %v3441_v28  ;;  %v4590_v32 = vadd.f32 %v5502_v33, %v2772_v30  ;;  %v2774_v35 = vpop.f32.mrb[109].mxu1  ;;  %v3352_v36 = vpop.f32.mrb[109].mxu0 }
 0x2f3   : > { %v2775_v37 = vpop.f32.mrb[110].mxu1  ;;  %v3353_v40 = vpop.f32.mrb[110].mxu0 }
 0x2f4   : > { %4476 = vst [vmem:[%s5516_s30 + $0xd0] sm:$0xff] %v4424_v31   ;;  %v4591_v38 = vadd.f32 %v4590_v32, %v3350_v34  ;;  %v4592_v39 = vadd.f32 %v5502_v33, %v2775_v37  ;;  %v2777_v41 = vpop.f32.mrb[111].mxu1  ;;  %v3355_v42 = vpop.f32.mrb[111].mxu0 }
 0x2f6   : > { %v4593_v43 = vadd.f32 %v4592_v39, %v3353_v40  ;;  %v3443_v44 = vmax.f32 %v4591_v38, 0.0 }
 0x2f8   : > { %v3444_v45 = vmax.f32 %v4593_v43, 0.0 }
 0x2f9   : > { %v2780_v46 = vpop.f32.mrb[112].mxu1  ;;  %v3358_v49 = vpop.f32.mrb[112].mxu0 }
 0x2fa   : > { %v4429_v47 = vpack.c.bf16 %v3444_v45, %v3443_v44  ;;  %v4594_v48 = vadd.f32 %v5502_v33, %v2780_v46  ;;  %v2782_v50 = vpop.f32.mrb[113].mxu1  ;;  %v3360_v51 = vpop.f32.mrb[113].mxu0 }
 0x2fb   : > { %v2783_v52 = vpop.f32.mrb[114].mxu1  ;;  %v3361_v56 = vpop.f32.mrb[114].mxu0 }
 0x2fc   : > { %4477 = vst [vmem:[%s5516_s30 + $0xd8] sm:$0xff] %v4429_v47   ;;  %v4595_v53 = vadd.f32 %v4594_v48, %v3358_v49  ;;  %v4596_v55 = vadd.f32 %v4939_v54, %v2783_v52  ;;  %v2785_v57 = vpop.f32.mrb[115].mxu1  ;;  %v3363_v58 = vpop.f32.mrb[115].mxu0 }
 0x2fe   : > { %v4597_v59 = vadd.f32 %v4596_v55, %v3361_v56  ;;  %v3445_v60 = vmax.f32 %v4595_v53, 0.0 }
 0x300   : > { %v3446_v61 = vmax.f32 %v4597_v59, 0.0 }
 0x301   : > { %v2788_v62 = vpop.f32.mrb[116].mxu1  ;;  %v3366_v63 = vpop.f32.mrb[116].mxu0 }
 0x302   : > { %v4434_v33 = vpack.c.bf16 %v3446_v61, %v3445_v60  ;;  %v4598_v1 = vadd.f32 %v4939_v54, %v2788_v62  ;;  %v2790_v0 = vpop.f32.mrb[117].mxu1  ;;  %v3368_v2 = vpop.f32.mrb[117].mxu0 }
 0x303   : > { %v2791_v3 = vpop.f32.mrb[118].mxu1  ;;  %v3369_v6 = vpop.f32.mrb[118].mxu0 }
 0x304   : > { %4478 = vst [vmem:[%s5516_s30 + $0xe0] sm:$0xff] %v4434_v33   ;;  %v4599_v4 = vadd.f32 %v4598_v1, %v3366_v63  ;;  %v4600_v5 = vadd.f32 %v4939_v54, %v2791_v3  ;;  %v2793_v7 = vpop.f32.mrb[119].mxu1  ;;  %v3371_v8 = vpop.f32.mrb[119].mxu0 }
 0x306   : > { %v4601_v9 = vadd.f32 %v4600_v5, %v3369_v6  ;;  %v3447_v10 = vmax.f32 %v4599_v4, 0.0 }
 0x308   : > { %v3448_v11 = vmax.f32 %v4601_v9, 0.0 }
 0x309   : > { %v2796_v12 = vpop.f32.mrb[120].mxu1  ;;  %v3374_v15 = vpop.f32.mrb[120].mxu0 }
 0x30a   : > { %v4439_v13 = vpack.c.bf16 %v3448_v11, %v3447_v10  ;;  %v4602_v14 = vadd.f32 %v4939_v54, %v2796_v12  ;;  %v2798_v16 = vpop.f32.mrb[121].mxu1  ;;  %v3376_v17 = vpop.f32.mrb[121].mxu0 }
 0x30b   : > { %v2799_v18 = vpop.f32.mrb[122].mxu1  ;;  %v3377_v21 = vpop.f32.mrb[122].mxu0 }
 0x30c   : > { %4479 = vst [vmem:[%s5516_s30 + $0xe8] sm:$0xff] %v4439_v13   ;;  %v4603_v19 = vadd.f32 %v4602_v14, %v3374_v15  ;;  %v4604_v20 = vadd.f32 %v4939_v54, %v2799_v18  ;;  %v2801_v22 = vpop.f32.mrb[123].mxu1  ;;  %v3379_v23 = vpop.f32.mrb[123].mxu0 }
 0x30e   : > { %v4605_v24 = vadd.f32 %v4604_v20, %v3377_v21  ;;  %v3449_v25 = vmax.f32 %v4603_v19, 0.0 }
 0x310   : > { %v3450_v26 = vmax.f32 %v4605_v24, 0.0 }
 0x311   : > { %v2804_v27 = vpop.f32.mrb[124].mxu1  ;;  %v3382_v30 = vpop.f32.mrb[124].mxu0 }
 0x312   : > { %v4444_v28 = vpack.c.bf16 %v3450_v26, %v3449_v25  ;;  %v4606_v29 = vadd.f32 %v4939_v54, %v2804_v27  ;;  %v2806_v31 = vpop.f32.mrb[125].mxu1  ;;  %v3384_v32 = vpop.f32.mrb[125].mxu0 }
 0x313   : > { %v2807_v34 = vpop.f32.mrb[126].mxu1  ;;  %v3385_v37 = vpop.f32.mrb[126].mxu0 }
 0x314   : > { %4480 = vst [vmem:[%s5516_s30 + $0xf0] sm:$0xff] %v4444_v28   ;;  %v4607_v35 = vadd.f32 %v4606_v29, %v3382_v30  ;;  %v4608_v36 = vadd.f32 %v4939_v54, %v2807_v34  ;;  %v2809_v38 = vpop.f32.mrb[127].mxu1  ;;  %v3387_v39 = vpop.f32.mrb[127].mxu0 }
 0x316   : > { %v4609_v40 = vadd.f32 %v4608_v36, %v3385_v37  ;;  %v3451_v41 = vmax.f32 %v4607_v35, 0.0 }
 0x318   : > { %v3452_v42 = vmax.f32 %v4609_v40, 0.0 }
 0x31a   : > { %v4449_v43 = vpack.c.bf16 %v3452_v42, %v3451_v41 }
 0x31c   : > { %4481 = vst [vmem:[%s5516_s30 + $0xf8] sm:$0xff] %v4449_v43  }
 0x31d PF: > { %s13_s12 = sadd.s32 1, %s4946_s12  }
 0x31e   : > { %p10_p4 = scmp.ge.s32.totalorder %s13_s12, 4  }
 0x320   :  { %12 = sbr.rel (!%p10_p4) target bundleno = 1 (0x1), region = 62 }

// kernel: gcn_deep_forward.15
= control target key start
LH: loop header
LB: loop body
LE: loop exit
PB: predicated region body
PF: predicated region fallthrough
CT: control target
= control target key end

     0   :  { %s4329_s12 = smov 0   ;;  %s5017_s0 = inlined_call_operand.vmem [shape: bf16[1024,1024], index: 0, kind: input, shape index: {}]   ;;  %s5018_s1 = inlined_call_operand.vmem [shape: bf16[1024,128], index: 1, kind: input, shape index: {}]   ;;  %s5019_s2 = inlined_call_operand.vmem [shape: f32[1,128], index: 2, kind: input, shape index: {}]   ;;  %s5020_s3 = inlined_call_operand.vmem [shape: f32[1024,128], index: 3, kind: output, shape index: {}]  }
   0x1 LB: > { %s3509_s13 = sadd.s32 4294967295, %s4306_s12   ;;  %p3513_p0 = scmp.ge.s32.totalorder %s4306_s12, 1  ;;  %s4306_s12 = sphi %s4329_s12, %s13_s12  }
   0x2   : > { %p139_p1 = scmp.lt.s32.totalorder %s4306_s12, 3 }
   0x4   : > { %p140_p2 = pnand %p3513_p0, %p139_p1 }
   0x5   : > { %v4236_v0 = vld [vmem:[%s5018_s1] sm:$0xff] (!%p140_p2)   ;;  %v4308_v1 = vmov (!%p140_p2), 0   ;;  %v4238_v3 = vld [vmem:[%s5018_s1 + $0x8] sm:$0xff] (!%p140_p2)   ;;  %v4240_v5 = vld [vmem:[%s5018_s1 + $0x10] sm:$0xff] (!%p140_p2)   ;;  %s3514_s7 = sshll.u32 (!%p140_p2), %s3509_s13, 6 }
   0x6   : > { %143 = sbr.rel (%p140_p2) target bundleno = 793 (0x319), region = 32  ;;  %2233 = vmatprep.subr.bf16.mxu1 (!%p140_p2), %v4308_v1  ;;  %2811 = vmatprep.subr.bf16.mxu0 (!%p140_p2), %v4308_v1  ;;  %v4237_v2 = vld [vmem:[%s5018_s1 + $0x100] sm:$0xff] (!%p140_p2)   ;;  %v4239_v4 = vld [vmem:[%s5018_s1 + $0x108] sm:$0xff] (!%p140_p2)   ;;  %v4241_v6 = vld [vmem:[%s5018_s1 + $0x110] sm:$0xff] (!%p140_p2)   ;;  %p165_p3 = scmp.lt.s32.totalorder (!%p140_p2), %s3514_s7, 127 }
   0x7   : > { %2234 = vmatpush1.bf16.msra.mxu1 (!%p140_p2), %v4236_v0  ;;  %2812 = vmatpush1.bf16.msra.mxu0 (!%p140_p2), %v4237_v2  ;;  %v4242_v7 = vld [vmem:[%s5018_s1 + $0x18] sm:$0xff] (!%p140_p2)   ;;  %v4244_v9 = vld [vmem:[%s5018_s1 + $0x20] sm:$0xff] (!%p140_p2)   ;;  %v4246_v11 = vld [vmem:[%s5018_s1 + $0x28] sm:$0xff] (!%p140_p2)  }
   0x8   : > { %2235 = vmatprep.subr.bf16.mxu1 (!%p140_p2), %v4308_v1  ;;  %2813 = vmatprep.subr.bf16.mxu0 (!%p140_p2), %v4308_v1  ;;  %v4243_v8 = vld [vmem:[%s5018_s1 + $0x118] sm:$0xff] (!%p140_p2)   ;;  %v4245_v10 = vld [vmem:[%s5018_s1 + $0x120] sm:$0xff] (!%p140_p2)   ;;  %v4247_v12 = vld [vmem:[%s5018_s1 + $0x128] sm:$0xff] (!%p140_p2)  }
   0x9   : > { %v4248_v13 = vld [vmem:[%s5018_s1 + $0x30] sm:$0xff] (!%p140_p2)   ;;  %v4250_v15 = vld [vmem:[%s5018_s1 + $0x38] sm:$0xff] (!%p140_p2)   ;;  %v4252_v17 = vld [vmem:[%s5018_s1 + $0x40] sm:$0xff] (!%p140_p2)  }
   0xa   : > { %v4249_v14 = vld [vmem:[%s5018_s1 + $0x130] sm:$0xff] (!%p140_p2)   ;;  %v4251_v16 = vld [vmem:[%s5018_s1 + $0x138] sm:$0xff] (!%p140_p2)   ;;  %v4253_v18 = vld [vmem:[%s5018_s1 + $0x140] sm:$0xff] (!%p140_p2)  }
   0xb   : > { %2236 = vmatpush1.bf16.msra.mxu1 (!%p140_p2), %v4238_v3  ;;  %2814 = vmatpush1.bf16.msra.mxu0 (!%p140_p2), %v4239_v4  ;;  %v4254_v24 = vld [vmem:[%s5018_s1 + $0x48] sm:$0xff] (!%p140_p2)   ;;  %v4256_v27 = vld [vmem:[%s5018_s1 + $0x50] sm:$0xff] (!%p140_p2)   ;;  %v4258_v29 = vld [vmem:[%s5018_s1 + $0x58] sm:$0xff] (!%p140_p2)  }
   0xc   : > { %2237 = vmatprep.subr.bf16.mxu1 (!%p140_p2), %v4308_v1  ;;  %2815 = vmatprep.subr.bf16.mxu0 (!%p140_p2), %v4308_v1  ;;  %v4255_v26 = vld [vmem:[%s5018_s1 + $0x148] sm:$0xff] (!%p140_p2)   ;;  %v4257_v28 = vld [vmem:[%s5018_s1 + $0x150] sm:$0xff] (!%p140_p2)   ;;  %v4259_v30 = vld [vmem:[%s5018_s1 + $0x158] sm:$0xff] (!%p140_p2)  }
   0xd   : > { %s5022_s7 = smov (!%p165_p3, %s3514_s7), 127  ;;  %v4260_v31 = vld [vmem:[%s5018_s1 + $0x60] sm:$0xff]   ;;  %v4262_v33 = vld [vmem:[%s5018_s1 + $0x68] sm:$0xff]   ;;  %v4264_v35 = vld [vmem:[%s5018_s1 + $0x70] sm:$0xff]  }
   0xe   : > { %s3842_s19 = sshll.u32 %s5022_s7, 5  ;;  %v4261_v32 = vld [vmem:[%s5018_s1 + $0x160] sm:$0xff]   ;;  %v4263_v34 = vld [vmem:[%s5018_s1 + $0x168] sm:$0xff]   ;;  %v4265_v36 = vld [vmem:[%s5018_s1 + $0x170] sm:$0xff]   ;;  %s3518_s27 = sshll.u32 %s5022_s7, 3 }
   0xf   : > { %2238 = vmatpush1.bf16.msra.mxu1 %v4240_v5  ;;  %2816 = vmatpush1.bf16.msra.mxu0 %v4241_v6  ;;  %s4409_s24 = scalar_lea.vmem %s5017_s0, %s3842_s19  ;;  %v4266_v37 = vld [vmem:[%s5018_s1 + $0x78] sm:$0xff]   ;;  %v4268_v45 = vld [vmem:[%s5018_s1 + $0x80] sm:$0xff]   ;;  %v4270_v51 = vld [vmem:[%s5018_s1 + $0x88] sm:$0xff]   ;;  %s4873_s30 = scalar_lea.vmem %s5020_s3, %s3518_s27 }
  0x10   : > { %2239 = vmatprep.subr.bf16.mxu1 %v4308_v1  ;;  %2817 = vmatprep.subr.bf16.mxu0 %v4308_v1  ;;  %v4420_v19 = vld [vmem:[%s4409_s24] sm:$0xff]  ;;  %v4426_v21 = vld [vmem:[%s4409_s24 + $0x10] sm:$0xff]  ;;  %v4267_v38 = vld [vmem:[%s5018_s1 + $0x178] sm:$0xff]  }
  0x11   : > { %v4423_v20 = vld [vmem:[%s4409_s24 + $0x20] sm:$0xff]  ;;  %v4431_v23 = vld [vmem:[%s4409_s24 + $0x30] sm:$0xff]  ;;  %v4271_v52 = vld [vmem:[%s5018_s1 + $0x188] sm:$0xff]  }
  0x12   : > { %v3521_v22 = vcombine.high %v4420_v19, %v4423_v20  ;;  %v3525_v25 = vcombine.high %v4426_v21, %v4431_v23  ;;  %v186_v39 = vld [vmem:[%s4409_s24 + $0x40] sm:$0xff]  ;;  %v188_v41 = vld [vmem:[%s4409_s24 + $0x50] sm:$0xff]  ;;  %v3520_v42 = vcombine.low %v4420_v19, %v4423_v20  ;;  %v3524_v44 = vcombine.low %v4426_v21, %v4431_v23  ;;  %v4274_v2 = vld [vmem:[%s5018_s1 + $0x98] sm:$0xff]  }
  0x13   : > { %2240 = vmatpush1.bf16.msra.mxu1 %v4242_v7  ;;  %2818 = vmatpush1.bf16.msra.mxu0 %v4243_v8  ;;  %v190_v40 = vld [vmem:[%s4409_s24 + $0x60] sm:$0xff]  ;;  %v192_v43 = vld [vmem:[%s4409_s24 + $0x70] sm:$0xff]  ;;  %v4275_v3 = vld [vmem:[%s5018_s1 + $0x198] sm:$0xff]  }
  0x14   : > { %2241 = vmatprep.subr.bf16.mxu1 %v4308_v1  ;;  %2819 = vmatprep.subr.bf16.mxu0 %v4308_v1  ;;  %v4269_v46 = vld [vmem:[%s5018_s1 + $0x180] sm:$0xff]   ;;  %v3529_v47 = vcombine.high %v186_v39, %v190_v40  ;;  %v3533_v48 = vcombine.high %v188_v41, %v192_v43  ;;  %v196_v53 = vld [vmem:[%s4409_s24 + $0x90] sm:$0xff]  ;;  %v3528_v55 = vcombine.low %v186_v39, %v190_v40  ;;  %v4287_v39 = vld [vmem:[%s5018_s1 + $0x1c8] sm:$0xff]  }
  0x15   : > { %2265 = vmatprep.mubr.bf16.mxu1 %v3521_v22  ;;  %2843 = vmatprep.mubr.bf16.mxu0 %v3525_v25  ;;  %v194_v49 = vld [vmem:[%s4409_s24 + $0x80] sm:$0xff]  ;;  %v200_v54 = vld [vmem:[%s4409_s24 + $0xb0] sm:$0xff]  ;;  %v3532_v56 = vcombine.low %v188_v41, %v192_v43 }
  0x16   : > { %v198_v50 = vld [vmem:[%s4409_s24 + $0xa0] sm:$0xff]  ;;  %v3541_v58 = vcombine.high %v196_v53, %v200_v54  ;;  %v4272_v59 = vld [vmem:[%s5018_s1 + $0x90] sm:$0xff]   ;;  %v3540_v6 = vcombine.low %v196_v53, %v200_v54  ;;  %v4290_v54 = vld [vmem:[%s5018_s1 + $0xd8] sm:$0xff]  }
  0x17   : > { %2242 = vmatpush1.bf16.msra.mxu1 %v4244_v9  ;;  %2820 = vmatpush1.bf16.msra.mxu0 %v4245_v10  ;;  %v3537_v57 = vcombine.high %v194_v49, %v198_v50  ;;  %v4273_v60 = vld [vmem:[%s5018_s1 + $0x190] sm:$0xff]   ;;  %v202_v61 = vld [vmem:[%s4409_s24 + $0xc0] sm:$0xff]  ;;  %v3536_v4 = vcombine.low %v194_v49, %v198_v50 }
  0x18   : > { %2243 = vmatprep.subr.bf16.mxu1 %v4308_v1  ;;  %2821 = vmatprep.subr.bf16.mxu0 %v4308_v1  ;;  %v206_v62 = vld [vmem:[%s4409_s24 + $0xe0] sm:$0xff]  ;;  %v204_v63 = vld [vmem:[%s4409_s24 + $0xd0] sm:$0xff] }
  0x19   : > { %v208_v0 = vld [vmem:[%s4409_s24 + $0xf0] sm:$0xff]  ;;  %v4276_v5 = vld [vmem:[%s5018_s1 + $0xa0] sm:$0xff]   ;;  %v3545_v7 = vcombine.high %v202_v61, %v206_v62 }
  0x1a   : > { %v4277_v8 = vld [vmem:[%s5018_s1 + $0x1a0] sm:$0xff]   ;;  %v3549_v9 = vcombine.high %v204_v63, %v208_v0  ;;  %v4280_v20 = vld [vmem:[%s5018_s1 + $0xb0] sm:$0xff]  }
  0x1b   : > { %2244 = vmatpush1.bf16.msra.mxu1 %v4246_v11  ;;  %2822 = vmatpush1.bf16.msra.mxu0 %v4247_v12  ;;  %v210_v10 = vld [vmem:[%s4409_s24 + $0x100] sm:$0xff]  ;;  %v212_v12 = vld [vmem:[%s4409_s24 + $0x110] sm:$0xff] }
  0x1c   : > { %2245 = vmatprep.subr.bf16.mxu1 %v4308_v1  ;;  %2823 = vmatprep.subr.bf16.mxu0 %v4308_v1  ;;  %v214_v11 = vld [vmem:[%s4409_s24 + $0x120] sm:$0xff]  ;;  %v4281_v21 = vld [vmem:[%s5018_s1 + $0x1b0] sm:$0xff]  }
  0x1d   : > { %v218_v22 = vld [vmem:[%s4409_s24 + $0x140] sm:$0xff]  ;;  %v220_v25 = vld [vmem:[%s4409_s24 + $0x150] sm:$0xff] }
  0x1e   : > { %v222_v23 = vld [vmem:[%s4409_s24 + $0x160] sm:$0xff]  ;;  %v240_v49 = vld [vmem:[%s4409_s24 + $0x1f0] sm:$0xff] }
  0x1f   : > { %2246 = vmatpush1.bf16.msra.mxu1 %v4248_v13  ;;  %2824 = vmatpush1.bf16.msra.mxu0 %v4249_v14  ;;  %v216_v13 = vld [vmem:[%s4409_s24 + $0x130] sm:$0xff]  ;;  %v4278_v14 = vld [vmem:[%s5018_s1 + $0xa8] sm:$0xff]   ;;  %v3560_v40 = vcombine.low %v218_v22, %v222_v23 }
  0x20   : > { %2247 = vmatprep.subr.bf16.mxu1 %v4308_v1  ;;  %2825 = vmatprep.subr.bf16.mxu0 %v4308_v1  ;;  %v3557_v19 = vcombine.high %v212_v12, %v216_v13 }
  0x23   : > { %2248 = vmatpush1.bf16.msra.mxu1 %v4250_v15  ;;  %2826 = vmatpush1.bf16.msra.mxu0 %v4251_v16  ;;  %v4279_v15 = vld [vmem:[%s5018_s1 + $0x1a8] sm:$0xff]   ;;  %v3544_v16 = vcombine.low %v202_v61, %v206_v62 }
  0x24   : > { %2249 = vmatprep.subr.bf16.mxu1 %v4308_v1  ;;  %2827 = vmatprep.subr.bf16.mxu0 %v4308_v1 }
  0x27   : > { %2250 = vmatpush1.bf16.msra.mxu1 %v4252_v17  ;;  %2828 = vmatpush1.bf16.msra.mxu0 %v4253_v18  ;;  %v3548_v17 = vcombine.low %v204_v63, %v208_v0  ;;  %v3553_v18 = vcombine.high %v210_v10, %v214_v11  ;;  %v250_v0 = vld [vmem:[%s4409_s24 + $0x240] sm:$0xff] }
  0x28   : > { %2251 = vmatprep.subr.bf16.mxu1 %v4308_v1  ;;  %2829 = vmatprep.subr.bf16.mxu0 %v4308_v1 }
  0x2b   : > { %2252 = vmatpush1.bf16.msra.mxu1 %v4254_v24  ;;  %2830 = vmatpush1.bf16.msra.mxu0 %v4255_v26  ;;  %v4282_v24 = vld [vmem:[%s5018_s1 + $0xb8] sm:$0xff]   ;;  %v224_v26 = vld [vmem:[%s4409_s24 + $0x170] sm:$0xff] }
  0x2c   : > { %2253 = vmatprep.subr.bf16.mxu1 %v4308_v1  ;;  %2831 = vmatprep.subr.bf16.mxu0 %v4308_v1  ;;  %v3564_v41 = vcombine.low %v220_v25, %v224_v26 }
  0x2f   : > { %2254 = vmatpush1.bf16.msra.mxu1 %v4256_v27  ;;  %2832 = vmatpush1.bf16.msra.mxu0 %v4257_v28  ;;  %v4283_v27 = vld [vmem:[%s5018_s1 + $0x1b8] sm:$0xff]   ;;  %v3552_v28 = vcombine.low %v210_v10, %v214_v11  ;;  %v4293_v10 = vld [vmem:[%s5018_s1 + $0x1e0] sm:$0xff]  }
  0x30   : > { %2255 = vmatprep.subr.bf16.mxu1 %v4308_v1  ;;  %2833 = vmatprep.subr.bf16.mxu0 %v4308_v1  ;;  %v258_v11 = vld [vmem:[%s4409_s24 + $0x280] sm:$0xff] }
  0x33   : > { %2256 = vmatpush1.bf16.msra.mxu1 %v4258_v29  ;;  %2834 = vmatpush1.bf16.msra.mxu0 %v4259_v30  ;;  %v3556_v29 = vcombine.low %v212_v12, %v216_v13  ;;  %v3561_v30 = vcombine.high %v218_v22, %v222_v23  ;;  %v262_v12 = vld [vmem:[%s4409_s24 + $0x2a0] sm:$0xff]  ;;  %v260_v13 = vld [vmem:[%s4409_s24 + $0x290] sm:$0xff] }
  0x34   : > { %2257 = vmatprep.subr.bf16.mxu1 %v4308_v1  ;;  %2835 = vmatprep.subr.bf16.mxu0 %v4308_v1  ;;  %v272_v22 = vld [vmem:[%s4409_s24 + $0x2f0] sm:$0xff]  ;;  %v3600_v23 = vcombine.low %v258_v11, %v262_v12 }
  0x37   : > { %2258 = vmatpush1.bf16.msra.mxu1 %v4260_v31  ;;  %2836 = vmatpush1.bf16.msra.mxu0 %v4261_v32  ;;  %v3565_v31 = vcombine.high %v220_v25, %v224_v26  ;;  %v4284_v32 = vld [vmem:[%s5018_s1 + $0xc0] sm:$0xff]  }
  0x38   : > { %2259 = vmatprep.subr.bf16.mxu1 %v4308_v1  ;;  %2837 = vmatprep.subr.bf16.mxu0 %v4308_v1 }
  0x3b   : > { %2260 = vmatpush1.bf16.msra.mxu1 %v4262_v33  ;;  %2838 = vmatpush1.bf16.msra.mxu0 %v4263_v34  ;;  %v4285_v33 = vld [vmem:[%s5018_s1 + $0x1c0] sm:$0xff]  }
  0x3c   : > { %2261 = vmatprep.subr.bf16.mxu1 %v4308_v1  ;;  %2839 = vmatprep.subr.bf16.mxu0 %v4308_v1  ;;  %v226_v34 = vld [vmem:[%s4409_s24 + $0x180] sm:$0xff] }
  0x3f   : > { %2262 = vmatpush1.bf16.msra.mxu1 %v4264_v35  ;;  %2840 = vmatpush1.bf16.msra.mxu0 %v4265_v36  ;;  %v230_v35 = vld [vmem:[%s4409_s24 + $0x1a0] sm:$0xff]  ;;  %v4286_v36 = vld [vmem:[%s5018_s1 + $0xc8] sm:$0xff]  }
  0x40   : > { %2263 = vmatprep.subr.bf16.mxu1 %v4308_v1  ;;  %2841 = vmatprep.subr.bf16.mxu0 %v4308_v1  ;;  %v3568_v50 = vcombine.low %v226_v34, %v230_v35 }
  0x43   : > { %2264 = vmatpush1.bf16.msra.mxu1 %v4266_v37  ;;  %2842 = vmatpush1.bf16.msra.mxu0 %v4267_v38  ;;  %v228_v37 = vld [vmem:[%s4409_s24 + $0x190] sm:$0xff] }
  0x44   : > { %2522 = vmatprep.subr.bf16.mxu1 %v4308_v1  ;;  %3100 = vmatprep.subr.bf16.mxu0 %v4308_v1  ;;  %v232_v38 = vld [vmem:[%s4409_s24 + $0x1b0] sm:$0xff] }
  0x45   : > { %v3573_v43 = vcombine.high %v228_v37, %v232_v38 }
  0x46   : > { %2266 = vmatmul.mubr.bf16.vlgmr.msra.gmra.mrb[0].mxu1 %v3520_v42  ;;  %2844 = vmatmul.mubr.bf16.vlgmr.msra.gmra.mrb[0].mxu0 %v3524_v44  ;;  %v3569_v42 = vcombine.high %v226_v34, %v230_v35  ;;  %v4288_v44 = vld [vmem:[%s5018_s1 + $0xd0] sm:$0xff]  }
  0x47   : > { %2523 = vmatpush1.bf16.msra.mxu1 %v4268_v45  ;;  %3101 = vmatpush1.bf16.msra.mxu0 %v4269_v46  ;;  %v4289_v45 = vld [vmem:[%s5018_s1 + $0x1d0] sm:$0xff]   ;;  %v234_v46 = vld [vmem:[%s4409_s24 + $0x1c0] sm:$0xff] }
  0x48   : > { %2273 = vmatprep.mubr.bf16.mxu1 %v3529_v47  ;;  %2851 = vmatprep.mubr.bf16.mxu0 %v3533_v48  ;;  %v238_v47 = vld [vmem:[%s4409_s24 + $0x1e0] sm:$0xff]  ;;  %v236_v48 = vld [vmem:[%s4409_s24 + $0x1d0] sm:$0xff] }
  0x49   : > { %2524 = vmatprep.subr.bf16.mxu1 %v4308_v1  ;;  %3102 = vmatprep.subr.bf16.mxu0 %v4308_v1  ;;  %v3581_v53 = vcombine.high %v236_v48, %v240_v49  ;;  %v3580_v61 = vcombine.low %v236_v48, %v240_v49  ;;  %v294_v48 = vld [vmem:[%s4409_s24 + $0x3a0] sm:$0xff]  ;;  %v292_v49 = vld [vmem:[%s4409_s24 + $0x390] sm:$0xff] }
  0x4b   : > { %2525 = vmatpush1.bf16.msra.mxu1 %v4270_v51  ;;  %3103 = vmatpush1.bf16.msra.mxu0 %v4271_v52  ;;  %v3572_v51 = vcombine.low %v228_v37, %v232_v38  ;;  %v3577_v52 = vcombine.high %v234_v46, %v238_v47  ;;  %v282_v37 = vld [vmem:[%s4409_s24 + $0x340] sm:$0xff] }
  0x4c   : > { %2526 = vmatprep.subr.bf16.mxu1 %v4308_v1  ;;  %3104 = vmatprep.subr.bf16.mxu0 %v4308_v1  ;;  %v286_v38 = vld [vmem:[%s4409_s24 + $0x360] sm:$0xff] }
  0x4e   : > { %2274 = vmatmul.mubr.bf16.gmra.mrb[4].mxu1 %v3528_v55  ;;  %2852 = vmatmul.mubr.bf16.gmra.mrb[4].mxu0 %v3532_v56  ;;  %v4291_v55 = vld [vmem:[%s5018_s1 + $0x1d8] sm:$0xff]   ;;  %v242_v56 = vld [vmem:[%s4409_s24 + $0x200] sm:$0xff] }
  0x4f   : > { %2281 = vmatprep.mubr.bf16.mxu1 %v3537_v57  ;;  %2859 = vmatprep.mubr.bf16.mxu0 %v3541_v58  ;;  %v246_v57 = vld [vmem:[%s4409_s24 + $0x220] sm:$0xff]  ;;  %v244_v58 = vld [vmem:[%s4409_s24 + $0x210] sm:$0xff] }
  0x50   : > { %2527 = vmatpush1.bf16.msra.mxu1 %v4272_v59  ;;  %3105 = vmatpush1.bf16.msra.mxu0 %v4273_v60  ;;  %v248_v59 = vld [vmem:[%s4409_s24 + $0x230] sm:$0xff]  ;;  %v3576_v60 = vcombine.low %v234_v46, %v238_v47  ;;  %v3585_v62 = vcombine.high %v242_v56, %v246_v57  ;;  %v290_v47 = vld [vmem:[%s4409_s24 + $0x380] sm:$0xff] }
  0x51   : > { %2528 = vmatprep.subr.bf16.mxu1 %v4308_v1  ;;  %3106 = vmatprep.subr.bf16.mxu0 %v4308_v1  ;;  %v3589_v63 = vcombine.high %v244_v58, %v248_v59  ;;  %v4297_v46 = vld [vmem:[%s5018_s1 + $0x1f0] sm:$0xff]  }
  0x54   : > { %2529 = vmatpush1.bf16.msra.mxu1 %v4274_v2  ;;  %3107 = vmatpush1.bf16.msra.mxu0 %v4275_v3  ;;  %v254_v2 = vld [vmem:[%s4409_s24 + $0x260] sm:$0xff]  ;;  %v252_v3 = vld [vmem:[%s4409_s24 + $0x250] sm:$0xff] }
  0x55   : > { %2530 = vmatprep.subr.bf16.mxu1 %v4308_v1  ;;  %3108 = vmatprep.subr.bf16.mxu0 %v4308_v1 }
  0x56   : > { %2282 = vmatmul.mubr.bf16.gmra.mrb[8].mxu1 %v3536_v4  ;;  %2860 = vmatmul.mubr.bf16.gmra.mrb[8].mxu0 %v3540_v6  ;;  %v256_v4 = vld [vmem:[%s4409_s24 + $0x270] sm:$0xff]  ;;  %v3588_v6 = vcombine.low %v244_v58, %v248_v59  ;;  %v3632_v59 = vcombine.low %v290_v47, %v294_v48 }
  0x57   : > { %2289 = vmatprep.mubr.bf16.mxu1 %v3545_v7  ;;  %2867 = vmatprep.mubr.bf16.mxu0 %v3549_v9  ;;  %v3593_v7 = vcombine.high %v250_v0, %v254_v2  ;;  %v4292_v9 = vld [vmem:[%s5018_s1 + $0xe0] sm:$0xff]   ;;  %v304_v58 = vld [vmem:[%s4409_s24 + $0x3f0] sm:$0xff] }
  0x58   : > { %2531 = vmatpush1.bf16.msra.mxu1 %v4276_v5  ;;  %3109 = vmatpush1.bf16.msra.mxu0 %v4277_v8  ;;  %v3584_v5 = vcombine.low %v242_v56, %v246_v57  ;;  %v3597_v8 = vcombine.high %v252_v3, %v256_v4  ;;  %v302_v56 = vld [vmem:[%s4409_s24 + $0x3e0] sm:$0xff]  ;;  %v300_v57 = vld [vmem:[%s4409_s24 + $0x3d0] sm:$0xff] }
  0x59   : > { %2532 = vmatprep.subr.bf16.mxu1 %v4308_v1  ;;  %3110 = vmatprep.subr.bf16.mxu0 %v4308_v1 }
  0x5c   : > { %2533 = vmatpush1.bf16.msra.mxu1 %v4278_v14  ;;  %3111 = vmatpush1.bf16.msra.mxu0 %v4279_v15  ;;  %v264_v14 = vld [vmem:[%s4409_s24 + $0x2b0] sm:$0xff]  ;;  %v3592_v15 = vcombine.low %v250_v0, %v254_v2  ;;  %v306_v0 = vld [vmem:[%s4409_s24 + $0x400] sm:$0xff] }
  0x5d   : > { %2534 = vmatprep.subr.bf16.mxu1 %v4308_v1  ;;  %3112 = vmatprep.subr.bf16.mxu0 %v4308_v1  ;;  %v310_v2 = vld [vmem:[%s4409_s24 + $0x420] sm:$0xff] }
  0x5e   : > { %2290 = vmatmul.mubr.bf16.gmra.mrb[12].mxu1 %v3544_v16  ;;  %2868 = vmatmul.mubr.bf16.gmra.mrb[12].mxu0 %v3548_v17  ;;  %v3596_v16 = vcombine.low %v252_v3, %v256_v4  ;;  %v3601_v17 = vcombine.high %v258_v11, %v262_v12  ;;  %v308_v3 = vld [vmem:[%s4409_s24 + $0x410] sm:$0xff] }
  0x5f   : > { %2297 = vmatprep.mubr.bf16.mxu1 %v3553_v18  ;;  %2875 = vmatprep.mubr.bf16.mxu0 %v3557_v19  ;;  %v3605_v18 = vcombine.high %v260_v13, %v264_v14  ;;  %v266_v19 = vld [vmem:[%s4409_s24 + $0x2c0] sm:$0xff]  ;;  %v312_v4 = vld [vmem:[%s4409_s24 + $0x430] sm:$0xff] }
  0x60   : > { %2535 = vmatpush1.bf16.msra.mxu1 %v4280_v20  ;;  %3113 = vmatpush1.bf16.msra.mxu0 %v4281_v21  ;;  %v270_v20 = vld [vmem:[%s4409_s24 + $0x2e0] sm:$0xff]  ;;  %v268_v21 = vld [vmem:[%s4409_s24 + $0x2d0] sm:$0xff] }
  0x61   : > { %2536 = vmatprep.subr.bf16.mxu1 %v4308_v1  ;;  %3114 = vmatprep.subr.bf16.mxu0 %v4308_v1  ;;  %v3609_v25 = vcombine.high %v266_v19, %v270_v20  ;;  %v3613_v26 = vcombine.high %v268_v21, %v272_v22  ;;  %v3612_v34 = vcombine.low %v268_v21, %v272_v22  ;;  %v316_v11 = vld [vmem:[%s4409_s24 + $0x450] sm:$0xff] }
  0x62   : > { %v320_v12 = vld [vmem:[%s4409_s24 + $0x470] sm:$0xff] }
  0x63   : > { %v3660_v22 = vcombine.low %v316_v11, %v320_v12 }
  0x64   : > { %2537 = vmatpush1.bf16.msra.mxu1 %v4282_v24  ;;  %3115 = vmatpush1.bf16.msra.mxu0 %v4283_v27  ;;  %v3604_v24 = vcombine.low %v260_v13, %v264_v14  ;;  %v4294_v27 = vld [vmem:[%s5018_s1 + $0xe8] sm:$0xff]   ;;  %v3648_v13 = vcombine.low %v306_v0, %v310_v2  ;;  %v3652_v14 = vcombine.low %v308_v3, %v312_v4 }
  0x65   : > { %2538 = vmatprep.subr.bf16.mxu1 %v4308_v1  ;;  %3116 = vmatprep.subr.bf16.mxu0 %v4308_v1 }
  0x66   : > { %2298 = vmatmul.mubr.bf16.gmra.mrb[16].mxu1 %v3552_v28  ;;  %2876 = vmatmul.mubr.bf16.gmra.mrb[16].mxu0 %v3556_v29  ;;  %v4295_v28 = vld [vmem:[%s5018_s1 + $0x1e8] sm:$0xff]   ;;  %v274_v29 = vld [vmem:[%s4409_s24 + $0x300] sm:$0xff] }
  0x67   : > { %2305 = vmatprep.mubr.bf16.mxu1 %v3561_v30  ;;  %2883 = vmatprep.mubr.bf16.mxu0 %v3565_v31  ;;  %v278_v30 = vld [vmem:[%s4409_s24 + $0x320] sm:$0xff]  ;;  %v276_v31 = vld [vmem:[%s4409_s24 + $0x310] sm:$0xff] }
  0x68   : > { %2539 = vmatpush1.bf16.msra.mxu1 %v4284_v32  ;;  %3117 = vmatpush1.bf16.msra.mxu0 %v4285_v33  ;;  %v280_v32 = vld [vmem:[%s4409_s24 + $0x330] sm:$0xff]  ;;  %v3608_v33 = vcombine.low %v266_v19, %v270_v20  ;;  %v3617_v35 = vcombine.high %v274_v29, %v278_v30 }
  0x69   : > { %2540 = vmatprep.subr.bf16.mxu1 %v4308_v1  ;;  %3118 = vmatprep.subr.bf16.mxu0 %v4308_v1  ;;  %v324_v19 = vld [vmem:[%s4409_s24 + $0x490] sm:$0xff] }
  0x6a   : > { %v328_v20 = vld [vmem:[%s4409_s24 + $0x4b0] sm:$0xff] }
  0x6c   : > { %2541 = vmatpush1.bf16.msra.mxu1 %v4286_v36  ;;  %3119 = vmatpush1.bf16.msra.mxu0 %v4287_v39  ;;  %v3621_v36 = vcombine.high %v276_v31, %v280_v32  ;;  %v284_v39 = vld [vmem:[%s4409_s24 + $0x350] sm:$0xff] }
  0x6d   : > { %2542 = vmatprep.subr.bf16.mxu1 %v4308_v1  ;;  %3120 = vmatprep.subr.bf16.mxu0 %v4308_v1 }
  0x6e   : > { %2306 = vmatmul.mubr.bf16.gmra.mrb[20].mxu1 %v3560_v40  ;;  %2884 = vmatmul.mubr.bf16.gmra.mrb[20].mxu0 %v3564_v41  ;;  %v288_v40 = vld [vmem:[%s4409_s24 + $0x370] sm:$0xff]  ;;  %v3616_v41 = vcombine.low %v274_v29, %v278_v30  ;;  %v3668_v30 = vcombine.low %v324_v19, %v328_v20 }
  0x6f   : > { %2313 = vmatprep.mubr.bf16.mxu1 %v3569_v42  ;;  %2891 = vmatprep.mubr.bf16.mxu0 %v3573_v43  ;;  %v3620_v42 = vcombine.low %v276_v31, %v280_v32  ;;  %v3625_v43 = vcombine.high %v282_v37, %v286_v38 }
  0x70   : > { %2543 = vmatpush1.bf16.msra.mxu1 %v4288_v44  ;;  %3121 = vmatpush1.bf16.msra.mxu0 %v4289_v45  ;;  %v3629_v44 = vcombine.high %v284_v39, %v288_v40  ;;  %v4296_v45 = vld [vmem:[%s5018_s1 + $0xf0] sm:$0xff]  }
  0x71   : > { %2544 = vmatprep.subr.bf16.mxu1 %v4308_v1  ;;  %3122 = vmatprep.subr.bf16.mxu0 %v4308_v1 }
  0x74   : > { %2545 = vmatpush1.bf16.msra.mxu1 %v4290_v54  ;;  %3123 = vmatpush1.bf16.msra.mxu0 %v4291_v55  ;;  %v298_v55 = vld [vmem:[%s4409_s24 + $0x3c0] sm:$0xff] }
  0x75   : > { %2546 = vmatprep.subr.bf16.mxu1 %v4308_v1  ;;  %3124 = vmatprep.subr.bf16.mxu0 %v4308_v1 }
  0x76   : > { %2314 = vmatmul.mubr.bf16.gmra.mrb[24].mxu1 %v3568_v50  ;;  %2892 = vmatmul.mubr.bf16.gmra.mrb[24].mxu0 %v3572_v51  ;;  %v296_v50 = vld [vmem:[%s4409_s24 + $0x3b0] sm:$0xff]  ;;  %v3624_v51 = vcombine.low %v282_v37, %v286_v38 }
  0x77   : > { %2321 = vmatprep.mubr.bf16.mxu1 %v3577_v52  ;;  %2899 = vmatprep.mubr.bf16.mxu0 %v3581_v53  ;;  %v3628_v52 = vcombine.low %v284_v39, %v288_v40  ;;  %v3633_v53 = vcombine.high %v290_v47, %v294_v48  ;;  %v3637_v54 = vcombine.high %v292_v49, %v296_v50 }
  0x78   : > { %2547 = vmatpush1.bf16.msra.mxu1 %v4292_v9  ;;  %3125 = vmatpush1.bf16.msra.mxu0 %v4293_v10  ;;  %v314_v9 = vld [vmem:[%s4409_s24 + $0x440] sm:$0xff] }
  0x79   : > { %2548 = vmatprep.subr.bf16.mxu1 %v4308_v1  ;;  %3126 = vmatprep.subr.bf16.mxu0 %v4308_v1  ;;  %v318_v10 = vld [vmem:[%s4409_s24 + $0x460] sm:$0xff] }
  0x7a   : > { %v3656_v21 = vcombine.low %v314_v9, %v318_v10 }
  0x7c   : > { %2549 = vmatpush1.bf16.msra.mxu1 %v4294_v27  ;;  %3127 = vmatpush1.bf16.msra.mxu0 %v4295_v28  ;;  %v332_v27 = vld [vmem:[%s4409_s24 + $0x4d0] sm:$0xff] }
  0x7d   : > { %2550 = vmatprep.subr.bf16.mxu1 %v4308_v1  ;;  %3128 = vmatprep.subr.bf16.mxu0 %v4308_v1  ;;  %v336_v28 = vld [vmem:[%s4409_s24 + $0x4f0] sm:$0xff] }
  0x7e   : > { %2322 = vmatmul.mubr.bf16.gmra.mrb[28].mxu1 %v3576_v60  ;;  %2900 = vmatmul.mubr.bf16.gmra.mrb[28].mxu0 %v3580_v61  ;;  %v3636_v60 = vcombine.low %v292_v49, %v296_v50  ;;  %v3641_v61 = vcombine.high %v298_v55, %v302_v56  ;;  %v3677_v32 = vcombine.high %v332_v27, %v336_v28  ;;  %v354_v49 = vld [vmem:[%s4409_s24 + $0x580] sm:$0xff] }
  0x7f   : > { %2329 = vmatprep.mubr.bf16.mxu1 %v3585_v62  ;;  %2907 = vmatprep.mubr.bf16.mxu0 %v3589_v63  ;;  %v3645_v62 = vcombine.high %v300_v57, %v304_v58  ;;  %v4299_v63 = vld [vmem:[%s5018_s1 + $0x1f8] sm:$0xff]   ;;  %v3676_v38 = vcombine.low %v332_v27, %v336_v28  ;;  %v358_v50 = vld [vmem:[%s4409_s24 + $0x5a0] sm:$0xff]  ;;  %v396_v27 = vld [vmem:[%s4409_s24 + $0x6d0] sm:$0xff] }
  0x80   : > { %2551 = vmatpush1.bf16.msra.mxu1 %v4296_v45  ;;  %3129 = vmatpush1.bf16.msra.mxu0 %v4297_v46  ;;  %v400_v28 = vld [vmem:[%s4409_s24 + $0x6f0] sm:$0xff] }
  0x81   : > { %2552 = vmatprep.subr.bf16.mxu1 %v4308_v1  ;;  %3130 = vmatprep.subr.bf16.mxu0 %v4308_v1  ;;  %v4298_v1 = vld [vmem:[%s5018_s1 + $0xf8] sm:$0xff]  }
  0x84   : > { %2553 = vmatpush1.bf16.msra.mxu1 %v4298_v1  ;;  %3131 = vmatpush1.bf16.msra.mxu0 %v4299_v63 }
  0x86   : > { %2330 = vmatmul.mubr.bf16.gmra.mrb[32].mxu1 %v3584_v5  ;;  %2908 = vmatmul.mubr.bf16.gmra.mrb[32].mxu0 %v3588_v6  ;;  %v3640_v5 = vcombine.low %v298_v55, %v302_v56  ;;  %v3644_v6 = vcombine.low %v300_v57, %v304_v58  ;;  %v3697_v55 = vcombine.high %v354_v49, %v358_v50  ;;  %v362_v57 = vld [vmem:[%s4409_s24 + $0x5c0] sm:$0xff] }
  0x87   : > { %2337 = vmatprep.mubr.bf16.mxu1 %v3593_v7  ;;  %2915 = vmatprep.mubr.bf16.mxu0 %v3597_v8  ;;  %v3649_v7 = vcombine.high %v306_v0, %v310_v2  ;;  %v3653_v8 = vcombine.high %v308_v3, %v312_v4  ;;  %v366_v58 = vld [vmem:[%s4409_s24 + $0x5e0] sm:$0xff]  ;;  %v372_v3 = vld [vmem:[%s4409_s24 + $0x610] sm:$0xff] }
  0x88   : > { %v3705_v1 = vcombine.high %v362_v57, %v366_v58  ;;  %v370_v0 = vld [vmem:[%s4409_s24 + $0x600] sm:$0xff]  ;;  %v376_v4 = vld [vmem:[%s4409_s24 + $0x630] sm:$0xff] }
  0x89   : > { %v374_v2 = vld [vmem:[%s4409_s24 + $0x620] sm:$0xff] }
  0x8e   : > { %2338 = vmatmul.mubr.bf16.gmra.mrb[36].mxu1 %v3592_v15  ;;  %2916 = vmatmul.mubr.bf16.gmra.mrb[36].mxu0 %v3596_v16  ;;  %v3657_v15 = vcombine.high %v314_v9, %v318_v10  ;;  %v3661_v16 = vcombine.high %v316_v11, %v320_v12  ;;  %v378_v9 = vld [vmem:[%s4409_s24 + $0x640] sm:$0xff]  ;;  %v380_v11 = vld [vmem:[%s4409_s24 + $0x650] sm:$0xff] }
  0x8f   : > { %2345 = vmatprep.mubr.bf16.mxu1 %v3601_v17  ;;  %2923 = vmatprep.mubr.bf16.mxu0 %v3605_v18  ;;  %v322_v17 = vld [vmem:[%s4409_s24 + $0x480] sm:$0xff]  ;;  %v384_v12 = vld [vmem:[%s4409_s24 + $0x670] sm:$0xff] }
  0x90   : > { %v326_v18 = vld [vmem:[%s4409_s24 + $0x4a0] sm:$0xff] }
  0x91   : > { %v3664_v29 = vcombine.low %v322_v17, %v326_v18  ;;  %v382_v10 = vld [vmem:[%s4409_s24 + $0x660] sm:$0xff] }
  0x96   : > { %2346 = vmatmul.mubr.bf16.gmra.mrb[40].mxu1 %v3600_v23  ;;  %2924 = vmatmul.mubr.bf16.gmra.mrb[40].mxu0 %v3604_v24  ;;  %v3665_v23 = vcombine.high %v322_v17, %v326_v18  ;;  %v3669_v24 = vcombine.high %v324_v19, %v328_v20  ;;  %v386_v17 = vld [vmem:[%s4409_s24 + $0x680] sm:$0xff]  ;;  %v388_v19 = vld [vmem:[%s4409_s24 + $0x690] sm:$0xff] }
  0x97   : > { %2353 = vmatprep.mubr.bf16.mxu1 %v3609_v25  ;;  %2931 = vmatprep.mubr.bf16.mxu0 %v3613_v26  ;;  %v330_v25 = vld [vmem:[%s4409_s24 + $0x4c0] sm:$0xff]  ;;  %v392_v20 = vld [vmem:[%s4409_s24 + $0x6b0] sm:$0xff] }
  0x98   : > { %v334_v26 = vld [vmem:[%s4409_s24 + $0x4e0] sm:$0xff] }
  0x99   : > { %v3673_v31 = vcombine.high %v330_v25, %v334_v26  ;;  %v3672_v37 = vcombine.low %v330_v25, %v334_v26  ;;  %v390_v18 = vld [vmem:[%s4409_s24 + $0x6a0] sm:$0xff] }
  0x9a   : > { %v394_v25 = vld [vmem:[%s4409_s24 + $0x6c0] sm:$0xff] }
  0x9b   : > { %v398_v26 = vld [vmem:[%s4409_s24 + $0x6e0] sm:$0xff] }
  0x9e   : > { %2354 = vmatmul.mubr.bf16.gmra.mrb[44].mxu1 %v3608_v33  ;;  %2932 = vmatmul.mubr.bf16.gmra.mrb[44].mxu0 %v3612_v34  ;;  %v338_v33 = vld [vmem:[%s4409_s24 + $0x500] sm:$0xff] }
  0x9f   : > { %2361 = vmatprep.mubr.bf16.mxu1 %v3617_v35  ;;  %2939 = vmatprep.mubr.bf16.mxu0 %v3621_v36  ;;  %v342_v34 = vld [vmem:[%s4409_s24 + $0x520] sm:$0xff]  ;;  %v340_v35 = vld [vmem:[%s4409_s24 + $0x510] sm:$0xff] }
  0xa0   : > { %v344_v36 = vld [vmem:[%s4409_s24 + $0x530] sm:$0xff]  ;;  %v3681_v39 = vcombine.high %v338_v33, %v342_v34  ;;  %v3680_v45 = vcombine.low %v338_v33, %v342_v34  ;;  %v402_v33 = vld [vmem:[%s4409_s24 + $0x700] sm:$0xff] }
  0xa1   : > { %v3685_v40 = vcombine.high %v340_v35, %v344_v36  ;;  %v3684_v46 = vcombine.low %v340_v35, %v344_v36  ;;  %v406_v34 = vld [vmem:[%s4409_s24 + $0x720] sm:$0xff]  ;;  %v404_v35 = vld [vmem:[%s4409_s24 + $0x710] sm:$0xff] }
  0xa2   : > { %v408_v36 = vld [vmem:[%s4409_s24 + $0x730] sm:$0xff] }
  0xa6   : > { %2362 = vmatmul.mubr.bf16.gmra.mrb[48].mxu1 %v3616_v41  ;;  %2940 = vmatmul.mubr.bf16.gmra.mrb[48].mxu0 %v3620_v42  ;;  %v346_v41 = vld [vmem:[%s4409_s24 + $0x540] sm:$0xff] }
  0xa7   : > { %2369 = vmatprep.mubr.bf16.mxu1 %v3625_v43  ;;  %2947 = vmatprep.mubr.bf16.mxu0 %v3629_v44  ;;  %v350_v42 = vld [vmem:[%s4409_s24 + $0x560] sm:$0xff]  ;;  %v348_v43 = vld [vmem:[%s4409_s24 + $0x550] sm:$0xff] }
  0xa8   : > { %v352_v44 = vld [vmem:[%s4409_s24 + $0x570] sm:$0xff]  ;;  %v3689_v47 = vcombine.high %v346_v41, %v350_v42 }
  0xa9   : > { %v3693_v48 = vcombine.high %v348_v43, %v352_v44 }
  0xae   : > { %2370 = vmatmul.mubr.bf16.gmra.mrb[52].mxu1 %v3624_v51  ;;  %2948 = vmatmul.mubr.bf16.gmra.mrb[52].mxu0 %v3628_v52  ;;  %v356_v51 = vld [vmem:[%s4409_s24 + $0x590] sm:$0xff] }
  0xaf   : > { %2377 = vmatprep.mubr.bf16.mxu1 %v3633_v53  ;;  %2955 = vmatprep.mubr.bf16.mxu0 %v3637_v54  ;;  %v360_v52 = vld [vmem:[%s4409_s24 + $0x5b0] sm:$0xff]  ;;  %v3688_v53 = vcombine.low %v346_v41, %v350_v42  ;;  %v3692_v54 = vcombine.low %v348_v43, %v352_v44  ;;  %v410_v41 = vld [vmem:[%s4409_s24 + $0x740] sm:$0xff] }
  0xb0   : > { %v3701_v56 = vcombine.high %v356_v51, %v360_v52  ;;  %v414_v42 = vld [vmem:[%s4409_s24 + $0x760] sm:$0xff]  ;;  %v412_v43 = vld [vmem:[%s4409_s24 + $0x750] sm:$0xff] }
  0xb1   : > { %v416_v44 = vld [vmem:[%s4409_s24 + $0x770] sm:$0xff] }
  0xb6   : > { %2378 = vmatmul.mubr.bf16.gmra.mrb[56].mxu1 %v3632_v59  ;;  %2956 = vmatmul.mubr.bf16.gmra.mrb[56].mxu0 %v3636_v60  ;;  %v364_v59 = vld [vmem:[%s4409_s24 + $0x5d0] sm:$0xff] }
  0xb7   : > { %2385 = vmatprep.mubr.bf16.mxu1 %v3641_v61  ;;  %2963 = vmatprep.mubr.bf16.mxu0 %v3645_v62  ;;  %v368_v60 = vld [vmem:[%s4409_s24 + $0x5f0] sm:$0xff]  ;;  %v3696_v61 = vcombine.low %v354_v49, %v358_v50  ;;  %v3700_v62 = vcombine.low %v356_v51, %v360_v52  ;;  %v418_v49 = vld [vmem:[%s4409_s24 + $0x780] sm:$0xff] }
  0xb8   : > { %v3709_v63 = vcombine.high %v364_v59, %v368_v60  ;;  %v422_v50 = vld [vmem:[%s4409_s24 + $0x7a0] sm:$0xff]  ;;  %v420_v51 = vld [vmem:[%s4409_s24 + $0x790] sm:$0xff] }
  0xb9   : > { %v424_v52 = vld [vmem:[%s4409_s24 + $0x7b0] sm:$0xff] }
  0xbe   : > { %2386 = vmatmul.mubr.bf16.gmra.mrb[60].mxu1 %v3640_v5  ;;  %2964 = vmatmul.mubr.bf16.gmra.mrb[60].mxu0 %v3644_v6  ;;  %v3704_v5 = vcombine.low %v362_v57, %v366_v58  ;;  %v3708_v6 = vcombine.low %v364_v59, %v368_v60  ;;  %v426_v57 = vld [vmem:[%s4409_s24 + $0x7c0] sm:$0xff]  ;;  %v428_v59 = vld [vmem:[%s4409_s24 + $0x7d0] sm:$0xff] }
  0xbf   : > { %2393 = vmatprep.mubr.bf16.mxu1 %v3649_v7  ;;  %2971 = vmatprep.mubr.bf16.mxu0 %v3653_v8  ;;  %v3713_v7 = vcombine.high %v370_v0, %v374_v2  ;;  %v3717_v8 = vcombine.high %v372_v3, %v376_v4  ;;  %v430_v58 = vld [vmem:[%s4409_s24 + $0x7e0] sm:$0xff]  ;;  %v432_v60 = vld [vmem:[%s4409_s24 + $0x7f0] sm:$0xff] }
  0xc6   : > { %2394 = vmatmul.mubr.bf16.gmra.mrb[64].mxu1 %v3648_v13  ;;  %2972 = vmatmul.mubr.bf16.gmra.mrb[64].mxu0 %v3652_v14  ;;  %v3712_v13 = vcombine.low %v370_v0, %v374_v2  ;;  %v3716_v14 = vcombine.low %v372_v3, %v376_v4  ;;  %v179_v0 = vld [vmem:[%s4409_s24 + $0x8] sm:$0xff]  ;;  %v181_v3 = vld [vmem:[%s4409_s24 + $0x18] sm:$0xff] }
  0xc7   : > { %2401 = vmatprep.mubr.bf16.mxu1 %v3657_v15  ;;  %2979 = vmatprep.mubr.bf16.mxu0 %v3661_v16  ;;  %v3721_v15 = vcombine.high %v378_v9, %v382_v10  ;;  %v3725_v16 = vcombine.high %v380_v11, %v384_v12  ;;  %v183_v2 = vld [vmem:[%s4409_s24 + $0x28] sm:$0xff]  ;;  %v185_v4 = vld [vmem:[%s4409_s24 + $0x38] sm:$0xff] }
  0xce   : > { %2402 = vmatmul.mubr.bf16.gmra.mrb[68].mxu1 %v3656_v21  ;;  %2980 = vmatmul.mubr.bf16.gmra.mrb[68].mxu0 %v3660_v22  ;;  %v3720_v21 = vcombine.low %v378_v9, %v382_v10  ;;  %v3724_v22 = vcombine.low %v380_v11, %v384_v12  ;;  %v187_v9 = vld [vmem:[%s4409_s24 + $0x48] sm:$0xff]  ;;  %v189_v11 = vld [vmem:[%s4409_s24 + $0x58] sm:$0xff] }
  0xcf   : > { %2409 = vmatprep.mubr.bf16.mxu1 %v3665_v23  ;;  %2987 = vmatprep.mubr.bf16.mxu0 %v3669_v24  ;;  %v3729_v23 = vcombine.high %v386_v17, %v390_v18  ;;  %v3733_v24 = vcombine.high %v388_v19, %v392_v20  ;;  %v191_v10 = vld [vmem:[%s4409_s24 + $0x68] sm:$0xff]  ;;  %v193_v12 = vld [vmem:[%s4409_s24 + $0x78] sm:$0xff] }
  0xd6   : > { %2410 = vmatmul.mubr.bf16.gmra.mrb[72].mxu1 %v3664_v29  ;;  %2988 = vmatmul.mubr.bf16.gmra.mrb[72].mxu0 %v3668_v30  ;;  %v3728_v29 = vcombine.low %v386_v17, %v390_v18  ;;  %v3732_v30 = vcombine.low %v388_v19, %v392_v20  ;;  %v195_v17 = vld [vmem:[%s4409_s24 + $0x88] sm:$0xff]  ;;  %v197_v19 = vld [vmem:[%s4409_s24 + $0x98] sm:$0xff] }
  0xd7   : > { %2417 = vmatprep.mubr.bf16.mxu1 %v3673_v31  ;;  %2995 = vmatprep.mubr.bf16.mxu0 %v3677_v32  ;;  %v3737_v31 = vcombine.high %v394_v25, %v398_v26  ;;  %v3741_v32 = vcombine.high %v396_v27, %v400_v28  ;;  %v199_v18 = vld [vmem:[%s4409_s24 + $0xa8] sm:$0xff]  ;;  %v201_v20 = vld [vmem:[%s4409_s24 + $0xb8] sm:$0xff] }
  0xde   : > { %2418 = vmatmul.mubr.bf16.gmra.mrb[76].mxu1 %v3672_v37  ;;  %2996 = vmatmul.mubr.bf16.gmra.mrb[76].mxu0 %v3676_v38  ;;  %v3736_v37 = vcombine.low %v394_v25, %v398_v26  ;;  %v3740_v38 = vcombine.low %v396_v27, %v400_v28  ;;  %v203_v25 = vld [vmem:[%s4409_s24 + $0xc8] sm:$0xff]  ;;  %v205_v27 = vld [vmem:[%s4409_s24 + $0xd8] sm:$0xff] }
  0xdf   : > { %2425 = vmatprep.mubr.bf16.mxu1 %v3681_v39  ;;  %3003 = vmatprep.mubr.bf16.mxu0 %v3685_v40  ;;  %v3745_v39 = vcombine.high %v402_v33, %v406_v34  ;;  %v3749_v40 = vcombine.high %v404_v35, %v408_v36  ;;  %v207_v26 = vld [vmem:[%s4409_s24 + $0xe8] sm:$0xff]  ;;  %v209_v28 = vld [vmem:[%s4409_s24 + $0xf8] sm:$0xff] }
  0xe6   : > { %2426 = vmatmul.mubr.bf16.gmra.mrb[80].mxu1 %v3680_v45  ;;  %3004 = vmatmul.mubr.bf16.gmra.mrb[80].mxu0 %v3684_v46  ;;  %v3744_v45 = vcombine.low %v402_v33, %v406_v34  ;;  %v3748_v46 = vcombine.low %v404_v35, %v408_v36  ;;  %v211_v33 = vld [vmem:[%s4409_s24 + $0x108] sm:$0xff]  ;;  %v213_v35 = vld [vmem:[%s4409_s24 + $0x118] sm:$0xff] }
  0xe7   : > { %2433 = vmatprep.mubr.bf16.mxu1 %v3689_v47  ;;  %3011 = vmatprep.mubr.bf16.mxu0 %v3693_v48  ;;  %v3753_v47 = vcombine.high %v410_v41, %v414_v42  ;;  %v3757_v48 = vcombine.high %v412_v43, %v416_v44  ;;  %v215_v34 = vld [vmem:[%s4409_s24 + $0x128] sm:$0xff]  ;;  %v217_v36 = vld [vmem:[%s4409_s24 + $0x138] sm:$0xff] }
  0xee   : > { %2434 = vmatmul.mubr.bf16.gmra.mrb[84].mxu1 %v3688_v53  ;;  %3012 = vmatmul.mubr.bf16.gmra.mrb[84].mxu0 %v3692_v54  ;;  %v3752_v53 = vcombine.low %v410_v41, %v414_v42  ;;  %v3756_v54 = vcombine.low %v412_v43, %v416_v44  ;;  %v219_v41 = vld [vmem:[%s4409_s24 + $0x148] sm:$0xff]  ;;  %v221_v43 = vld [vmem:[%s4409_s24 + $0x158] sm:$0xff] }
  0xef   : > { %2441 = vmatprep.mubr.bf16.mxu1 %v3697_v55  ;;  %3019 = vmatprep.mubr.bf16.mxu0 %v3701_v56  ;;  %v3761_v55 = vcombine.high %v418_v49, %v422_v50  ;;  %v3765_v56 = vcombine.high %v420_v51, %v424_v52  ;;  %v223_v42 = vld [vmem:[%s4409_s24 + $0x168] sm:$0xff]  ;;  %v225_v44 = vld [vmem:[%s4409_s24 + $0x178] sm:$0xff] }
  0xf6   : > { %2442 = vmatmul.mubr.bf16.gmra.mrb[88].mxu1 %v3696_v61  ;;  %3020 = vmatmul.mubr.bf16.gmra.mrb[88].mxu0 %v3700_v62  ;;  %v3760_v61 = vcombine.low %v418_v49, %v422_v50  ;;  %v3764_v62 = vcombine.low %v420_v51, %v424_v52  ;;  %v227_v49 = vld [vmem:[%s4409_s24 + $0x188] sm:$0xff]  ;;  %v229_v51 = vld [vmem:[%s4409_s24 + $0x198] sm:$0xff] }
  0xf7   : > { %2449 = vmatprep.mubr.bf16.mxu1 %v3705_v1  ;;  %3027 = vmatprep.mubr.bf16.mxu0 %v3709_v63  ;;  %v3769_v1 = vcombine.high %v426_v57, %v430_v58  ;;  %v3773_v63 = vcombine.high %v428_v59, %v432_v60  ;;  %v231_v50 = vld [vmem:[%s4409_s24 + $0x1a8] sm:$0xff]  ;;  %v233_v52 = vld [vmem:[%s4409_s24 + $0x1b8] sm:$0xff] }
  0xfe   : > { %2450 = vmatmul.mubr.bf16.gmra.mrb[92].mxu1 %v3704_v5  ;;  %3028 = vmatmul.mubr.bf16.gmra.mrb[92].mxu0 %v3708_v6  ;;  %v3768_v5 = vcombine.low %v426_v57, %v430_v58  ;;  %v3772_v6 = vcombine.low %v428_v59, %v432_v60  ;;  %v235_v57 = vld [vmem:[%s4409_s24 + $0x1c8] sm:$0xff]  ;;  %v237_v59 = vld [vmem:[%s4409_s24 + $0x1d8] sm:$0xff] }
  0xff   : > { %2457 = vmatprep.mubr.bf16.mxu1 %v3713_v7  ;;  %3035 = vmatprep.mubr.bf16.mxu0 %v3717_v8  ;;  %v3523_v7 = vcombine.high %v179_v0, %v183_v2  ;;  %v3527_v8 = vcombine.high %v181_v3, %v185_v4  ;;  %v239_v58 = vld [vmem:[%s4409_s24 + $0x1e8] sm:$0xff]  ;;  %v241_v60 = vld [vmem:[%s4409_s24 + $0x1f8] sm:$0xff] }
 0x106   : > { %2458 = vmatmul.mubr.bf16.gmra.mrb[96].mxu1 %v3712_v13  ;;  %3036 = vmatmul.mubr.bf16.gmra.mrb[96].mxu0 %v3716_v14  ;;  %v3522_v13 = vcombine.low %v179_v0, %v183_v2  ;;  %v3526_v14 = vcombine.low %v181_v3, %v185_v4  ;;  %v243_v0 = vld [vmem:[%s4409_s24 + $0x208] sm:$0xff]  ;;  %v245_v3 = vld [vmem:[%s4409_s24 + $0x218] sm:$0xff] }
 0x107   : > { %2465 = vmatprep.mubr.bf16.mxu1 %v3721_v15  ;;  %3043 = vmatprep.mubr.bf16.mxu0 %v3725_v16  ;;  %v3531_v15 = vcombine.high %v187_v9, %v191_v10  ;;  %v3535_v16 = vcombine.high %v189_v11, %v193_v12  ;;  %v247_v2 = vld [vmem:[%s4409_s24 + $0x228] sm:$0xff]  ;;  %v249_v4 = vld [vmem:[%s4409_s24 + $0x238] sm:$0xff] }
 0x10e   : > { %2466 = vmatmul.mubr.bf16.gmra.mrb[100].mxu1 %v3720_v21  ;;  %3044 = vmatmul.mubr.bf16.gmra.mrb[100].mxu0 %v3724_v22  ;;  %v3530_v21 = vcombine.low %v187_v9, %v191_v10  ;;  %v3534_v22 = vcombine.low %v189_v11, %v193_v12  ;;  %v251_v9 = vld [vmem:[%s4409_s24 + $0x248] sm:$0xff]  ;;  %v253_v11 = vld [vmem:[%s4409_s24 + $0x258] sm:$0xff] }
 0x10f   : > { %2473 = vmatprep.mubr.bf16.mxu1 %v3729_v23  ;;  %3051 = vmatprep.mubr.bf16.mxu0 %v3733_v24  ;;  %v3539_v23 = vcombine.high %v195_v17, %v199_v18  ;;  %v3543_v24 = vcombine.high %v197_v19, %v201_v20  ;;  %v255_v10 = vld [vmem:[%s4409_s24 + $0x268] sm:$0xff]  ;;  %v257_v12 = vld [vmem:[%s4409_s24 + $0x278] sm:$0xff] }
 0x116   : > { %2474 = vmatmul.mubr.bf16.gmra.mrb[104].mxu1 %v3728_v29  ;;  %3052 = vmatmul.mubr.bf16.gmra.mrb[104].mxu0 %v3732_v30  ;;  %v3538_v29 = vcombine.low %v195_v17, %v199_v18  ;;  %v3542_v30 = vcombine.low %v197_v19, %v201_v20  ;;  %v259_v17 = vld [vmem:[%s4409_s24 + $0x288] sm:$0xff]  ;;  %v261_v19 = vld [vmem:[%s4409_s24 + $0x298] sm:$0xff] }
 0x117   : > { %2481 = vmatprep.mubr.bf16.mxu1 %v3737_v31  ;;  %3059 = vmatprep.mubr.bf16.mxu0 %v3741_v32  ;;  %v3547_v31 = vcombine.high %v203_v25, %v207_v26  ;;  %v3551_v32 = vcombine.high %v205_v27, %v209_v28  ;;  %v263_v18 = vld [vmem:[%s4409_s24 + $0x2a8] sm:$0xff]  ;;  %v265_v20 = vld [vmem:[%s4409_s24 + $0x2b8] sm:$0xff] }
 0x11e   : > { %2482 = vmatmul.mubr.bf16.gmra.mrb[108].mxu1 %v3736_v37  ;;  %3060 = vmatmul.mubr.bf16.gmra.mrb[108].mxu0 %v3740_v38  ;;  %v3546_v37 = vcombine.low %v203_v25, %v207_v26  ;;  %v3550_v38 = vcombine.low %v205_v27, %v209_v28  ;;  %v267_v25 = vld [vmem:[%s4409_s24 + $0x2c8] sm:$0xff]  ;;  %v269_v27 = vld [vmem:[%s4409_s24 + $0x2d8] sm:$0xff] }
 0x11f   : > { %2489 = vmatprep.mubr.bf16.mxu1 %v3745_v39  ;;  %3067 = vmatprep.mubr.bf16.mxu0 %v3749_v40  ;;  %v3555_v39 = vcombine.high %v211_v33, %v215_v34  ;;  %v3559_v40 = vcombine.high %v213_v35, %v217_v36  ;;  %v271_v26 = vld [vmem:[%s4409_s24 + $0x2e8] sm:$0xff]  ;;  %v273_v28 = vld [vmem:[%s4409_s24 + $0x2f8] sm:$0xff] }
 0x126   : > { %2490 = vmatmul.mubr.bf16.gmra.mrb[112].mxu1 %v3744_v45  ;;  %3068 = vmatmul.mubr.bf16.gmra.mrb[112].mxu0 %v3748_v46  ;;  %v3554_v45 = vcombine.low %v211_v33, %v215_v34  ;;  %v3558_v46 = vcombine.low %v213_v35, %v217_v36  ;;  %v275_v33 = vld [vmem:[%s4409_s24 + $0x308] sm:$0xff]  ;;  %v277_v35 = vld [vmem:[%s4409_s24 + $0x318] sm:$0xff] }
 0x127   : > { %2497 = vmatprep.mubr.bf16.mxu1 %v3753_v47  ;;  %3075 = vmatprep.mubr.bf16.mxu0 %v3757_v48  ;;  %v3563_v47 = vcombine.high %v219_v41, %v223_v42  ;;  %v3567_v48 = vcombine.high %v221_v43, %v225_v44  ;;  %v279_v34 = vld [vmem:[%s4409_s24 + $0x328] sm:$0xff]  ;;  %v281_v36 = vld [vmem:[%s4409_s24 + $0x338] sm:$0xff] }
 0x12e   : > { %2498 = vmatmul.mubr.bf16.gmra.mrb[116].mxu1 %v3752_v53  ;;  %3076 = vmatmul.mubr.bf16.gmra.mrb[116].mxu0 %v3756_v54  ;;  %v3562_v53 = vcombine.low %v219_v41, %v223_v42  ;;  %v3566_v54 = vcombine.low %v221_v43, %v225_v44  ;;  %v283_v41 = vld [vmem:[%s4409_s24 + $0x348] sm:$0xff]  ;;  %v285_v43 = vld [vmem:[%s4409_s24 + $0x358] sm:$0xff] }
 0x12f   : > { %2505 = vmatprep.mubr.bf16.mxu1 %v3761_v55  ;;  %3083 = vmatprep.mubr.bf16.mxu0 %v3765_v56  ;;  %v3571_v55 = vcombine.high %v227_v49, %v231_v50  ;;  %v3575_v56 = vcombine.high %v229_v51, %v233_v52  ;;  %v287_v42 = vld [vmem:[%s4409_s24 + $0x368] sm:$0xff]  ;;  %v289_v44 = vld [vmem:[%s4409_s24 + $0x378] sm:$0xff] }
 0x136   : > { %2506 = vmatmul.mubr.bf16.gmra.mrb[120].mxu1 %v3760_v61  ;;  %3084 = vmatmul.mubr.bf16.gmra.mrb[120].mxu0 %v3764_v62  ;;  %v3570_v61 = vcombine.low %v227_v49, %v231_v50  ;;  %v3574_v62 = vcombine.low %v229_v51, %v233_v52  ;;  %v291_v49 = vld [vmem:[%s4409_s24 + $0x388] sm:$0xff]  ;;  %v293_v51 = vld [vmem:[%s4409_s24 + $0x398] sm:$0xff] }
 0x137   : > { %2513 = vmatprep.mubr.bf16.mxu1 %v3769_v1  ;;  %3091 = vmatprep.mubr.bf16.mxu0 %v3773_v63  ;;  %v3579_v1 = vcombine.high %v235_v57, %v239_v58  ;;  %v3583_v63 = vcombine.high %v237_v59, %v241_v60  ;;  %v295_v50 = vld [vmem:[%s4409_s24 + $0x3a8] sm:$0xff]  ;;  %v297_v52 = vld [vmem:[%s4409_s24 + $0x3b8] sm:$0xff] }
 0x13e   : > { %2514 = vmatmul.mubr.bf16.gmra.mrb[124].mxu1 %v3768_v5  ;;  %3092 = vmatmul.mubr.bf16.gmra.mrb[124].mxu0 %v3772_v6  ;;  %v3578_v5 = vcombine.low %v235_v57, %v239_v58  ;;  %v3582_v6 = vcombine.low %v237_v59, %v241_v60  ;;  %v299_v57 = vld [vmem:[%s4409_s24 + $0x3c8] sm:$0xff]  ;;  %v301_v59 = vld [vmem:[%s4409_s24 + $0x3d8] sm:$0xff] }
 0x13f   : > { %2554 = vmatprep.mubr.bf16.mxu1 %v3523_v7  ;;  %3132 = vmatprep.mubr.bf16.mxu0 %v3527_v8  ;;  %v3587_v7 = vcombine.high %v243_v0, %v247_v2  ;;  %v3591_v8 = vcombine.high %v245_v3, %v249_v4  ;;  %v303_v58 = vld [vmem:[%s4409_s24 + $0x3e8] sm:$0xff]  ;;  %v305_v60 = vld [vmem:[%s4409_s24 + $0x3f8] sm:$0xff] }
 0x146   : > { %2555 = vmatmul.mubr.bf16.vlgmr.msra.gmra.mrb[0].mxu1 %v3522_v13  ;;  %3133 = vmatmul.mubr.bf16.vlgmr.msra.gmra.mrb[0].mxu0 %v3526_v14  ;;  %v3586_v13 = vcombine.low %v243_v0, %v247_v2  ;;  %v3590_v14 = vcombine.low %v245_v3, %v249_v4  ;;  %v307_v0 = vld [vmem:[%s4409_s24 + $0x408] sm:$0xff]  ;;  %v309_v3 = vld [vmem:[%s4409_s24 + $0x418] sm:$0xff] }
 0x147   : > { %2562 = vmatprep.mubr.bf16.mxu1 %v3531_v15  ;;  %3140 = vmatprep.mubr.bf16.mxu0 %v3535_v16  ;;  %v3595_v15 = vcombine.high %v251_v9, %v255_v10  ;;  %v3599_v16 = vcombine.high %v253_v11, %v257_v12  ;;  %v311_v2 = vld [vmem:[%s4409_s24 + $0x428] sm:$0xff]  ;;  %v313_v4 = vld [vmem:[%s4409_s24 + $0x438] sm:$0xff] }
 0x14e   : > { %2563 = vmatmul.mubr.bf16.gmra.mrb[4].mxu1 %v3530_v21  ;;  %3141 = vmatmul.mubr.bf16.gmra.mrb[4].mxu0 %v3534_v22  ;;  %v3594_v21 = vcombine.low %v251_v9, %v255_v10  ;;  %v3598_v22 = vcombine.low %v253_v11, %v257_v12  ;;  %v315_v9 = vld [vmem:[%s4409_s24 + $0x448] sm:$0xff]  ;;  %v317_v11 = vld [vmem:[%s4409_s24 + $0x458] sm:$0xff] }
 0x14f   : > { %2570 = vmatprep.mubr.bf16.mxu1 %v3539_v23  ;;  %3148 = vmatprep.mubr.bf16.mxu0 %v3543_v24  ;;  %v3603_v23 = vcombine.high %v259_v17, %v263_v18  ;;  %v3607_v24 = vcombine.high %v261_v19, %v265_v20  ;;  %v319_v10 = vld [vmem:[%s4409_s24 + $0x468] sm:$0xff]  ;;  %v321_v12 = vld [vmem:[%s4409_s24 + $0x478] sm:$0xff] }
 0x156   : > { %2571 = vmatmul.mubr.bf16.gmra.mrb[8].mxu1 %v3538_v29  ;;  %3149 = vmatmul.mubr.bf16.gmra.mrb[8].mxu0 %v3542_v30  ;;  %v3602_v29 = vcombine.low %v259_v17, %v263_v18  ;;  %v3606_v30 = vcombine.low %v261_v19, %v265_v20  ;;  %v323_v17 = vld [vmem:[%s4409_s24 + $0x488] sm:$0xff]  ;;  %v325_v19 = vld [vmem:[%s4409_s24 + $0x498] sm:$0xff] }
 0x157   : > { %2578 = vmatprep.mubr.bf16.mxu1 %v3547_v31  ;;  %3156 = vmatprep.mubr.bf16.mxu0 %v3551_v32  ;;  %v3611_v31 = vcombine.high %v267_v25, %v271_v26  ;;  %v3615_v32 = vcombine.high %v269_v27, %v273_v28  ;;  %v327_v18 = vld [vmem:[%s4409_s24 + $0x4a8] sm:$0xff]  ;;  %v329_v20 = vld [vmem:[%s4409_s24 + $0x4b8] sm:$0xff] }
 0x15e   : > { %2579 = vmatmul.mubr.bf16.gmra.mrb[12].mxu1 %v3546_v37  ;;  %3157 = vmatmul.mubr.bf16.gmra.mrb[12].mxu0 %v3550_v38  ;;  %v3610_v37 = vcombine.low %v267_v25, %v271_v26  ;;  %v3614_v38 = vcombine.low %v269_v27, %v273_v28  ;;  %v331_v25 = vld [vmem:[%s4409_s24 + $0x4c8] sm:$0xff]  ;;  %v333_v27 = vld [vmem:[%s4409_s24 + $0x4d8] sm:$0xff] }
 0x15f   : > { %2586 = vmatprep.mubr.bf16.mxu1 %v3555_v39  ;;  %3164 = vmatprep.mubr.bf16.mxu0 %v3559_v40  ;;  %v3619_v39 = vcombine.high %v275_v33, %v279_v34  ;;  %v3623_v40 = vcombine.high %v277_v35, %v281_v36  ;;  %v335_v26 = vld [vmem:[%s4409_s24 + $0x4e8] sm:$0xff]  ;;  %v337_v28 = vld [vmem:[%s4409_s24 + $0x4f8] sm:$0xff] }
 0x166   : > { %2587 = vmatmul.mubr.bf16.gmra.mrb[16].mxu1 %v3554_v45  ;;  %3165 = vmatmul.mubr.bf16.gmra.mrb[16].mxu0 %v3558_v46  ;;  %v3618_v45 = vcombine.low %v275_v33, %v279_v34  ;;  %v3622_v46 = vcombine.low %v277_v35, %v281_v36  ;;  %v339_v33 = vld [vmem:[%s4409_s24 + $0x508] sm:$0xff]  ;;  %v341_v35 = vld [vmem:[%s4409_s24 + $0x518] sm:$0xff] }
 0x167   : > { %2594 = vmatprep.mubr.bf16.mxu1 %v3563_v47  ;;  %3172 = vmatprep.mubr.bf16.mxu0 %v3567_v48  ;;  %v3627_v47 = vcombine.high %v283_v41, %v287_v42  ;;  %v3631_v48 = vcombine.high %v285_v43, %v289_v44  ;;  %v343_v34 = vld [vmem:[%s4409_s24 + $0x528] sm:$0xff]  ;;  %v345_v36 = vld [vmem:[%s4409_s24 + $0x538] sm:$0xff] }
 0x16e   : > { %2595 = vmatmul.mubr.bf16.gmra.mrb[20].mxu1 %v3562_v53  ;;  %3173 = vmatmul.mubr.bf16.gmra.mrb[20].mxu0 %v3566_v54  ;;  %v3626_v53 = vcombine.low %v283_v41, %v287_v42  ;;  %v3630_v54 = vcombine.low %v285_v43, %v289_v44  ;;  %v347_v41 = vld [vmem:[%s4409_s24 + $0x548] sm:$0xff]  ;;  %v349_v43 = vld [vmem:[%s4409_s24 + $0x558] sm:$0xff] }
 0x16f   : > { %2602 = vmatprep.mubr.bf16.mxu1 %v3571_v55  ;;  %3180 = vmatprep.mubr.bf16.mxu0 %v3575_v56  ;;  %v3635_v55 = vcombine.high %v291_v49, %v295_v50  ;;  %v3639_v56 = vcombine.high %v293_v51, %v297_v52  ;;  %v351_v42 = vld [vmem:[%s4409_s24 + $0x568] sm:$0xff]  ;;  %v353_v44 = vld [vmem:[%s4409_s24 + $0x578] sm:$0xff] }
 0x176   : > { %2603 = vmatmul.mubr.bf16.gmra.mrb[24].mxu1 %v3570_v61  ;;  %3181 = vmatmul.mubr.bf16.gmra.mrb[24].mxu0 %v3574_v62  ;;  %v3634_v61 = vcombine.low %v291_v49, %v295_v50  ;;  %v3638_v62 = vcombine.low %v293_v51, %v297_v52  ;;  %v355_v49 = vld [vmem:[%s4409_s24 + $0x588] sm:$0xff]  ;;  %v357_v51 = vld [vmem:[%s4409_s24 + $0x598] sm:$0xff] }
 0x177   : > { %2610 = vmatprep.mubr.bf16.mxu1 %v3579_v1  ;;  %3188 = vmatprep.mubr.bf16.mxu0 %v3583_v63  ;;  %v3643_v1 = vcombine.high %v299_v57, %v303_v58  ;;  %v3647_v63 = vcombine.high %v301_v59, %v305_v60  ;;  %v359_v50 = vld [vmem:[%s4409_s24 + $0x5a8] sm:$0xff]  ;;  %v361_v52 = vld [vmem:[%s4409_s24 + $0x5b8] sm:$0xff] }
 0x17e   : > { %2611 = vmatmul.mubr.bf16.gmra.mrb[28].mxu1 %v3578_v5  ;;  %3189 = vmatmul.mubr.bf16.gmra.mrb[28].mxu0 %v3582_v6  ;;  %v3642_v5 = vcombine.low %v299_v57, %v303_v58  ;;  %v3646_v6 = vcombine.low %v301_v59, %v305_v60  ;;  %v363_v57 = vld [vmem:[%s4409_s24 + $0x5c8] sm:$0xff]  ;;  %v365_v59 = vld [vmem:[%s4409_s24 + $0x5d8] sm:$0xff] }
 0x17f   : > { %2618 = vmatprep.mubr.bf16.mxu1 %v3587_v7  ;;  %3196 = vmatprep.mubr.bf16.mxu0 %v3591_v8  ;;  %v3651_v7 = vcombine.high %v307_v0, %v311_v2  ;;  %v3655_v8 = vcombine.high %v309_v3, %v313_v4  ;;  %v367_v58 = vld [vmem:[%s4409_s24 + $0x5e8] sm:$0xff]  ;;  %v369_v60 = vld [vmem:[%s4409_s24 + $0x5f8] sm:$0xff] }
 0x186   : > { %2619 = vmatmul.mubr.bf16.gmra.mrb[32].mxu1 %v3586_v13  ;;  %3197 = vmatmul.mubr.bf16.gmra.mrb[32].mxu0 %v3590_v14  ;;  %v3650_v13 = vcombine.low %v307_v0, %v311_v2  ;;  %v3654_v14 = vcombine.low %v309_v3, %v313_v4  ;;  %v371_v0 = vld [vmem:[%s4409_s24 + $0x608] sm:$0xff]  ;;  %v373_v3 = vld [vmem:[%s4409_s24 + $0x618] sm:$0xff] }
 0x187   : > { %2626 = vmatprep.mubr.bf16.mxu1 %v3595_v15  ;;  %3204 = vmatprep.mubr.bf16.mxu0 %v3599_v16  ;;  %v3659_v15 = vcombine.high %v315_v9, %v319_v10  ;;  %v3663_v16 = vcombine.high %v317_v11, %v321_v12  ;;  %v375_v2 = vld [vmem:[%s4409_s24 + $0x628] sm:$0xff]  ;;  %v377_v4 = vld [vmem:[%s4409_s24 + $0x638] sm:$0xff] }
 0x18e   : > { %2627 = vmatmul.mubr.bf16.gmra.mrb[36].mxu1 %v3594_v21  ;;  %3205 = vmatmul.mubr.bf16.gmra.mrb[36].mxu0 %v3598_v22  ;;  %v3658_v21 = vcombine.low %v315_v9, %v319_v10  ;;  %v3662_v22 = vcombine.low %v317_v11, %v321_v12  ;;  %v379_v9 = vld [vmem:[%s4409_s24 + $0x648] sm:$0xff]  ;;  %v381_v11 = vld [vmem:[%s4409_s24 + $0x658] sm:$0xff] }
 0x18f   : > { %2634 = vmatprep.mubr.bf16.mxu1 %v3603_v23  ;;  %3212 = vmatprep.mubr.bf16.mxu0 %v3607_v24  ;;  %v3667_v23 = vcombine.high %v323_v17, %v327_v18  ;;  %v3671_v24 = vcombine.high %v325_v19, %v329_v20  ;;  %v383_v10 = vld [vmem:[%s4409_s24 + $0x668] sm:$0xff]  ;;  %v385_v12 = vld [vmem:[%s4409_s24 + $0x678] sm:$0xff] }
 0x196   : > { %2635 = vmatmul.mubr.bf16.gmra.mrb[40].mxu1 %v3602_v29  ;;  %3213 = vmatmul.mubr.bf16.gmra.mrb[40].mxu0 %v3606_v30  ;;  %v3666_v29 = vcombine.low %v323_v17, %v327_v18  ;;  %v3670_v30 = vcombine.low %v325_v19, %v329_v20  ;;  %v387_v17 = vld [vmem:[%s4409_s24 + $0x688] sm:$0xff]  ;;  %v389_v19 = vld [vmem:[%s4409_s24 + $0x698] sm:$0xff] }
 0x197   : > { %2642 = vmatprep.mubr.bf16.mxu1 %v3611_v31  ;;  %3220 = vmatprep.mubr.bf16.mxu0 %v3615_v32  ;;  %v3675_v31 = vcombine.high %v331_v25, %v335_v26  ;;  %v3679_v32 = vcombine.high %v333_v27, %v337_v28  ;;  %v391_v18 = vld [vmem:[%s4409_s24 + $0x6a8] sm:$0xff]  ;;  %v393_v20 = vld [vmem:[%s4409_s24 + $0x6b8] sm:$0xff] }
 0x19e   : > { %2643 = vmatmul.mubr.bf16.gmra.mrb[44].mxu1 %v3610_v37  ;;  %3221 = vmatmul.mubr.bf16.gmra.mrb[44].mxu0 %v3614_v38  ;;  %v3674_v37 = vcombine.low %v331_v25, %v335_v26  ;;  %v3678_v38 = vcombine.low %v333_v27, %v337_v28  ;;  %v395_v25 = vld [vmem:[%s4409_s24 + $0x6c8] sm:$0xff]  ;;  %v397_v27 = vld [vmem:[%s4409_s24 + $0x6d8] sm:$0xff] }
 0x19f   : > { %2650 = vmatprep.mubr.bf16.mxu1 %v3619_v39  ;;  %3228 = vmatprep.mubr.bf16.mxu0 %v3623_v40  ;;  %v3683_v39 = vcombine.high %v339_v33, %v343_v34  ;;  %v3687_v40 = vcombine.high %v341_v35, %v345_v36  ;;  %v399_v26 = vld [vmem:[%s4409_s24 + $0x6e8] sm:$0xff]  ;;  %v401_v28 = vld [vmem:[%s4409_s24 + $0x6f8] sm:$0xff] }
 0x1a6   : > { %2651 = vmatmul.mubr.bf16.gmra.mrb[48].mxu1 %v3618_v45  ;;  %3229 = vmatmul.mubr.bf16.gmra.mrb[48].mxu0 %v3622_v46  ;;  %v3682_v45 = vcombine.low %v339_v33, %v343_v34  ;;  %v3686_v46 = vcombine.low %v341_v35, %v345_v36  ;;  %v4862_v33 = vld [vmem:[%s5019_s2] ss:$0 sm:$0xff]  ;;  %v403_v34 = vld [vmem:[%s4409_s24 + $0x708] sm:$0xff] }
 0x1a7   : > { %2658 = vmatprep.mubr.bf16.mxu1 %v3627_v47  ;;  %3236 = vmatprep.mubr.bf16.mxu0 %v3631_v48  ;;  %v3691_v47 = vcombine.high %v347_v41, %v351_v42  ;;  %v3695_v48 = vcombine.high %v349_v43, %v353_v44  ;;  %v407_v35 = vld [vmem:[%s4409_s24 + $0x728] sm:$0xff] }
 0x1ae   : > { %2659 = vmatmul.mubr.bf16.gmra.mrb[52].mxu1 %v3626_v53  ;;  %3237 = vmatmul.mubr.bf16.gmra.mrb[52].mxu0 %v3630_v54  ;;  %v3690_v53 = vcombine.low %v347_v41, %v351_v42  ;;  %v3694_v54 = vcombine.low %v349_v43, %v353_v44  ;;  %v3738_v42 = vcombine.low %v395_v25, %v399_v26 }
 0x1af   : > { %2666 = vmatprep.mubr.bf16.mxu1 %v3635_v55  ;;  %3244 = vmatprep.mubr.bf16.mxu0 %v3639_v56  ;;  %v3699_v55 = vcombine.high %v355_v49, %v359_v50  ;;  %v3703_v56 = vcombine.high %v357_v51, %v361_v52 }
 0x1b6   : > { %2667 = vmatmul.mubr.bf16.gmra.mrb[56].mxu1 %v3634_v61  ;;  %3245 = vmatmul.mubr.bf16.gmra.mrb[56].mxu0 %v3638_v62  ;;  %v3698_v61 = vcombine.low %v355_v49, %v359_v50  ;;  %v3702_v62 = vcombine.low %v357_v51, %v361_v52 }
 0x1b7   : > { %2674 = vmatprep.mubr.bf16.mxu1 %v3643_v1  ;;  %3252 = vmatprep.mubr.bf16.mxu0 %v3647_v63  ;;  %v3707_v1 = vcombine.high %v363_v57, %v367_v58  ;;  %v3711_v63 = vcombine.high %v365_v59, %v369_v60 }
 0x1be   : > { %2675 = vmatmul.mubr.bf16.gmra.mrb[60].mxu1 %v3642_v5  ;;  %3253 = vmatmul.mubr.bf16.gmra.mrb[60].mxu0 %v3646_v6  ;;  %v3706_v5 = vcombine.low %v363_v57, %v367_v58  ;;  %v3710_v6 = vcombine.low %v365_v59, %v369_v60  ;;  %v413_v57 = vld [vmem:[%s4409_s24 + $0x758] sm:$0xff] }
 0x1bf   : > { %2682 = vmatprep.mubr.bf16.mxu1 %v3651_v7  ;;  %3260 = vmatprep.mubr.bf16.mxu0 %v3655_v8  ;;  %v3715_v7 = vcombine.high %v371_v0, %v375_v2  ;;  %v3719_v8 = vcombine.high %v373_v3, %v377_v4  ;;  %v417_v58 = vld [vmem:[%s4409_s24 + $0x778] sm:$0xff] }
 0x1c6   : > { %2683 = vmatmul.mubr.bf16.gmra.mrb[64].mxu1 %v3650_v13  ;;  %3261 = vmatmul.mubr.bf16.gmra.mrb[64].mxu0 %v3654_v14  ;;  %v3714_v13 = vcombine.low %v371_v0, %v375_v2  ;;  %v3718_v14 = vcombine.low %v373_v3, %v377_v4 }
 0x1c7   : > { %2690 = vmatprep.mubr.bf16.mxu1 %v3659_v15  ;;  %3268 = vmatprep.mubr.bf16.mxu0 %v3663_v16  ;;  %v3723_v15 = vcombine.high %v379_v9, %v383_v10  ;;  %v3727_v16 = vcombine.high %v381_v11, %v385_v12 }
 0x1ce   : > { %2691 = vmatmul.mubr.bf16.gmra.mrb[68].mxu1 %v3658_v21  ;;  %3269 = vmatmul.mubr.bf16.gmra.mrb[68].mxu0 %v3662_v22  ;;  %v3722_v21 = vcombine.low %v379_v9, %v383_v10  ;;  %v3726_v22 = vcombine.low %v381_v11, %v385_v12  ;;  %v419_v10 = vld [vmem:[%s4409_s24 + $0x788] sm:$0xff] }
 0x1cf   : > { %2698 = vmatprep.mubr.bf16.mxu1 %v3667_v23  ;;  %3276 = vmatprep.mubr.bf16.mxu0 %v3671_v24  ;;  %v3731_v23 = vcombine.high %v387_v17, %v391_v18  ;;  %v3735_v24 = vcombine.high %v389_v19, %v393_v20  ;;  %v423_v11 = vld [vmem:[%s4409_s24 + $0x7a8] sm:$0xff] }
 0x1d6   : > { %2699 = vmatmul.mubr.bf16.gmra.mrb[72].mxu1 %v3666_v29  ;;  %3277 = vmatmul.mubr.bf16.gmra.mrb[72].mxu0 %v3670_v30  ;;  %v3730_v29 = vcombine.low %v387_v17, %v391_v18  ;;  %v3734_v30 = vcombine.low %v389_v19, %v393_v20 }
 0x1d7   : > { %2706 = vmatprep.mubr.bf16.mxu1 %v3675_v31  ;;  %3284 = vmatprep.mubr.bf16.mxu0 %v3679_v32  ;;  %v3739_v31 = vcombine.high %v395_v25, %v399_v26  ;;  %v3743_v32 = vcombine.high %v397_v27, %v401_v28 }
 0x1de   : > { %2707 = vmatmul.mubr.bf16.gmra.mrb[76].mxu1 %v3674_v37  ;;  %3285 = vmatmul.mubr.bf16.gmra.mrb[76].mxu0 %v3678_v38  ;;  %v405_v37 = vld [vmem:[%s4409_s24 + $0x718] sm:$0xff] }
 0x1df   : > { %2714 = vmatprep.mubr.bf16.mxu1 %v3683_v39  ;;  %3292 = vmatprep.mubr.bf16.mxu0 %v3687_v40  ;;  %v409_v38 = vld [vmem:[%s4409_s24 + $0x738] sm:$0xff] }
 0x1e0   : > { %v3751_v51 = vcombine.high %v405_v37, %v409_v38  ;;  %v3750_v0 = vcombine.low %v405_v37, %v409_v38 }
 0x1e6   : > { %2715 = vmatmul.mubr.bf16.gmra.mrb[80].mxu1 %v3682_v45  ;;  %3293 = vmatmul.mubr.bf16.gmra.mrb[80].mxu0 %v3686_v46  ;;  %v3742_v45 = vcombine.low %v397_v27, %v401_v28  ;;  %v3747_v46 = vcombine.high %v403_v34, %v407_v35 }
 0x1e7   : > { %2722 = vmatprep.mubr.bf16.mxu1 %v3691_v47  ;;  %3300 = vmatprep.mubr.bf16.mxu0 %v3695_v48 }
 0x1ee   : > { %2723 = vmatmul.mubr.bf16.gmra.mrb[84].mxu1 %v3690_v53  ;;  %3301 = vmatmul.mubr.bf16.gmra.mrb[84].mxu0 %v3694_v54  ;;  %v411_v54 = vld [vmem:[%s4409_s24 + $0x748] sm:$0xff] }
 0x1ef   : > { %2730 = vmatprep.mubr.bf16.mxu1 %v3699_v55  ;;  %3308 = vmatprep.mubr.bf16.mxu0 %v3703_v56  ;;  %v415_v55 = vld [vmem:[%s4409_s24 + $0x768] sm:$0xff] }
 0x1f0   : > { %v3755_v2 = vcombine.high %v411_v54, %v415_v55  ;;  %v3754_v18 = vcombine.low %v411_v54, %v415_v55 }
 0x1f6   : > { %2731 = vmatmul.mubr.bf16.gmra.mrb[88].mxu1 %v3698_v61  ;;  %3309 = vmatmul.mubr.bf16.gmra.mrb[88].mxu0 %v3702_v62  ;;  %v3746_v62 = vcombine.low %v403_v34, %v407_v35  ;;  %v429_v34 = vld [vmem:[%s4409_s24 + $0x7d8] sm:$0xff] }
 0x1f7   : > { %2738 = vmatprep.mubr.bf16.mxu1 %v3707_v1  ;;  %3316 = vmatprep.mubr.bf16.mxu0 %v3711_v63  ;;  %v433_v35 = vld [vmem:[%s4409_s24 + $0x7f8] sm:$0xff] }
 0x1fe   : > { %2739 = vmatmul.mubr.bf16.gmra.mrb[92].mxu1 %v3706_v5  ;;  %3317 = vmatmul.mubr.bf16.gmra.mrb[92].mxu0 %v3710_v6 }
 0x1ff   : > { %2746 = vmatprep.mubr.bf16.mxu1 %v3715_v7  ;;  %3324 = vmatprep.mubr.bf16.mxu0 %v3719_v8  ;;  %v3759_v7 = vcombine.high %v413_v57, %v417_v58 }
 0x206   : > { %2747 = vmatmul.mubr.bf16.gmra.mrb[96].mxu1 %v3714_v13  ;;  %3325 = vmatmul.mubr.bf16.gmra.mrb[96].mxu0 %v3718_v14  ;;  %v421_v13 = vld [vmem:[%s4409_s24 + $0x798] sm:$0xff] }
 0x207   : > { %2754 = vmatprep.mubr.bf16.mxu1 %v3723_v15  ;;  %3332 = vmatprep.mubr.bf16.mxu0 %v3727_v16  ;;  %v425_v14 = vld [vmem:[%s4409_s24 + $0x7b8] sm:$0xff] }
 0x208   : > { %v3767_v27 = vcombine.high %v421_v13, %v425_v14 }
 0x20e   : > { %2755 = vmatmul.mubr.bf16.gmra.mrb[100].mxu1 %v3722_v21  ;;  %3333 = vmatmul.mubr.bf16.gmra.mrb[100].mxu0 %v3726_v22  ;;  %v3758_v21 = vcombine.low %v413_v57, %v417_v58  ;;  %v3763_v22 = vcombine.high %v419_v10, %v423_v11  ;;  %v3774_v58 = vcombine.low %v429_v34, %v433_v35 }
 0x20f   : > { %2762 = vmatprep.mubr.bf16.mxu1 %v3731_v23  ;;  %3340 = vmatprep.mubr.bf16.mxu0 %v3735_v24 }
 0x216   : > { %2763 = vmatmul.mubr.bf16.gmra.mrb[104].mxu1 %v3730_v29  ;;  %3341 = vmatmul.mubr.bf16.gmra.mrb[104].mxu0 %v3734_v30  ;;  %v427_v30 = vld [vmem:[%s4409_s24 + $0x7c8] sm:$0xff] }
 0x217   : > { %2770 = vmatprep.mubr.bf16.mxu1 %v3739_v31  ;;  %3348 = vmatprep.mubr.bf16.mxu0 %v3743_v32  ;;  %v431_v31 = vld [vmem:[%s4409_s24 + $0x7e8] sm:$0xff] }
 0x218   : > { %v3770_v55 = vcombine.low %v427_v30, %v431_v31 }
 0x219   : > { %v2556_v36 = vpop.f32.mrb[0].mxu1  ;;  %v3134_v40 = vpop.f32.mrb[0].mxu0 }
 0x21a   : > { %v3843_v39 = vadd.f32 %v4862_v33, %v2556_v36  ;;  %v2558_v41 = vpop.f32.mrb[1].mxu1  ;;  %v3136_v43 = vpop.f32.mrb[1].mxu0 }
 0x21b   : > { %v2559_v44 = vpop.f32.mrb[2].mxu1  ;;  %v3137_v49 = vpop.f32.mrb[2].mxu0  ;;  %v3771_v43 = vcombine.high %v427_v30, %v431_v31 }
 0x21c   : > { %v3844_v47 = vadd.f32 %v3843_v39, %v3134_v40  ;;  %v3845_v48 = vadd.f32 %v4862_v33, %v2559_v44  ;;  %v2561_v50 = vpop.f32.mrb[3].mxu1  ;;  %v3139_v52 = vpop.f32.mrb[3].mxu0  ;;  %v3762_v39 = vcombine.low %v419_v10, %v423_v11 }
 0x21e   : > { %3389 = vst [vmem:[%s4873_s30] sm:$0xff] %v3844_v47  ;;  %v3846_v53 = vadd.f32 %v3845_v48, %v3137_v49  ;;  %2771 = vmatmul.mubr.bf16.gmra.mrb[108].mxu1 %v3738_v42  ;;  %3349 = vmatmul.mubr.bf16.gmra.mrb[108].mxu0 %v3742_v45  ;;  %v3766_v42 = vcombine.low %v421_v13, %v425_v14 }
 0x21f   : > { %2778 = vmatprep.mubr.bf16.mxu1 %v3747_v46  ;;  %3356 = vmatprep.mubr.bf16.mxu0 %v3751_v51  ;;  %v3775_v48 = vcombine.high %v429_v34, %v433_v35 }
 0x220   : > { %3390 = vst [vmem:[%s4873_s30 + $0x8] sm:$0xff] %v3846_v53 }
 0x221   : > { %v2564_v56 = vpop.f32.mrb[4].mxu1  ;;  %v3142_v60 = vpop.f32.mrb[4].mxu0 }
 0x222   : > { %v3847_v59 = vadd.f32 %v4862_v33, %v2564_v56  ;;  %v2566_v61 = vpop.f32.mrb[5].mxu1  ;;  %v3144_v1 = vpop.f32.mrb[5].mxu0 }
 0x223   : > { %v2567_v63 = vpop.f32.mrb[6].mxu1  ;;  %v3145_v5 = vpop.f32.mrb[6].mxu0 }
 0x224   : > { %v3848_v3 = vadd.f32 %v3847_v59, %v3142_v60  ;;  %v3849_v4 = vadd.f32 %v4862_v33, %v2567_v63  ;;  %v2569_v6 = vpop.f32.mrb[7].mxu1  ;;  %v3147_v8 = vpop.f32.mrb[7].mxu0 }
 0x226   : > { %3391 = vst [vmem:[%s4873_s30 + $0x10] sm:$0xff] %v3848_v3  ;;  %v3850_v9 = vadd.f32 %v3849_v4, %v3145_v5  ;;  %2779 = vmatmul.mubr.bf16.gmra.mrb[112].mxu1 %v3746_v62  ;;  %3357 = vmatmul.mubr.bf16.gmra.mrb[112].mxu0 %v3750_v0 }
 0x227   : > { %2786 = vmatprep.mubr.bf16.mxu1 %v3755_v2  ;;  %3364 = vmatprep.mubr.bf16.mxu0 %v3759_v7 }
 0x228   : > { %3392 = vst [vmem:[%s4873_s30 + $0x18] sm:$0xff] %v3850_v9 }
 0x229   : > { %v2572_v12 = vpop.f32.mrb[8].mxu1  ;;  %v3150_v16 = vpop.f32.mrb[8].mxu0 }
 0x22a   : > { %v3851_v15 = vadd.f32 %v4862_v33, %v2572_v12  ;;  %v2574_v17 = vpop.f32.mrb[9].mxu1  ;;  %v3152_v19 = vpop.f32.mrb[9].mxu0 }
 0x22b   : > { %v2575_v20 = vpop.f32.mrb[10].mxu1  ;;  %v3153_v25 = vpop.f32.mrb[10].mxu0 }
 0x22c   : > { %v3852_v23 = vadd.f32 %v3851_v15, %v3150_v16  ;;  %v3853_v24 = vadd.f32 %v4862_v33, %v2575_v20  ;;  %v2577_v26 = vpop.f32.mrb[11].mxu1  ;;  %v3155_v28 = vpop.f32.mrb[11].mxu0 }
 0x22e   : > { %3393 = vst [vmem:[%s4873_s30 + $0x20] sm:$0xff] %v3852_v23  ;;  %v3854_v29 = vadd.f32 %v3853_v24, %v3153_v25  ;;  %2787 = vmatmul.mubr.bf16.gmra.mrb[116].mxu1 %v3754_v18  ;;  %3365 = vmatmul.mubr.bf16.gmra.mrb[116].mxu0 %v3758_v21 }
 0x22f   : > { %2794 = vmatprep.mubr.bf16.mxu1 %v3763_v22  ;;  %3372 = vmatprep.mubr.bf16.mxu0 %v3767_v27 }
 0x230   : > { %3394 = vst [vmem:[%s4873_s30 + $0x28] sm:$0xff] %v3854_v29 }
 0x231   : > { %v2580_v32 = vpop.f32.mrb[12].mxu1  ;;  %v3158_v37 = vpop.f32.mrb[12].mxu0 }
 0x232   : > { %v3855_v36 = vadd.f32 %v4862_v33, %v2580_v32  ;;  %v2582_v38 = vpop.f32.mrb[13].mxu1  ;;  %v3160_v40 = vpop.f32.mrb[13].mxu0 }
 0x233   : > { %v2583_v41 = vpop.f32.mrb[14].mxu1  ;;  %v3161_v46 = vpop.f32.mrb[14].mxu0 }
 0x234   : > { %v3856_v44 = vadd.f32 %v3855_v36, %v3158_v37  ;;  %v3857_v45 = vadd.f32 %v4862_v33, %v2583_v41  ;;  %v2585_v47 = vpop.f32.mrb[15].mxu1  ;;  %v3163_v49 = vpop.f32.mrb[15].mxu0 }
 0x236   : > { %3395 = vst [vmem:[%s4873_s30 + $0x30] sm:$0xff] %v3856_v44  ;;  %v3858_v50 = vadd.f32 %v3857_v45, %v3161_v46  ;;  %2795 = vmatmul.mubr.bf16.gmra.mrb[120].mxu1 %v3762_v39  ;;  %3373 = vmatmul.mubr.bf16.gmra.mrb[120].mxu0 %v3766_v42 }
 0x237   : > { %2802 = vmatprep.mubr.bf16.mxu1 %v3771_v43  ;;  %3380 = vmatprep.mubr.bf16.mxu0 %v3775_v48 }
 0x238   : > { %3396 = vst [vmem:[%s4873_s30 + $0x38] sm:$0xff] %v3858_v50 }
 0x239   : > { %v2588_v51 = vpop.f32.mrb[16].mxu1  ;;  %v3166_v53 = vpop.f32.mrb[16].mxu0 }
 0x23a   : > { %v3859_v52 = vadd.f32 %v4862_v33, %v2588_v51  ;;  %v2590_v54 = vpop.f32.mrb[17].mxu1  ;;  %v3168_v56 = vpop.f32.mrb[17].mxu0 }
 0x23b   : > { %v2591_v57 = vpop.f32.mrb[18].mxu1  ;;  %v3169_v61 = vpop.f32.mrb[18].mxu0 }
 0x23c   : > { %v3860_v59 = vadd.f32 %v3859_v52, %v3166_v53  ;;  %v3861_v60 = vadd.f32 %v4862_v33, %v2591_v57  ;;  %v2593_v62 = vpop.f32.mrb[19].mxu1  ;;  %v3171_v1 = vpop.f32.mrb[19].mxu0 }
 0x23e   : > { %3397 = vst [vmem:[%s4873_s30 + $0x40] sm:$0xff] %v3860_v59  ;;  %v3862_v63 = vadd.f32 %v3861_v60, %v3169_v61  ;;  %2803 = vmatmul.mubr.bf16.gmra.mrb[124].mxu1 %v3770_v55  ;;  %3381 = vmatmul.mubr.bf16.gmra.mrb[124].mxu0 %v3774_v58 }
 0x240   : > { %3398 = vst [vmem:[%s4873_s30 + $0x48] sm:$0xff] %v3862_v63 }
 0x241   : > { %v2596_v0 = vpop.f32.mrb[20].mxu1  ;;  %v3174_v3 = vpop.f32.mrb[20].mxu0 }
 0x242   : > { %v3863_v2 = vadd.f32 %v4862_v33, %v2596_v0  ;;  %v2598_v4 = vpop.f32.mrb[21].mxu1  ;;  %v3176_v5 = vpop.f32.mrb[21].mxu0 }
 0x243   : > { %v2599_v6 = vpop.f32.mrb[22].mxu1  ;;  %v3177_v9 = vpop.f32.mrb[22].mxu0 }
 0x244   : > { %v3864_v7 = vadd.f32 %v3863_v2, %v3174_v3  ;;  %v3865_v8 = vadd.f32 %v4862_v33, %v2599_v6  ;;  %v2601_v10 = vpop.f32.mrb[23].mxu1  ;;  %v3179_v11 = vpop.f32.mrb[23].mxu0 }
 0x246   : > { %3399 = vst [vmem:[%s4873_s30 + $0x50] sm:$0xff] %v3864_v7  ;;  %v3866_v12 = vadd.f32 %v3865_v8, %v3177_v9 }
 0x248   : > { %3400 = vst [vmem:[%s4873_s30 + $0x58] sm:$0xff] %v3866_v12 }
 0x249   : > { %v2604_v13 = vpop.f32.mrb[24].mxu1  ;;  %v3182_v15 = vpop.f32.mrb[24].mxu0 }
 0x24a   : > { %v3867_v14 = vadd.f32 %v4862_v33, %v2604_v13  ;;  %v2606_v16 = vpop.f32.mrb[25].mxu1  ;;  %v3184_v17 = vpop.f32.mrb[25].mxu0 }
 0x24b   : > { %v2607_v18 = vpop.f32.mrb[26].mxu1  ;;  %v3185_v21 = vpop.f32.mrb[26].mxu0 }
 0x24c   : > { %v3868_v19 = vadd.f32 %v3867_v14, %v3182_v15  ;;  %v3869_v20 = vadd.f32 %v4862_v33, %v2607_v18  ;;  %v2609_v22 = vpop.f32.mrb[27].mxu1  ;;  %v3187_v23 = vpop.f32.mrb[27].mxu0 }
 0x24e   : > { %3401 = vst [vmem:[%s4873_s30 + $0x60] sm:$0xff] %v3868_v19  ;;  %v3870_v24 = vadd.f32 %v3869_v20, %v3185_v21 }
 0x250   : > { %3402 = vst [vmem:[%s4873_s30 + $0x68] sm:$0xff] %v3870_v24 }
 0x251   : > { %v2612_v25 = vpop.f32.mrb[28].mxu1  ;;  %v3190_v27 = vpop.f32.mrb[28].mxu0 }
 0x252   : > { %v3871_v26 = vadd.f32 %v4862_v33, %v2612_v25  ;;  %v2614_v28 = vpop.f32.mrb[29].mxu1  ;;  %v3192_v29 = vpop.f32.mrb[29].mxu0 }
 0x253   : > { %v2615_v30 = vpop.f32.mrb[30].mxu1  ;;  %v3193_v34 = vpop.f32.mrb[30].mxu0 }
 0x254   : > { %v3872_v31 = vadd.f32 %v3871_v26, %v3190_v27  ;;  %v3873_v32 = vadd.f32 %v4862_v33, %v2615_v30  ;;  %v2617_v35 = vpop.f32.mrb[31].mxu1  ;;  %v3195_v36 = vpop.f32.mrb[31].mxu0 }
 0x256   : > { %3403 = vst [vmem:[%s4873_s30 + $0x70] sm:$0xff] %v3872_v31  ;;  %v3874_v37 = vadd.f32 %v3873_v32, %v3193_v34 }
 0x258   : > { %3404 = vst [vmem:[%s4873_s30 + $0x78] sm:$0xff] %v3874_v37 }
 0x259   : > { %v2620_v38 = vpop.f32.mrb[32].mxu1  ;;  %v3198_v40 = vpop.f32.mrb[32].mxu0 }
 0x25a   : > { %v3875_v39 = vadd.f32 %v4862_v33, %v2620_v38  ;;  %v2622_v41 = vpop.f32.mrb[33].mxu1  ;;  %v3200_v42 = vpop.f32.mrb[33].mxu0 }
 0x25b   : > { %v2623_v43 = vpop.f32.mrb[34].mxu1  ;;  %v3201_v46 = vpop.f32.mrb[34].mxu0 }
 0x25c   : > { %v3876_v44 = vadd.f32 %v3875_v39, %v3198_v40  ;;  %v3877_v45 = vadd.f32 %v4862_v33, %v2623_v43  ;;  %v2625_v47 = vpop.f32.mrb[35].mxu1  ;;  %v3203_v48 = vpop.f32.mrb[35].mxu0 }
 0x25e   : > { %3405 = vst [vmem:[%s4873_s30 + $0x80] sm:$0xff] %v3876_v44  ;;  %v3878_v49 = vadd.f32 %v3877_v45, %v3201_v46 }
 0x260   : > { %3406 = vst [vmem:[%s4873_s30 + $0x88] sm:$0xff] %v3878_v49 }
 0x261   : > { %v2628_v50 = vpop.f32.mrb[36].mxu1  ;;  %v3206_v52 = vpop.f32.mrb[36].mxu0 }
 0x262   : > { %v3879_v51 = vadd.f32 %v4862_v33, %v2628_v50  ;;  %v2630_v53 = vpop.f32.mrb[37].mxu1  ;;  %v3208_v54 = vpop.f32.mrb[37].mxu0 }
 0x263   : > { %v2631_v55 = vpop.f32.mrb[38].mxu1  ;;  %v3209_v58 = vpop.f32.mrb[38].mxu0 }
 0x264   : > { %v3880_v56 = vadd.f32 %v3879_v51, %v3206_v52  ;;  %v3881_v57 = vadd.f32 %v4862_v33, %v2631_v55  ;;  %v2633_v59 = vpop.f32.mrb[39].mxu1  ;;  %v3211_v60 = vpop.f32.mrb[39].mxu0 }
 0x266   : > { %3407 = vst [vmem:[%s4873_s30 + $0x90] sm:$0xff] %v3880_v56  ;;  %v3882_v61 = vadd.f32 %v3881_v57, %v3209_v58 }
 0x268   : > { %3408 = vst [vmem:[%s4873_s30 + $0x98] sm:$0xff] %v3882_v61 }
 0x269   : > { %v2636_v62 = vpop.f32.mrb[40].mxu1  ;;  %v3214_v63 = vpop.f32.mrb[40].mxu0 }
 0x26a   : > { %v3883_v1 = vadd.f32 %v4862_v33, %v2636_v62  ;;  %v2638_v0 = vpop.f32.mrb[41].mxu1  ;;  %v3216_v2 = vpop.f32.mrb[41].mxu0 }
 0x26b   : > { %v2639_v3 = vpop.f32.mrb[42].mxu1  ;;  %v3217_v6 = vpop.f32.mrb[42].mxu0 }
 0x26c   : > { %v3884_v4 = vadd.f32 %v3883_v1, %v3214_v63  ;;  %v3885_v5 = vadd.f32 %v4862_v33, %v2639_v3  ;;  %v2641_v7 = vpop.f32.mrb[43].mxu1  ;;  %v3219_v8 = vpop.f32.mrb[43].mxu0 }
 0x26e   : > { %3409 = vst [vmem:[%s4873_s30 + $0xa0] sm:$0xff] %v3884_v4  ;;  %v3886_v9 = vadd.f32 %v3885_v5, %v3217_v6 }
 0x270   : > { %3410 = vst [vmem:[%s4873_s30 + $0xa8] sm:$0xff] %v3886_v9 }
 0x271   : > { %v2644_v10 = vpop.f32.mrb[44].mxu1  ;;  %v3222_v12 = vpop.f32.mrb[44].mxu0 }
 0x272   : > { %v3887_v11 = vadd.f32 %v4862_v33, %v2644_v10  ;;  %v2646_v13 = vpop.f32.mrb[45].mxu1  ;;  %v3224_v14 = vpop.f32.mrb[45].mxu0 }
 0x273   : > { %v2647_v15 = vpop.f32.mrb[46].mxu1  ;;  %v3225_v18 = vpop.f32.mrb[46].mxu0 }
 0x274   : > { %v3888_v16 = vadd.f32 %v3887_v11, %v3222_v12  ;;  %v3889_v17 = vadd.f32 %v4862_v33, %v2647_v15  ;;  %v2649_v19 = vpop.f32.mrb[47].mxu1  ;;  %v3227_v20 = vpop.f32.mrb[47].mxu0 }
 0x276   : > { %3411 = vst [vmem:[%s4873_s30 + $0xb0] sm:$0xff] %v3888_v16  ;;  %v3890_v21 = vadd.f32 %v3889_v17, %v3225_v18 }
 0x278   : > { %3412 = vst [vmem:[%s4873_s30 + $0xb8] sm:$0xff] %v3890_v21 }
 0x279   : > { %v2652_v22 = vpop.f32.mrb[48].mxu1  ;;  %v3230_v24 = vpop.f32.mrb[48].mxu0 }
 0x27a   : > { %v3891_v23 = vadd.f32 %v4862_v33, %v2652_v22  ;;  %v2654_v25 = vpop.f32.mrb[49].mxu1  ;;  %v3232_v26 = vpop.f32.mrb[49].mxu0 }
 0x27b   : > { %v2655_v27 = vpop.f32.mrb[50].mxu1  ;;  %v3233_v30 = vpop.f32.mrb[50].mxu0 }
 0x27c   : > { %v3892_v28 = vadd.f32 %v3891_v23, %v3230_v24  ;;  %v3893_v29 = vadd.f32 %v4862_v33, %v2655_v27  ;;  %v2657_v31 = vpop.f32.mrb[51].mxu1  ;;  %v3235_v32 = vpop.f32.mrb[51].mxu0 }
 0x27e   : > { %3413 = vst [vmem:[%s4873_s30 + $0xc0] sm:$0xff] %v3892_v28  ;;  %v3894_v34 = vadd.f32 %v3893_v29, %v3233_v30 }
 0x280   : > { %3414 = vst [vmem:[%s4873_s30 + $0xc8] sm:$0xff] %v3894_v34 }
 0x281   : > { %v2660_v35 = vpop.f32.mrb[52].mxu1  ;;  %v3238_v37 = vpop.f32.mrb[52].mxu0 }
 0x282   : > { %v3895_v36 = vadd.f32 %v4862_v33, %v2660_v35  ;;  %v2662_v38 = vpop.f32.mrb[53].mxu1  ;;  %v3240_v39 = vpop.f32.mrb[53].mxu0 }
 0x283   : > { %v2663_v40 = vpop.f32.mrb[54].mxu1  ;;  %v3241_v43 = vpop.f32.mrb[54].mxu0 }
 0x284   : > { %v3896_v41 = vadd.f32 %v3895_v36, %v3238_v37  ;;  %v3897_v42 = vadd.f32 %v4862_v33, %v2663_v40  ;;  %v2665_v44 = vpop.f32.mrb[55].mxu1  ;;  %v3243_v45 = vpop.f32.mrb[55].mxu0 }
 0x286   : > { %3415 = vst [vmem:[%s4873_s30 + $0xd0] sm:$0xff] %v3896_v41  ;;  %v3898_v46 = vadd.f32 %v3897_v42, %v3241_v43 }
 0x288   : > { %3416 = vst [vmem:[%s4873_s30 + $0xd8] sm:$0xff] %v3898_v46 }
 0x289   : > { %v2668_v47 = vpop.f32.mrb[56].mxu1  ;;  %v3246_v49 = vpop.f32.mrb[56].mxu0 }
 0x28a   : > { %v3899_v48 = vadd.f32 %v4862_v33, %v2668_v47  ;;  %v2670_v50 = vpop.f32.mrb[57].mxu1  ;;  %v3248_v51 = vpop.f32.mrb[57].mxu0 }
 0x28b   : > { %v2671_v52 = vpop.f32.mrb[58].mxu1  ;;  %v3249_v55 = vpop.f32.mrb[58].mxu0 }
 0x28c   : > { %v3900_v53 = vadd.f32 %v3899_v48, %v3246_v49  ;;  %v3901_v54 = vadd.f32 %v4862_v33, %v2671_v52  ;;  %v2673_v56 = vpop.f32.mrb[59].mxu1  ;;  %v3251_v57 = vpop.f32.mrb[59].mxu0 }
 0x28e   : > { %3417 = vst [vmem:[%s4873_s30 + $0xe0] sm:$0xff] %v3900_v53  ;;  %v3902_v58 = vadd.f32 %v3901_v54, %v3249_v55 }
 0x290   : > { %3418 = vst [vmem:[%s4873_s30 + $0xe8] sm:$0xff] %v3902_v58 }
 0x291   : > { %v2676_v59 = vpop.f32.mrb[60].mxu1  ;;  %v3254_v61 = vpop.f32.mrb[60].mxu0 }
 0x292   : > { %v3903_v60 = vadd.f32 %v4862_v33, %v2676_v59  ;;  %v2678_v62 = vpop.f32.mrb[61].mxu1  ;;  %v3256_v1 = vpop.f32.mrb[61].mxu0 }
 0x293   : > { %v2679_v63 = vpop.f32.mrb[62].mxu1  ;;  %v3257_v3 = vpop.f32.mrb[62].mxu0 }
 0x294   : > { %v3904_v0 = vadd.f32 %v3903_v60, %v3254_v61  ;;  %v3905_v2 = vadd.f32 %v4862_v33, %v2679_v63  ;;  %v2681_v4 = vpop.f32.mrb[63].mxu1  ;;  %v3259_v5 = vpop.f32.mrb[63].mxu0 }
 0x296   : > { %3419 = vst [vmem:[%s4873_s30 + $0xf0] sm:$0xff] %v3904_v0  ;;  %v3906_v6 = vadd.f32 %v3905_v2, %v3257_v3 }
 0x298   : > { %3420 = vst [vmem:[%s4873_s30 + $0xf8] sm:$0xff] %v3906_v6 }
 0x299   : > { %v2684_v7 = vpop.f32.mrb[64].mxu1  ;;  %v3262_v9 = vpop.f32.mrb[64].mxu0 }
 0x29a   : > { %v3907_v8 = vadd.f32 %v4862_v33, %v2684_v7  ;;  %v2686_v10 = vpop.f32.mrb[65].mxu1  ;;  %v3264_v11 = vpop.f32.mrb[65].mxu0 }
 0x29b   : > { %v2687_v12 = vpop.f32.mrb[66].mxu1  ;;  %v3265_v15 = vpop.f32.mrb[66].mxu0 }
 0x29c   : > { %v3908_v13 = vadd.f32 %v3907_v8, %v3262_v9  ;;  %v3909_v14 = vadd.f32 %v4862_v33, %v2687_v12  ;;  %v2689_v16 = vpop.f32.mrb[67].mxu1  ;;  %v3267_v17 = vpop.f32.mrb[67].mxu0 }
 0x29e   : > { %3421 = vst [vmem:[%s4873_s30 + $0x100] sm:$0xff] %v3908_v13  ;;  %v3910_v18 = vadd.f32 %v3909_v14, %v3265_v15 }
 0x2a0   : > { %3422 = vst [vmem:[%s4873_s30 + $0x108] sm:$0xff] %v3910_v18 }
 0x2a1   : > { %v2692_v19 = vpop.f32.mrb[68].mxu1  ;;  %v3270_v21 = vpop.f32.mrb[68].mxu0 }
 0x2a2   : > { %v3911_v20 = vadd.f32 %v4862_v33, %v2692_v19  ;;  %v2694_v22 = vpop.f32.mrb[69].mxu1  ;;  %v3272_v23 = vpop.f32.mrb[69].mxu0 }
 0x2a3   : > { %v2695_v24 = vpop.f32.mrb[70].mxu1  ;;  %v3273_v27 = vpop.f32.mrb[70].mxu0 }
 0x2a4   : > { %v3912_v25 = vadd.f32 %v3911_v20, %v3270_v21  ;;  %v3913_v26 = vadd.f32 %v4862_v33, %v2695_v24  ;;  %v2697_v28 = vpop.f32.mrb[71].mxu1  ;;  %v3275_v29 = vpop.f32.mrb[71].mxu0 }
 0x2a6   : > { %3423 = vst [vmem:[%s4873_s30 + $0x110] sm:$0xff] %v3912_v25  ;;  %v3914_v30 = vadd.f32 %v3913_v26, %v3273_v27 }
 0x2a8   : > { %3424 = vst [vmem:[%s4873_s30 + $0x118] sm:$0xff] %v3914_v30 }
 0x2a9   : > { %v2700_v31 = vpop.f32.mrb[72].mxu1  ;;  %v3278_v34 = vpop.f32.mrb[72].mxu0 }
 0x2aa   : > { %v3915_v32 = vadd.f32 %v4862_v33, %v2700_v31  ;;  %v2702_v35 = vpop.f32.mrb[73].mxu1  ;;  %v3280_v36 = vpop.f32.mrb[73].mxu0 }
 0x2ab   : > { %v2703_v37 = vpop.f32.mrb[74].mxu1  ;;  %v3281_v40 = vpop.f32.mrb[74].mxu0 }
 0x2ac   : > { %v3916_v38 = vadd.f32 %v3915_v32, %v3278_v34  ;;  %v3917_v39 = vadd.f32 %v4862_v33, %v2703_v37  ;;  %v2705_v41 = vpop.f32.mrb[75].mxu1  ;;  %v3283_v42 = vpop.f32.mrb[75].mxu0 }
 0x2ae   : > { %3425 = vst [vmem:[%s4873_s30 + $0x120] sm:$0xff] %v3916_v38  ;;  %v3918_v43 = vadd.f32 %v3917_v39, %v3281_v40 }
 0x2b0   : > { %3426 = vst [vmem:[%s4873_s30 + $0x128] sm:$0xff] %v3918_v43 }
 0x2b1   : > { %v2708_v44 = vpop.f32.mrb[76].mxu1  ;;  %v3286_v46 = vpop.f32.mrb[76].mxu0 }
 0x2b2   : > { %v3919_v45 = vadd.f32 %v4862_v33, %v2708_v44  ;;  %v2710_v47 = vpop.f32.mrb[77].mxu1  ;;  %v3288_v48 = vpop.f32.mrb[77].mxu0 }
 0x2b3   : > { %v2711_v49 = vpop.f32.mrb[78].mxu1  ;;  %v3289_v52 = vpop.f32.mrb[78].mxu0 }
 0x2b4   : > { %v3920_v50 = vadd.f32 %v3919_v45, %v3286_v46  ;;  %v3921_v51 = vadd.f32 %v4862_v33, %v2711_v49  ;;  %v2713_v53 = vpop.f32.mrb[79].mxu1  ;;  %v3291_v54 = vpop.f32.mrb[79].mxu0 }
 0x2b6   : > { %3427 = vst [vmem:[%s4873_s30 + $0x130] sm:$0xff] %v3920_v50  ;;  %v3922_v55 = vadd.f32 %v3921_v51, %v3289_v52 }
 0x2b8   : > { %3428 = vst [vmem:[%s4873_s30 + $0x138] sm:$0xff] %v3922_v55 }
 0x2b9   : > { %v2716_v56 = vpop.f32.mrb[80].mxu1  ;;  %v3294_v58 = vpop.f32.mrb[80].mxu0 }
 0x2ba   : > { %v3923_v57 = vadd.f32 %v4862_v33, %v2716_v56  ;;  %v2718_v59 = vpop.f32.mrb[81].mxu1  ;;  %v3296_v60 = vpop.f32.mrb[81].mxu0 }
 0x2bb   : > { %v2719_v61 = vpop.f32.mrb[82].mxu1  ;;  %v3297_v63 = vpop.f32.mrb[82].mxu0 }
 0x2bc   : > { %v3924_v62 = vadd.f32 %v3923_v57, %v3294_v58  ;;  %v3925_v1 = vadd.f32 %v4862_v33, %v2719_v61  ;;  %v2721_v0 = vpop.f32.mrb[83].mxu1  ;;  %v3299_v2 = vpop.f32.mrb[83].mxu0 }
 0x2be   : > { %3429 = vst [vmem:[%s4873_s30 + $0x140] sm:$0xff] %v3924_v62  ;;  %v3926_v3 = vadd.f32 %v3925_v1, %v3297_v63 }
 0x2c0   : > { %3430 = vst [vmem:[%s4873_s30 + $0x148] sm:$0xff] %v3926_v3 }
 0x2c1   : > { %v2724_v4 = vpop.f32.mrb[84].mxu1  ;;  %v3302_v6 = vpop.f32.mrb[84].mxu0 }
 0x2c2   : > { %v3927_v5 = vadd.f32 %v4862_v33, %v2724_v4  ;;  %v2726_v7 = vpop.f32.mrb[85].mxu1  ;;  %v3304_v8 = vpop.f32.mrb[85].mxu0 }
 0x2c3   : > { %v2727_v9 = vpop.f32.mrb[86].mxu1  ;;  %v3305_v12 = vpop.f32.mrb[86].mxu0 }
 0x2c4   : > { %v3928_v10 = vadd.f32 %v3927_v5, %v3302_v6  ;;  %v3929_v11 = vadd.f32 %v4862_v33, %v2727_v9  ;;  %v2729_v13 = vpop.f32.mrb[87].mxu1  ;;  %v3307_v14 = vpop.f32.mrb[87].mxu0 }
 0x2c6   : > { %3431 = vst [vmem:[%s4873_s30 + $0x150] sm:$0xff] %v3928_v10  ;;  %v3930_v15 = vadd.f32 %v3929_v11, %v3305_v12 }
 0x2c8   : > { %3432 = vst [vmem:[%s4873_s30 + $0x158] sm:$0xff] %v3930_v15 }
 0x2c9   : > { %v2732_v16 = vpop.f32.mrb[88].mxu1  ;;  %v3310_v18 = vpop.f32.mrb[88].mxu0 }
 0x2ca   : > { %v3931_v17 = vadd.f32 %v4862_v33, %v2732_v16  ;;  %v2734_v19 = vpop.f32.mrb[89].mxu1  ;;  %v3312_v20 = vpop.f32.mrb[89].mxu0 }
 0x2cb   : > { %v2735_v21 = vpop.f32.mrb[90].mxu1  ;;  %v3313_v24 = vpop.f32.mrb[90].mxu0 }
 0x2cc   : > { %v3932_v22 = vadd.f32 %v3931_v17, %v3310_v18  ;;  %v3933_v23 = vadd.f32 %v4862_v33, %v2735_v21  ;;  %v2737_v25 = vpop.f32.mrb[91].mxu1  ;;  %v3315_v26 = vpop.f32.mrb[91].mxu0 }
 0x2ce   : > { %3433 = vst [vmem:[%s4873_s30 + $0x160] sm:$0xff] %v3932_v22  ;;  %v3934_v27 = vadd.f32 %v3933_v23, %v3313_v24 }
 0x2d0   : > { %3434 = vst [vmem:[%s4873_s30 + $0x168] sm:$0xff] %v3934_v27 }
 0x2d1   : > { %v2740_v28 = vpop.f32.mrb[92].mxu1  ;;  %v3318_v30 = vpop.f32.mrb[92].mxu0 }
 0x2d2   : > { %v3935_v29 = vadd.f32 %v4862_v33, %v2740_v28  ;;  %v2742_v31 = vpop.f32.mrb[93].mxu1  ;;  %v3320_v32 = vpop.f32.mrb[93].mxu0 }
 0x2d3   : > { %v2743_v34 = vpop.f32.mrb[94].mxu1  ;;  %v3321_v37 = vpop.f32.mrb[94].mxu0 }
 0x2d4   : > { %v3936_v35 = vadd.f32 %v3935_v29, %v3318_v30  ;;  %v3937_v36 = vadd.f32 %v4862_v33, %v2743_v34  ;;  %v2745_v38 = vpop.f32.mrb[95].mxu1  ;;  %v3323_v39 = vpop.f32.mrb[95].mxu0 }
 0x2d6   : > { %3435 = vst [vmem:[%s4873_s30 + $0x170] sm:$0xff] %v3936_v35  ;;  %v3938_v40 = vadd.f32 %v3937_v36, %v3321_v37 }
 0x2d8   : > { %3436 = vst [vmem:[%s4873_s30 + $0x178] sm:$0xff] %v3938_v40 }
 0x2d9   : > { %v2748_v41 = vpop.f32.mrb[96].mxu1  ;;  %v3326_v43 = vpop.f32.mrb[96].mxu0 }
 0x2da   : > { %v3939_v42 = vadd.f32 %v4862_v33, %v2748_v41  ;;  %v2750_v44 = vpop.f32.mrb[97].mxu1  ;;  %v3328_v45 = vpop.f32.mrb[97].mxu0 }
 0x2db   : > { %v2751_v46 = vpop.f32.mrb[98].mxu1  ;;  %v3329_v49 = vpop.f32.mrb[98].mxu0 }
 0x2dc   : > { %v3940_v47 = vadd.f32 %v3939_v42, %v3326_v43  ;;  %v3941_v48 = vadd.f32 %v4862_v33, %v2751_v46  ;;  %v2753_v50 = vpop.f32.mrb[99].mxu1  ;;  %v3331_v51 = vpop.f32.mrb[99].mxu0 }
 0x2de   : > { %3437 = vst [vmem:[%s4873_s30 + $0x180] sm:$0xff] %v3940_v47  ;;  %v3942_v52 = vadd.f32 %v3941_v48, %v3329_v49 }
 0x2e0   : > { %3438 = vst [vmem:[%s4873_s30 + $0x188] sm:$0xff] %v3942_v52 }
 0x2e1   : > { %v2756_v53 = vpop.f32.mrb[100].mxu1  ;;  %v3334_v55 = vpop.f32.mrb[100].mxu0 }
 0x2e2   : > { %v3943_v54 = vadd.f32 %v4862_v33, %v2756_v53  ;;  %v2758_v56 = vpop.f32.mrb[101].mxu1  ;;  %v3336_v57 = vpop.f32.mrb[101].mxu0 }
 0x2e3   : > { %v2759_v58 = vpop.f32.mrb[102].mxu1  ;;  %v3337_v61 = vpop.f32.mrb[102].mxu0 }
 0x2e4   : > { %v3944_v59 = vadd.f32 %v3943_v54, %v3334_v55  ;;  %v3945_v60 = vadd.f32 %v4862_v33, %v2759_v58  ;;  %v2761_v62 = vpop.f32.mrb[103].mxu1  ;;  %v3339_v1 = vpop.f32.mrb[103].mxu0 }
 0x2e6   : > { %3439 = vst [vmem:[%s4873_s30 + $0x190] sm:$0xff] %v3944_v59  ;;  %v3946_v63 = vadd.f32 %v3945_v60, %v3337_v61 }
 0x2e8   : > { %3440 = vst [vmem:[%s4873_s30 + $0x198] sm:$0xff] %v3946_v63 }
 0x2e9   : > { %v2764_v0 = vpop.f32.mrb[104].mxu1  ;;  %v3342_v3 = vpop.f32.mrb[104].mxu0 }
 0x2ea   : > { %v3947_v2 = vadd.f32 %v4862_v33, %v2764_v0  ;;  %v2766_v4 = vpop.f32.mrb[105].mxu1  ;;  %v3344_v5 = vpop.f32.mrb[105].mxu0 }
 0x2eb   : > { %v2767_v6 = vpop.f32.mrb[106].mxu1  ;;  %v3345_v9 = vpop.f32.mrb[106].mxu0 }
 0x2ec   : > { %v3948_v7 = vadd.f32 %v3947_v2, %v3342_v3  ;;  %v3949_v8 = vadd.f32 %v4862_v33, %v2767_v6  ;;  %v2769_v10 = vpop.f32.mrb[107].mxu1  ;;  %v3347_v11 = vpop.f32.mrb[107].mxu0 }
 0x2ee   : > { %3441 = vst [vmem:[%s4873_s30 + $0x1a0] sm:$0xff] %v3948_v7  ;;  %v3950_v12 = vadd.f32 %v3949_v8, %v3345_v9 }
 0x2f0   : > { %3442 = vst [vmem:[%s4873_s30 + $0x1a8] sm:$0xff] %v3950_v12 }
 0x2f1   : > { %v2772_v13 = vpop.f32.mrb[108].mxu1  ;;  %v3350_v15 = vpop.f32.mrb[108].mxu0 }
 0x2f2   : > { %v3951_v14 = vadd.f32 %v4862_v33, %v2772_v13  ;;  %v2774_v16 = vpop.f32.mrb[109].mxu1  ;;  %v3352_v17 = vpop.f32.mrb[109].mxu0 }
 0x2f3   : > { %v2775_v18 = vpop.f32.mrb[110].mxu1  ;;  %v3353_v21 = vpop.f32.mrb[110].mxu0 }
 0x2f4   : > { %v3952_v19 = vadd.f32 %v3951_v14, %v3350_v15  ;;  %v3953_v20 = vadd.f32 %v4862_v33, %v2775_v18  ;;  %v2777_v22 = vpop.f32.mrb[111].mxu1  ;;  %v3355_v23 = vpop.f32.mrb[111].mxu0 }
 0x2f6   : > { %3443 = vst [vmem:[%s4873_s30 + $0x1b0] sm:$0xff] %v3952_v19  ;;  %v3954_v24 = vadd.f32 %v3953_v20, %v3353_v21 }
 0x2f8   : > { %3444 = vst [vmem:[%s4873_s30 + $0x1b8] sm:$0xff] %v3954_v24 }
 0x2f9   : > { %v2780_v25 = vpop.f32.mrb[112].mxu1  ;;  %v3358_v27 = vpop.f32.mrb[112].mxu0 }
 0x2fa   : > { %v3955_v26 = vadd.f32 %v4862_v33, %v2780_v25  ;;  %v2782_v28 = vpop.f32.mrb[113].mxu1  ;;  %v3360_v29 = vpop.f32.mrb[113].mxu0 }
 0x2fb   : > { %v2783_v30 = vpop.f32.mrb[114].mxu1  ;;  %v3361_v34 = vpop.f32.mrb[114].mxu0 }
 0x2fc   : > { %v3956_v31 = vadd.f32 %v3955_v26, %v3358_v27  ;;  %v3957_v32 = vadd.f32 %v4862_v33, %v2783_v30  ;;  %v2785_v35 = vpop.f32.mrb[115].mxu1  ;;  %v3363_v36 = vpop.f32.mrb[115].mxu0 }
 0x2fe   : > { %3445 = vst [vmem:[%s4873_s30 + $0x1c0] sm:$0xff] %v3956_v31  ;;  %v3958_v37 = vadd.f32 %v3957_v32, %v3361_v34 }
 0x300   : > { %3446 = vst [vmem:[%s4873_s30 + $0x1c8] sm:$0xff] %v3958_v37 }
 0x301   : > { %v2788_v38 = vpop.f32.mrb[116].mxu1  ;;  %v3366_v40 = vpop.f32.mrb[116].mxu0 }
 0x302   : > { %v3959_v39 = vadd.f32 %v4862_v33, %v2788_v38  ;;  %v2790_v41 = vpop.f32.mrb[117].mxu1  ;;  %v3368_v42 = vpop.f32.mrb[117].mxu0 }
 0x303   : > { %v2791_v43 = vpop.f32.mrb[118].mxu1  ;;  %v3369_v46 = vpop.f32.mrb[118].mxu0 }
 0x304   : > { %v3960_v44 = vadd.f32 %v3959_v39, %v3366_v40  ;;  %v3961_v45 = vadd.f32 %v4862_v33, %v2791_v43  ;;  %v2793_v47 = vpop.f32.mrb[119].mxu1  ;;  %v3371_v48 = vpop.f32.mrb[119].mxu0 }
 0x306   : > { %3447 = vst [vmem:[%s4873_s30 + $0x1d0] sm:$0xff] %v3960_v44  ;;  %v3962_v49 = vadd.f32 %v3961_v45, %v3369_v46 }
 0x308   : > { %3448 = vst [vmem:[%s4873_s30 + $0x1d8] sm:$0xff] %v3962_v49 }
 0x309   : > { %v2796_v50 = vpop.f32.mrb[120].mxu1  ;;  %v3374_v52 = vpop.f32.mrb[120].mxu0 }
 0x30a   : > { %v3963_v51 = vadd.f32 %v4862_v33, %v2796_v50  ;;  %v2798_v53 = vpop.f32.mrb[121].mxu1  ;;  %v3376_v54 = vpop.f32.mrb[121].mxu0 }
 0x30b   : > { %v2799_v55 = vpop.f32.mrb[122].mxu1  ;;  %v3377_v58 = vpop.f32.mrb[122].mxu0 }
 0x30c   : > { %v3964_v56 = vadd.f32 %v3963_v51, %v3374_v52  ;;  %v3965_v57 = vadd.f32 %v4862_v33, %v2799_v55  ;;  %v2801_v59 = vpop.f32.mrb[123].mxu1  ;;  %v3379_v60 = vpop.f32.mrb[123].mxu0 }
 0x30e   : > { %3449 = vst [vmem:[%s4873_s30 + $0x1e0] sm:$0xff] %v3964_v56  ;;  %v3966_v61 = vadd.f32 %v3965_v57, %v3377_v58 }
 0x310   : > { %3450 = vst [vmem:[%s4873_s30 + $0x1e8] sm:$0xff] %v3966_v61 }
 0x311   : > { %v2804_v62 = vpop.f32.mrb[124].mxu1  ;;  %v3382_v63 = vpop.f32.mrb[124].mxu0 }
 0x312   : > { %v3967_v1 = vadd.f32 %v4862_v33, %v2804_v62  ;;  %v2806_v0 = vpop.f32.mrb[125].mxu1  ;;  %v3384_v2 = vpop.f32.mrb[125].mxu0 }
 0x313   : > { %v2807_v3 = vpop.f32.mrb[126].mxu1  ;;  %v3385_v6 = vpop.f32.mrb[126].mxu0 }
 0x314   : > { %v3968_v4 = vadd.f32 %v3967_v1, %v3382_v63  ;;  %v3969_v5 = vadd.f32 %v4862_v33, %v2807_v3  ;;  %v2809_v7 = vpop.f32.mrb[127].mxu1  ;;  %v3387_v8 = vpop.f32.mrb[127].mxu0 }
 0x316   : > { %3451 = vst [vmem:[%s4873_s30 + $0x1f0] sm:$0xff] %v3968_v4  ;;  %v3970_v9 = vadd.f32 %v3969_v5, %v3385_v6 }
 0x318   : > { %3452 = vst [vmem:[%s4873_s30 + $0x1f8] sm:$0xff] %v3970_v9 }
 0x319 PF: > { %s13_s12 = sadd.s32 1, %s4306_s12  }
 0x31a   : > { %p10_p4 = scmp.ge.s32.totalorder %s13_s12, 4  }
 0x31c   :  { %12 = sbr.rel (!%p10_p4) target bundleno = 1 (0x1), region = 62 }

</bundles_post_ra>
